<compile_context>
chip_gen: v7x
topology: tpu7x:2x2x1
jax: 0.10.0
libtpu: 0.0.40
codegen_flags: <defaults>
</compile_context>

<pallas_src>
import jax
import jax.numpy as jnp
from jax.experimental import pallas as pl
from jax.experimental.pallas import tpu as pltpu

EPS = 1e-5


def _device_generation():
    """Best-effort TPU generation from device_kind; None if unknown."""
    try:
        kind = jax.devices()[0].device_kind.lower()
    except Exception:
        return None
    for g in (7, 6, 5, 4, 3, 2):
        if f"v{g}" in kind or f"tpu{g}" in kind:
            return g
    return None


def _make_kernel(H, W, B_tile, mxu_dtype, shift_dtype, k_stacked):
    HW = H * W

    def kernel(x_ref, w1_ref, w2_ref, col_ref, o_ref):
        # x_ref / o_ref: (B_tile, C, HW)
        # w*_ref: (3, C, 3C) if k_stacked else (9, C, C) with k = kh*3 + kw
        # col_ref: (1, HW) int32 column index j of each flattened position.

        # (1, HW) boundary masks for ReflectionPad2d(1); broadcast over the
        # channel (sublane) axis inside jnp.where, never materialized (C, HW).
        flat = jax.lax.broadcasted_iota(jnp.int32, (1, HW), 1)
        col = col_ref[...]
        at_left = col == 0
        at_right = col == W - 1
        at_top = flat < W
        at_bot = flat >= (H - 1) * W

        def row_shifts(t):
            # t[k -/+ W] via XLU lane rotation; repair the wrapped first/last
            # row with the reflected row.
            prev_row = pltpu.roll(t, W, axis=1)               # t[k - W]
            next_row = pltpu.roll(t, HW - W, axis=1)          # t[k + W]
            up = jnp.where(at_top, next_row, prev_row)        # x[refl(i-1), j]
            down = jnp.where(at_bot, prev_row, next_row)      # x[refl(i+1), j]
            return up, t, down                                # kh = 0, 1, 2

        def col_shifts(t):
            prev_col = pltpu.roll(t, 1, axis=1)               # t[k - 1]
            next_col = pltpu.roll(t, HW - 1, axis=1)          # t[k + 1]
            left = jnp.where(at_left, next_col, prev_col)     # x[i, refl(j-1)]
            right = jnp.where(at_right, prev_col, next_col)   # x[i, refl(j+1)]
            return left, t, right                             # kw = 0, 1, 2

        def conv3x3(t, w_ref):
            # t: (C, HW) in shift_dtype; returns the f32 (C, HW) conv output.
            acc = None
            rows = row_shifts(t)
            for kh in range(3):
                cols = col_shifts(rows[kh])
                if k_stacked:
                    # One MXU matmul per kh with K = 3C.
                    stacked = jnp.concatenate(cols, axis=0)   # (3C, HW)
                    parts = (jnp.dot(w_ref[kh], stacked.astype(mxu_dtype),
                                     preferred_element_type=jnp.float32),)
                else:
                    parts = tuple(
                        jnp.dot(w_ref[kh * 3 + kw], cols[kw].astype(mxu_dtype),
                                preferred_element_type=jnp.float32)
                        for kw in range(3))
                for p in parts:
                    acc = p if acc is None else acc + p
            return acc

        def instance_norm(y):
            # Single pass: mean and E[y^2]; biased variance (PyTorch default).
            mean = jnp.mean(y, axis=1, keepdims=True)
            mean_sq = jnp.mean(y * y, axis=1, keepdims=True)
            var = jnp.maximum(mean_sq - mean * mean, 0.0)
            return (y - mean) * jax.lax.rsqrt(var + EPS)

        for b in range(B_tile):                               # static unroll
            y = conv3x3(x_ref[b].astype(shift_dtype), w1_ref)
            y = instance_norm(y)
            y = jnp.maximum(y, 0.0)                           # ReLU
            y = conv3x3(y.astype(shift_dtype), w2_ref)
            y = instance_norm(y)
            # Residual add: re-read x from the ref instead of keeping an f32
            # copy live across both convs (less VMEM pressure / spill).
            o_ref[b] = (x_ref[b].astype(jnp.float32) + y).astype(o_ref.dtype)

    return kernel


def _stack_weights(w, mxu_dtype, k_stacked):
    # w: (O, I, 3, 3) OIHW.
    C = w.shape[0]
    if k_stacked:
        # (3, C, 3C): stacked[kh][:, kw*C + i] = w[:, i, kh, kw]
        return jnp.transpose(w, (2, 0, 3, 1)).reshape(3, C, 3 * C).astype(mxu_dtype)
    # (9, C, C): stacked[kh*3 + kw] = w[:, :, kh, kw]
    return jnp.transpose(w, (2, 3, 0, 1)).reshape(9, C, C).astype(mxu_dtype)


def _run_kernel(x_flat, w1, w2, H, W, B_tile, mxu_dtype, shift_dtype,
                vmem_limit, force_unstacked):
    N, C, HW = x_flat.shape
    # The K-stacked sublane concat needs C aligned to the sublane tiling of
    # the shift dtype (8 for 32-bit, 16 for 16-bit); otherwise use 9 dots.
    sublane = 8 * (4 // jnp.dtype(shift_dtype).itemsize)
    k_stacked = (C % sublane == 0) and not force_unstacked

    w1_s = _stack_weights(w1, mxu_dtype, k_stacked)
    w2_s = _stack_weights(w2, mxu_dtype, k_stacked)
    w_shape = w1_s.shape
    # Column index (j) of each flattened spatial position, computed outside
    # the kernel so no in-kernel integer mod is needed.
    col_ids = (jnp.arange(HW, dtype=jnp.int32) % W).reshape(1, HW)

    cost = pl.CostEstimate(
        flops=int(2 * (2 * 9 * C * C * HW) * N),              # 2 convs
        transcendentals=int(2 * C * N),                        # rsqrt/(img,ch)
        bytes_accessed=int(2 * x_flat.size * x_flat.dtype.itemsize
                           + 2 * w1_s.size * w1_s.dtype.itemsize
                           + col_ids.size * 4))

    cp_kwargs = dict(dimension_semantics=("parallel",))
    if vmem_limit is not None:
        cp_kwargs["vmem_limit_bytes"] = vmem_limit

    out_flat = pl.pallas_call(
        _make_kernel(H, W, B_tile, mxu_dtype, shift_dtype, k_stacked),
        out_shape=jax.ShapeDtypeStruct((N, C, HW), x_flat.dtype),
        grid=(N // B_tile,),
        in_specs=[
            pl.BlockSpec((B_tile, C, HW), lambda n: (n, 0, 0)),
            pl.BlockSpec(w_shape, lambda n: (0, 0, 0)),
            pl.BlockSpec(w_shape, lambda n: (0, 0, 0)),
            pl.BlockSpec((1, HW), lambda n: (0, 0)),
        ],
        out_specs=pl.BlockSpec((B_tile, C, HW), lambda n: (n, 0, 0)),
        compiler_params=pltpu.CompilerParams(**cp_kwargs),
        cost_estimate=cost,
    )(x_flat, w1_s, w2_s, col_ids)
    return out_flat


def residual_block(x, w1, b1, w2, b2, *, mxu_dtype=jnp.bfloat16, shift_dtype=None):
    """x: (N, C, H, W); w*: (C, C, 3, 3) OIHW; b*: (C,).

    Conv biases are accepted for API parity with the PyTorch module but are
    mathematically cancelled by InstanceNorm2d(affine=False) (it subtracts the
    per-channel mean), so they are not passed to the kernel.
    """
    del b1, b2
    N, C, H, W = x.shape
    assert H >= 2 and W >= 2, "ReflectionPad2d(1) requires H >= 2 and W >= 2"
    HW = H * W

    gen = _device_generation()
    if shift_dtype is None:
        # v5-and-older VPUs have no bf16 path: keep the shift/select math f32
        # there (the MXU operands are still cast to mxu_dtype at the dot).
        shift_dtype = jnp.float32 if (gen is not None and gen <= 5) else mxu_dtype
    shift_dtype = jnp.dtype(shift_dtype)

    # VMEM scoped limit: leave headroom below v7x's 64 MiB physical VMEM; the
    # 128-MiB parts (v5e/v6e) can take a larger limit for whole-image slabs.
    if gen in (5, 6):
        vmem_limit = 96 * 1024 * 1024
    elif gen == 7:
        vmem_limit = 48 * 1024 * 1024
    else:
        vmem_limit = None  # unknown part: keep the compiler default

    # Batch several images per grid step for small C to amortize per-step
    # overhead (the MXU is badly under-fed at C <= 64 anyway).
    B_tile = next(d for d in (8, 4, 2, 1) if N % d == 0) if C <= 64 else 1

    x_flat = x.reshape(N, C, HW)  # lane-dense last dim (free relayout in HBM)

    # Preferred config first; degrade gracefully (f32 shifts, then fully
    # unstacked f32) if the local Mosaic toolchain rejects a lowering.
    configs = [(shift_dtype, False)]
    if shift_dtype != jnp.dtype(jnp.float32):
        configs.append((jnp.dtype(jnp.float32), False))
    configs.append((jnp.dtype(jnp.float32), True))
    last_err = None
    for sd, force_unstacked in configs:
        try:
            out_flat = _run_kernel(x_flat, w1, w2, H, W, B_tile, mxu_dtype, sd,
                                   vmem_limit, force_unstacked)
            out_flat = jax.block_until_ready(out_flat)
            return out_flat.reshape(N, C, H, W)
        except Exception as e:  # toolchain-dependent lowering differences
            last_err = e
    raise last_err


def residual_block_ref(x, w1, b1, w2, b2):
    """Pure-JAX reference mirroring the PyTorch module (biases included)."""
    def conv(t, w, b):
        tp = jnp.pad(t, ((0, 0), (0, 0), (1, 1), (1, 1)), mode="reflect")
        y = jax.lax.conv_general_dilated(
            tp, w, (1, 1), "VALID",
            dimension_numbers=("NCHW", "OIHW", "NCHW"))
        return y + b[None, :, None, None]

    def inorm(y):
        mean = y.mean(axis=(2, 3), keepdims=True)
        var = ((y - mean) ** 2).mean(axis=(2, 3), keepdims=True)
        return (y - mean) * jax.lax.rsqrt(var + EPS)

    y = conv(x, w1, b1)
    y = inorm(y)
    y = jnp.maximum(y, 0.0)
    y = conv(y, w2, b2)
    y = inorm(y)
    return x + y


if __name__ == "__main__":
    N, C, H, W = 2, 4, 16, 16
    key = jax.random.PRNGKey(0)
    k1, k2, k3, k4, k5 = jax.random.split(key, 5)

    x = jax.random.normal(k1, (N, C, H, W), jnp.float32)
    w1 = jax.random.normal(k2, (C, C, 3, 3), jnp.float32) * 0.1
    b1 = jax.random.normal(k3, (C,), jnp.float32) * 0.1
    w2 = jax.random.normal(k4, (C, C, 3, 3), jnp.float32) * 0.1
    b2 = jax.random.normal(k5, (C,), jnp.float32) * 0.1

    ref = jax.block_until_ready(residual_block_ref(x, w1, b1, w2, b2))

    # Exact-math check: f32 MXU operands and f32 shift math.
    out_f32 = jax.block_until_ready(
        residual_block(x, w1, b1, w2, b2, mxu_dtype=jnp.float32))
    assert out_f32.shape == (N, C, H, W)
    err_f32 = jnp.max(jnp.abs(out_f32 - ref))
    assert jnp.allclose(out_f32, ref, atol=1e-4, rtol=1e-4), (
        f"f32 max abs err = {err_f32}")

    # Default fast path: bf16 MXU operands (+ bf16 shift math on v6e/v7x),
    # f32 accumulation and normalization.
    out_bf16 = jax.block_until_ready(residual_block(x, w1, b1, w2, b2))
    err_bf16 = jnp.max(jnp.abs(out_bf16 - ref))
    assert err_bf16 < 0.25, f"bf16 max abs err = {err_bf16}"

    print("KERNEL_OK")
</pallas_src>

<mosaic_0001>
module attributes {stable_mosaic.version = 11 : i64} {
  func.func @kernel(%arg0: i32, %arg1: memref<2x4x256xf32, #tpu.memory_space<vmem>>, %arg2: memref<9x4x4xf32, #tpu.memory_space<vmem>>, %arg3: memref<9x4x4xf32, #tpu.memory_space<vmem>>, %arg4: memref<1x256xi32, #tpu.memory_space<vmem>>, %arg5: memref<2x4x256xf32, #tpu.memory_space<vmem>>) attributes {dimension_semantics = [#tpu.dimension_semantics<parallel>], iteration_bounds = array<i64: 1>, scalar_prefetch = 0 : i64, scratch_operands = 0 : i64, tpu.core_type = #tpu.core_type<tc>, window_params = [{transform_indices = @transform_0, window_bounds = array<i64: 2, 4, 256>}, {pipeline_mode = #tpu.pipeline_mode<synchronous>, transform_indices = @transform_1, window_bounds = array<i64: 9, 4, 4>}, {pipeline_mode = #tpu.pipeline_mode<synchronous>, transform_indices = @transform_2, window_bounds = array<i64: 9, 4, 4>}, {pipeline_mode = #tpu.pipeline_mode<synchronous>, transform_indices = @transform_3, window_bounds = array<i64: 1, 256>}, {transform_indices = @transform_4, window_bounds = array<i64: 2, 4, 256>}]} {
    %0 = tpu.iota {dimensions = array<i32: 1>} : vector<1x256xi32>
    %c0 = arith.constant 0 : index
    %c0_0 = arith.constant 0 : index
    %1 = vector.load %arg4[%c0, %c0_0] : memref<1x256xi32, #tpu.memory_space<vmem>>, vector<1x256xi32>
    %c0_i32 = arith.constant 0 : i32
    %2 = vector.broadcast %c0_i32 : i32 to vector<1x256xi32>
    %3 = arith.cmpi eq, %1, %2 : vector<1x256xi32>
    %c15_i32 = arith.constant 15 : i32
    %4 = vector.broadcast %c15_i32 : i32 to vector<1x256xi32>
    %5 = arith.cmpi eq, %1, %4 : vector<1x256xi32>
    %c16_i32 = arith.constant 16 : i32
    %6 = vector.broadcast %c16_i32 : i32 to vector<1x256xi32>
    %7 = arith.cmpi slt, %0, %6 : vector<1x256xi32>
    %c240_i32 = arith.constant 240 : i32
    %8 = vector.broadcast %c240_i32 : i32 to vector<1x256xi32>
    %9 = arith.cmpi sge, %0, %8 : vector<1x256xi32>
    %c0_1 = arith.constant 0 : index
    %c0_2 = arith.constant 0 : index
    %c0_3 = arith.constant 0 : index
    %10 = vector.load %arg1[%c0_1, %c0_2, %c0_3] : memref<2x4x256xf32, #tpu.memory_space<vmem>>, vector<1x4x256xf32>
    %11 = vector.shape_cast %10 : vector<1x4x256xf32> to vector<4x256xf32>
    %c16_i32_4 = arith.constant 16 : i32
    %12 = tpu.dynamic_rotate %11 by %c16_i32_4 dim 1 : vector<4x256xf32>, i32 -> vector<4x256xf32>
    %c240_i32_5 = arith.constant 240 : i32
    %13 = tpu.dynamic_rotate %11 by %c240_i32_5 dim 1 : vector<4x256xf32>, i32 -> vector<4x256xf32>
    %14 = vector.shape_cast %7 : vector<1x256xi1> to vector<1x256xi1>
    %15 = vector.broadcast %14 : vector<1x256xi1> to vector<4x256xi1>
    %16 = arith.select %15, %13, %12 : vector<4x256xi1>, vector<4x256xf32>
    %17 = vector.shape_cast %9 : vector<1x256xi1> to vector<1x256xi1>
    %18 = vector.broadcast %17 : vector<1x256xi1> to vector<4x256xi1>
    %19 = arith.select %18, %12, %13 : vector<4x256xi1>, vector<4x256xf32>
    %c1_i32 = arith.constant 1 : i32
    %20 = tpu.dynamic_rotate %16 by %c1_i32 dim 1 : vector<4x256xf32>, i32 -> vector<4x256xf32>
    %c255_i32 = arith.constant 255 : i32
    %21 = tpu.dynamic_rotate %16 by %c255_i32 dim 1 : vector<4x256xf32>, i32 -> vector<4x256xf32>
    %22 = vector.shape_cast %3 : vector<1x256xi1> to vector<1x256xi1>
    %23 = vector.broadcast %22 : vector<1x256xi1> to vector<4x256xi1>
    %24 = arith.select %23, %21, %20 : vector<4x256xi1>, vector<4x256xf32>
    %25 = vector.shape_cast %5 : vector<1x256xi1> to vector<1x256xi1>
    %26 = vector.broadcast %25 : vector<1x256xi1> to vector<4x256xi1>
    %27 = arith.select %26, %20, %21 : vector<4x256xi1>, vector<4x256xf32>
    %c0_6 = arith.constant 0 : index
    %c0_7 = arith.constant 0 : index
    %c0_8 = arith.constant 0 : index
    %28 = vector.load %arg2[%c0_6, %c0_7, %c0_8] : memref<9x4x4xf32, #tpu.memory_space<vmem>>, vector<1x4x4xf32>
    %29 = vector.shape_cast %28 : vector<1x4x4xf32> to vector<4x4xf32>
    %cst = arith.constant dense<0.000000e+00> : vector<4x256xf32>
    %30 = tpu.matmul %29, %24, %cst {dimension_numbers = #tpu.dot_dimension_numbers<[1], [0], [0], [1], [0, 0, 1, 1], [], []>} : vector<4x4xf32>, vector<4x256xf32>, vector<4x256xf32> -> vector<4x256xf32>
    %c1 = arith.constant 1 : index
    %c0_9 = arith.constant 0 : index
    %c0_10 = arith.constant 0 : index
    %31 = vector.load %arg2[%c1, %c0_9, %c0_10] : memref<9x4x4xf32, #tpu.memory_space<vmem>>, vector<1x4x4xf32>
    %32 = vector.shape_cast %31 : vector<1x4x4xf32> to vector<4x4xf32>
    %cst_11 = arith.constant dense<0.000000e+00> : vector<4x256xf32>
    %33 = tpu.matmul %32, %16, %cst_11 {dimension_numbers = #tpu.dot_dimension_numbers<[1], [0], [0], [1], [0, 0, 1, 1], [], []>} : vector<4x4xf32>, vector<4x256xf32>, vector<4x256xf32> -> vector<4x256xf32>
    %c2 = arith.constant 2 : index
    %c0_12 = arith.constant 0 : index
    %c0_13 = arith.constant 0 : index
    %34 = vector.load %arg2[%c2, %c0_12, %c0_13] : memref<9x4x4xf32, #tpu.memory_space<vmem>>, vector<1x4x4xf32>
    %35 = vector.shape_cast %34 : vector<1x4x4xf32> to vector<4x4xf32>
    %cst_14 = arith.constant dense<0.000000e+00> : vector<4x256xf32>
    %36 = tpu.matmul %35, %27, %cst_14 {dimension_numbers = #tpu.dot_dimension_numbers<[1], [0], [0], [1], [0, 0, 1, 1], [], []>} : vector<4x4xf32>, vector<4x256xf32>, vector<4x256xf32> -> vector<4x256xf32>
    %37 = arith.addf %30, %33 : vector<4x256xf32>
    %38 = arith.addf %37, %36 : vector<4x256xf32>
    %c1_i32_15 = arith.constant 1 : i32
    %39 = tpu.dynamic_rotate %11 by %c1_i32_15 dim 1 : vector<4x256xf32>, i32 -> vector<4x256xf32>
    %c255_i32_16 = arith.constant 255 : i32
    %40 = tpu.dynamic_rotate %11 by %c255_i32_16 dim 1 : vector<4x256xf32>, i32 -> vector<4x256xf32>
    %41 = vector.shape_cast %3 : vector<1x256xi1> to vector<1x256xi1>
    %42 = vector.broadcast %41 : vector<1x256xi1> to vector<4x256xi1>
    %43 = arith.select %42, %40, %39 : vector<4x256xi1>, vector<4x256xf32>
    %44 = vector.shape_cast %5 : vector<1x256xi1> to vector<1x256xi1>
    %45 = vector.broadcast %44 : vector<1x256xi1> to vector<4x256xi1>
    %46 = arith.select %45, %39, %40 : vector<4x256xi1>, vector<4x256xf32>
    %c3 = arith.constant 3 : index
    %c0_17 = arith.constant 0 : index
    %c0_18 = arith.constant 0 : index
    %47 = vector.load %arg2[%c3, %c0_17, %c0_18] : memref<9x4x4xf32, #tpu.memory_space<vmem>>, vector<1x4x4xf32>
    %48 = vector.shape_cast %47 : vector<1x4x4xf32> to vector<4x4xf32>
    %cst_19 = arith.constant dense<0.000000e+00> : vector<4x256xf32>
    %49 = tpu.matmul %48, %43, %cst_19 {dimension_numbers = #tpu.dot_dimension_numbers<[1], [0], [0], [1], [0, 0, 1, 1], [], []>} : vector<4x4xf32>, vector<4x256xf32>, vector<4x256xf32> -> vector<4x256xf32>
    %c4 = arith.constant 4 : index
    %c0_20 = arith.constant 0 : index
    %c0_21 = arith.constant 0 : index
    %50 = vector.load %arg2[%c4, %c0_20, %c0_21] : memref<9x4x4xf32, #tpu.memory_space<vmem>>, vector<1x4x4xf32>
    %51 = vector.shape_cast %50 : vector<1x4x4xf32> to vector<4x4xf32>
    %cst_22 = arith.constant dense<0.000000e+00> : vector<4x256xf32>
    %52 = tpu.matmul %51, %11, %cst_22 {dimension_numbers = #tpu.dot_dimension_numbers<[1], [0], [0], [1], [0, 0, 1, 1], [], []>} : vector<4x4xf32>, vector<4x256xf32>, vector<4x256xf32> -> vector<4x256xf32>
    %c5 = arith.constant 5 : index
    %c0_23 = arith.constant 0 : index
    %c0_24 = arith.constant 0 : index
    %53 = vector.load %arg2[%c5, %c0_23, %c0_24] : memref<9x4x4xf32, #tpu.memory_space<vmem>>, vector<1x4x4xf32>
    %54 = vector.shape_cast %53 : vector<1x4x4xf32> to vector<4x4xf32>
    %cst_25 = arith.constant dense<0.000000e+00> : vector<4x256xf32>
    %55 = tpu.matmul %54, %46, %cst_25 {dimension_numbers = #tpu.dot_dimension_numbers<[1], [0], [0], [1], [0, 0, 1, 1], [], []>} : vector<4x4xf32>, vector<4x256xf32>, vector<4x256xf32> -> vector<4x256xf32>
    %56 = arith.addf %38, %49 : vector<4x256xf32>
    %57 = arith.addf %56, %52 : vector<4x256xf32>
    %58 = arith.addf %57, %55 : vector<4x256xf32>
    %c1_i32_26 = arith.constant 1 : i32
    %59 = tpu.dynamic_rotate %19 by %c1_i32_26 dim 1 : vector<4x256xf32>, i32 -> vector<4x256xf32>
    %c255_i32_27 = arith.constant 255 : i32
    %60 = tpu.dynamic_rotate %19 by %c255_i32_27 dim 1 : vector<4x256xf32>, i32 -> vector<4x256xf32>
    %61 = vector.shape_cast %3 : vector<1x256xi1> to vector<1x256xi1>
    %62 = vector.broadcast %61 : vector<1x256xi1> to vector<4x256xi1>
    %63 = arith.select %62, %60, %59 : vector<4x256xi1>, vector<4x256xf32>
    %64 = vector.shape_cast %5 : vector<1x256xi1> to vector<1x256xi1>
    %65 = vector.broadcast %64 : vector<1x256xi1> to vector<4x256xi1>
    %66 = arith.select %65, %59, %60 : vector<4x256xi1>, vector<4x256xf32>
    %c6 = arith.constant 6 : index
    %c0_28 = arith.constant 0 : index
    %c0_29 = arith.constant 0 : index
    %67 = vector.load %arg2[%c6, %c0_28, %c0_29] : memref<9x4x4xf32, #tpu.memory_space<vmem>>, vector<1x4x4xf32>
    %68 = vector.shape_cast %67 : vector<1x4x4xf32> to vector<4x4xf32>
    %cst_30 = arith.constant dense<0.000000e+00> : vector<4x256xf32>
    %69 = tpu.matmul %68, %63, %cst_30 {dimension_numbers = #tpu.dot_dimension_numbers<[1], [0], [0], [1], [0, 0, 1, 1], [], []>} : vector<4x4xf32>, vector<4x256xf32>, vector<4x256xf32> -> vector<4x256xf32>
    %c7 = arith.constant 7 : index
    %c0_31 = arith.constant 0 : index
    %c0_32 = arith.constant 0 : index
    %70 = vector.load %arg2[%c7, %c0_31, %c0_32] : memref<9x4x4xf32, #tpu.memory_space<vmem>>, vector<1x4x4xf32>
    %71 = vector.shape_cast %70 : vector<1x4x4xf32> to vector<4x4xf32>
    %cst_33 = arith.constant dense<0.000000e+00> : vector<4x256xf32>
    %72 = tpu.matmul %71, %19, %cst_33 {dimension_numbers = #tpu.dot_dimension_numbers<[1], [0], [0], [1], [0, 0, 1, 1], [], []>} : vector<4x4xf32>, vector<4x256xf32>, vector<4x256xf32> -> vector<4x256xf32>
    %c8 = arith.constant 8 : index
    %c0_34 = arith.constant 0 : index
    %c0_35 = arith.constant 0 : index
    %73 = vector.load %arg2[%c8, %c0_34, %c0_35] : memref<9x4x4xf32, #tpu.memory_space<vmem>>, vector<1x4x4xf32>
    %74 = vector.shape_cast %73 : vector<1x4x4xf32> to vector<4x4xf32>
    %cst_36 = arith.constant dense<0.000000e+00> : vector<4x256xf32>
    %75 = tpu.matmul %74, %66, %cst_36 {dimension_numbers = #tpu.dot_dimension_numbers<[1], [0], [0], [1], [0, 0, 1, 1], [], []>} : vector<4x4xf32>, vector<4x256xf32>, vector<4x256xf32> -> vector<4x256xf32>
    %76 = arith.addf %58, %69 : vector<4x256xf32>
    %77 = arith.addf %76, %72 : vector<4x256xf32>
    %78 = arith.addf %77, %75 : vector<4x256xf32>
    %cst_37 = arith.constant dense<0.000000e+00> : vector<4xf32>
    %79 = vector.multi_reduction <add>, %78, %cst_37 [1] : vector<4x256xf32> to vector<4xf32>
    %80 = vector.shape_cast %79 : vector<4xf32> to vector<4x1xf32>
    %cst_38 = arith.constant 2.560000e+02 : f32
    %81 = vector.broadcast %cst_38 : f32 to vector<4x1xf32>
    %82 = arith.divf %80, %81 : vector<4x1xf32>
    %83 = arith.mulf %78, %78 : vector<4x256xf32>
    %cst_39 = arith.constant dense<0.000000e+00> : vector<4xf32>
    %84 = vector.multi_reduction <add>, %83, %cst_39 [1] : vector<4x256xf32> to vector<4xf32>
    %85 = vector.shape_cast %84 : vector<4xf32> to vector<4x1xf32>
    %cst_40 = arith.constant 2.560000e+02 : f32
    %86 = vector.broadcast %cst_40 : f32 to vector<4x1xf32>
    %87 = arith.divf %85, %86 : vector<4x1xf32>
    %88 = arith.mulf %82, %82 : vector<4x1xf32>
    %89 = arith.subf %87, %88 : vector<4x1xf32>
    %cst_41 = arith.constant 0.000000e+00 : f32
    %90 = vector.broadcast %cst_41 : f32 to vector<4x1xf32>
    %91 = arith.maximumf %89, %90 : vector<4x1xf32>
    %92 = vector.broadcast %82 : vector<4x1xf32> to vector<4x256xf32>
    %93 = arith.subf %78, %92 : vector<4x256xf32>
    %cst_42 = arith.constant 9.99999974E-6 : f32
    %94 = vector.broadcast %cst_42 : f32 to vector<4x1xf32>
    %95 = arith.addf %91, %94 : vector<4x1xf32>
    %96 = math.rsqrt %95 : vector<4x1xf32>
    %97 = vector.broadcast %96 : vector<4x1xf32> to vector<4x256xf32>
    %98 = arith.mulf %93, %97 : vector<4x256xf32>
    %cst_43 = arith.constant 0.000000e+00 : f32
    %99 = vector.broadcast %cst_43 : f32 to vector<4x256xf32>
    %100 = arith.maximumf %98, %99 : vector<4x256xf32>
    %c16_i32_44 = arith.constant 16 : i32
    %101 = tpu.dynamic_rotate %100 by %c16_i32_44 dim 1 : vector<4x256xf32>, i32 -> vector<4x256xf32>
    %c240_i32_45 = arith.constant 240 : i32
    %102 = tpu.dynamic_rotate %100 by %c240_i32_45 dim 1 : vector<4x256xf32>, i32 -> vector<4x256xf32>
    %103 = vector.shape_cast %7 : vector<1x256xi1> to vector<1x256xi1>
    %104 = vector.broadcast %103 : vector<1x256xi1> to vector<4x256xi1>
    %105 = arith.select %104, %102, %101 : vector<4x256xi1>, vector<4x256xf32>
    %106 = vector.shape_cast %9 : vector<1x256xi1> to vector<1x256xi1>
    %107 = vector.broadcast %106 : vector<1x256xi1> to vector<4x256xi1>
    %108 = arith.select %107, %101, %102 : vector<4x256xi1>, vector<4x256xf32>
    %c1_i32_46 = arith.constant 1 : i32
    %109 = tpu.dynamic_rotate %105 by %c1_i32_46 dim 1 : vector<4x256xf32>, i32 -> vector<4x256xf32>
    %c255_i32_47 = arith.constant 255 : i32
    %110 = tpu.dynamic_rotate %105 by %c255_i32_47 dim 1 : vector<4x256xf32>, i32 -> vector<4x256xf32>
    %111 = vector.shape_cast %3 : vector<1x256xi1> to vector<1x256xi1>
    %112 = vector.broadcast %111 : vector<1x256xi1> to vector<4x256xi1>
    %113 = arith.select %112, %110, %109 : vector<4x256xi1>, vector<4x256xf32>
    %114 = vector.shape_cast %5 : vector<1x256xi1> to vector<1x256xi1>
    %115 = vector.broadcast %114 : vector<1x256xi1> to vector<4x256xi1>
    %116 = arith.select %115, %109, %110 : vector<4x256xi1>, vector<4x256xf32>
    %c0_48 = arith.constant 0 : index
    %c0_49 = arith.constant 0 : index
    %c0_50 = arith.constant 0 : index
    %117 = vector.load %arg3[%c0_48, %c0_49, %c0_50] : memref<9x4x4xf32, #tpu.memory_space<vmem>>, vector<1x4x4xf32>
    %118 = vector.shape_cast %117 : vector<1x4x4xf32> to vector<4x4xf32>
    %cst_51 = arith.constant dense<0.000000e+00> : vector<4x256xf32>
    %119 = tpu.matmul %118, %113, %cst_51 {dimension_numbers = #tpu.dot_dimension_numbers<[1], [0], [0], [1], [0, 0, 1, 1], [], []>} : vector<4x4xf32>, vector<4x256xf32>, vector<4x256xf32> -> vector<4x256xf32>
    %c1_52 = arith.constant 1 : index
    %c0_53 = arith.constant 0 : index
    %c0_54 = arith.constant 0 : index
    %120 = vector.load %arg3[%c1_52, %c0_53, %c0_54] : memref<9x4x4xf32, #tpu.memory_space<vmem>>, vector<1x4x4xf32>
    %121 = vector.shape_cast %120 : vector<1x4x4xf32> to vector<4x4xf32>
    %cst_55 = arith.constant dense<0.000000e+00> : vector<4x256xf32>
    %122 = tpu.matmul %121, %105, %cst_55 {dimension_numbers = #tpu.dot_dimension_numbers<[1], [0], [0], [1], [0, 0, 1, 1], [], []>} : vector<4x4xf32>, vector<4x256xf32>, vector<4x256xf32> -> vector<4x256xf32>
    %c2_56 = arith.constant 2 : index
    %c0_57 = arith.constant 0 : index
    %c0_58 = arith.constant 0 : index
    %123 = vector.load %arg3[%c2_56, %c0_57, %c0_58] : memref<9x4x4xf32, #tpu.memory_space<vmem>>, vector<1x4x4xf32>
    %124 = vector.shape_cast %123 : vector<1x4x4xf32> to vector<4x4xf32>
    %cst_59 = arith.constant dense<0.000000e+00> : vector<4x256xf32>
    %125 = tpu.matmul %124, %116, %cst_59 {dimension_numbers = #tpu.dot_dimension_numbers<[1], [0], [0], [1], [0, 0, 1, 1], [], []>} : vector<4x4xf32>, vector<4x256xf32>, vector<4x256xf32> -> vector<4x256xf32>
    %126 = arith.addf %119, %122 : vector<4x256xf32>
    %127 = arith.addf %126, %125 : vector<4x256xf32>
    %c1_i32_60 = arith.constant 1 : i32
    %128 = tpu.dynamic_rotate %100 by %c1_i32_60 dim 1 : vector<4x256xf32>, i32 -> vector<4x256xf32>
    %c255_i32_61 = arith.constant 255 : i32
    %129 = tpu.dynamic_rotate %100 by %c255_i32_61 dim 1 : vector<4x256xf32>, i32 -> vector<4x256xf32>
    %130 = vector.shape_cast %3 : vector<1x256xi1> to vector<1x256xi1>
    %131 = vector.broadcast %130 : vector<1x256xi1> to vector<4x256xi1>
    %132 = arith.select %131, %129, %128 : vector<4x256xi1>, vector<4x256xf32>
    %133 = vector.shape_cast %5 : vector<1x256xi1> to vector<1x256xi1>
    %134 = vector.broadcast %133 : vector<1x256xi1> to vector<4x256xi1>
    %135 = arith.select %134, %128, %129 : vector<4x256xi1>, vector<4x256xf32>
    %c3_62 = arith.constant 3 : index
    %c0_63 = arith.constant 0 : index
    %c0_64 = arith.constant 0 : index
    %136 = vector.load %arg3[%c3_62, %c0_63, %c0_64] : memref<9x4x4xf32, #tpu.memory_space<vmem>>, vector<1x4x4xf32>
    %137 = vector.shape_cast %136 : vector<1x4x4xf32> to vector<4x4xf32>
    %cst_65 = arith.constant dense<0.000000e+00> : vector<4x256xf32>
    %138 = tpu.matmul %137, %132, %cst_65 {dimension_numbers = #tpu.dot_dimension_numbers<[1], [0], [0], [1], [0, 0, 1, 1], [], []>} : vector<4x4xf32>, vector<4x256xf32>, vector<4x256xf32> -> vector<4x256xf32>
    %c4_66 = arith.constant 4 : index
    %c0_67 = arith.constant 0 : index
    %c0_68 = arith.constant 0 : index
    %139 = vector.load %arg3[%c4_66, %c0_67, %c0_68] : memref<9x4x4xf32, #tpu.memory_space<vmem>>, vector<1x4x4xf32>
    %140 = vector.shape_cast %139 : vector<1x4x4xf32> to vector<4x4xf32>
    %cst_69 = arith.constant dense<0.000000e+00> : vector<4x256xf32>
    %141 = tpu.matmul %140, %100, %cst_69 {dimension_numbers = #tpu.dot_dimension_numbers<[1], [0], [0], [1], [0, 0, 1, 1], [], []>} : vector<4x4xf32>, vector<4x256xf32>, vector<4x256xf32> -> vector<4x256xf32>
    %c5_70 = arith.constant 5 : index
    %c0_71 = arith.constant 0 : index
    %c0_72 = arith.constant 0 : index
    %142 = vector.load %arg3[%c5_70, %c0_71, %c0_72] : memref<9x4x4xf32, #tpu.memory_space<vmem>>, vector<1x4x4xf32>
    %143 = vector.shape_cast %142 : vector<1x4x4xf32> to vector<4x4xf32>
    %cst_73 = arith.constant dense<0.000000e+00> : vector<4x256xf32>
    %144 = tpu.matmul %143, %135, %cst_73 {dimension_numbers = #tpu.dot_dimension_numbers<[1], [0], [0], [1], [0, 0, 1, 1], [], []>} : vector<4x4xf32>, vector<4x256xf32>, vector<4x256xf32> -> vector<4x256xf32>
    %145 = arith.addf %127, %138 : vector<4x256xf32>
    %146 = arith.addf %145, %141 : vector<4x256xf32>
    %147 = arith.addf %146, %144 : vector<4x256xf32>
    %c1_i32_74 = arith.constant 1 : i32
    %148 = tpu.dynamic_rotate %108 by %c1_i32_74 dim 1 : vector<4x256xf32>, i32 -> vector<4x256xf32>
    %c255_i32_75 = arith.constant 255 : i32
    %149 = tpu.dynamic_rotate %108 by %c255_i32_75 dim 1 : vector<4x256xf32>, i32 -> vector<4x256xf32>
    %150 = vector.shape_cast %3 : vector<1x256xi1> to vector<1x256xi1>
    %151 = vector.broadcast %150 : vector<1x256xi1> to vector<4x256xi1>
    %152 = arith.select %151, %149, %148 : vector<4x256xi1>, vector<4x256xf32>
    %153 = vector.shape_cast %5 : vector<1x256xi1> to vector<1x256xi1>
    %154 = vector.broadcast %153 : vector<1x256xi1> to vector<4x256xi1>
    %155 = arith.select %154, %148, %149 : vector<4x256xi1>, vector<4x256xf32>
    %c6_76 = arith.constant 6 : index
    %c0_77 = arith.constant 0 : index
    %c0_78 = arith.constant 0 : index
    %156 = vector.load %arg3[%c6_76, %c0_77, %c0_78] : memref<9x4x4xf32, #tpu.memory_space<vmem>>, vector<1x4x4xf32>
    %157 = vector.shape_cast %156 : vector<1x4x4xf32> to vector<4x4xf32>
    %cst_79 = arith.constant dense<0.000000e+00> : vector<4x256xf32>
    %158 = tpu.matmul %157, %152, %cst_79 {dimension_numbers = #tpu.dot_dimension_numbers<[1], [0], [0], [1], [0, 0, 1, 1], [], []>} : vector<4x4xf32>, vector<4x256xf32>, vector<4x256xf32> -> vector<4x256xf32>
    %c7_80 = arith.constant 7 : index
    %c0_81 = arith.constant 0 : index
    %c0_82 = arith.constant 0 : index
    %159 = vector.load %arg3[%c7_80, %c0_81, %c0_82] : memref<9x4x4xf32, #tpu.memory_space<vmem>>, vector<1x4x4xf32>
    %160 = vector.shape_cast %159 : vector<1x4x4xf32> to vector<4x4xf32>
    %cst_83 = arith.constant dense<0.000000e+00> : vector<4x256xf32>
    %161 = tpu.matmul %160, %108, %cst_83 {dimension_numbers = #tpu.dot_dimension_numbers<[1], [0], [0], [1], [0, 0, 1, 1], [], []>} : vector<4x4xf32>, vector<4x256xf32>, vector<4x256xf32> -> vector<4x256xf32>
    %c8_84 = arith.constant 8 : index
    %c0_85 = arith.constant 0 : index
    %c0_86 = arith.constant 0 : index
    %162 = vector.load %arg3[%c8_84, %c0_85, %c0_86] : memref<9x4x4xf32, #tpu.memory_space<vmem>>, vector<1x4x4xf32>
    %163 = vector.shape_cast %162 : vector<1x4x4xf32> to vector<4x4xf32>
    %cst_87 = arith.constant dense<0.000000e+00> : vector<4x256xf32>
    %164 = tpu.matmul %163, %155, %cst_87 {dimension_numbers = #tpu.dot_dimension_numbers<[1], [0], [0], [1], [0, 0, 1, 1], [], []>} : vector<4x4xf32>, vector<4x256xf32>, vector<4x256xf32> -> vector<4x256xf32>
    %165 = arith.addf %147, %158 : vector<4x256xf32>
    %166 = arith.addf %165, %161 : vector<4x256xf32>
    %167 = arith.addf %166, %164 : vector<4x256xf32>
    %cst_88 = arith.constant dense<0.000000e+00> : vector<4xf32>
    %168 = vector.multi_reduction <add>, %167, %cst_88 [1] : vector<4x256xf32> to vector<4xf32>
    %169 = vector.shape_cast %168 : vector<4xf32> to vector<4x1xf32>
    %cst_89 = arith.constant 2.560000e+02 : f32
    %170 = vector.broadcast %cst_89 : f32 to vector<4x1xf32>
    %171 = arith.divf %169, %170 : vector<4x1xf32>
    %172 = arith.mulf %167, %167 : vector<4x256xf32>
    %cst_90 = arith.constant dense<0.000000e+00> : vector<4xf32>
    %173 = vector.multi_reduction <add>, %172, %cst_90 [1] : vector<4x256xf32> to vector<4xf32>
    %174 = vector.shape_cast %173 : vector<4xf32> to vector<4x1xf32>
    %cst_91 = arith.constant 2.560000e+02 : f32
    %175 = vector.broadcast %cst_91 : f32 to vector<4x1xf32>
    %176 = arith.divf %174, %175 : vector<4x1xf32>
    %177 = arith.mulf %171, %171 : vector<4x1xf32>
    %178 = arith.subf %176, %177 : vector<4x1xf32>
    %cst_92 = arith.constant 0.000000e+00 : f32
    %179 = vector.broadcast %cst_92 : f32 to vector<4x1xf32>
    %180 = arith.maximumf %178, %179 : vector<4x1xf32>
    %181 = vector.broadcast %171 : vector<4x1xf32> to vector<4x256xf32>
    %182 = arith.subf %167, %181 : vector<4x256xf32>
    %cst_93 = arith.constant 9.99999974E-6 : f32
    %183 = vector.broadcast %cst_93 : f32 to vector<4x1xf32>
    %184 = arith.addf %180, %183 : vector<4x1xf32>
    %185 = math.rsqrt %184 : vector<4x1xf32>
    %186 = vector.broadcast %185 : vector<4x1xf32> to vector<4x256xf32>
    %187 = arith.mulf %182, %186 : vector<4x256xf32>
    %c0_94 = arith.constant 0 : index
    %c0_95 = arith.constant 0 : index
    %c0_96 = arith.constant 0 : index
    %188 = vector.load %arg1[%c0_94, %c0_95, %c0_96] : memref<2x4x256xf32, #tpu.memory_space<vmem>>, vector<1x4x256xf32>
    %189 = vector.shape_cast %188 : vector<1x4x256xf32> to vector<4x256xf32>
    %190 = arith.addf %189, %187 : vector<4x256xf32>
    %c0_97 = arith.constant 0 : index
    %c0_98 = arith.constant 0 : index
    %c0_99 = arith.constant 0 : index
    %191 = vector.load %arg5[%c0_97, %c0_98, %c0_99] : memref<2x4x256xf32, #tpu.memory_space<vmem>>, vector<1x4x256xf32>
    %192 = vector.shape_cast %191 : vector<1x4x256xf32> to vector<4x256xf32>
    %193 = vector.shape_cast %190 : vector<4x256xf32> to vector<1x4x256xf32>
    tpu.vector_store %arg5[%c0_97, %c0_98, %c0_99], %193 {strides = array<i32>} : memref<2x4x256xf32, #tpu.memory_space<vmem>>, vector<1x4x256xf32>,
    %c1_100 = arith.constant 1 : index
    %c0_101 = arith.constant 0 : index
    %c0_102 = arith.constant 0 : index
    %194 = vector.load %arg1[%c1_100, %c0_101, %c0_102] : memref<2x4x256xf32, #tpu.memory_space<vmem>>, vector<1x4x256xf32>
    %195 = vector.shape_cast %194 : vector<1x4x256xf32> to vector<4x256xf32>
    %c16_i32_103 = arith.constant 16 : i32
    %196 = tpu.dynamic_rotate %195 by %c16_i32_103 dim 1 : vector<4x256xf32>, i32 -> vector<4x256xf32>
    %c240_i32_104 = arith.constant 240 : i32
    %197 = tpu.dynamic_rotate %195 by %c240_i32_104 dim 1 : vector<4x256xf32>, i32 -> vector<4x256xf32>
    %198 = vector.shape_cast %7 : vector<1x256xi1> to vector<1x256xi1>
    %199 = vector.broadcast %198 : vector<1x256xi1> to vector<4x256xi1>
    %200 = arith.select %199, %197, %196 : vector<4x256xi1>, vector<4x256xf32>
    %201 = vector.shape_cast %9 : vector<1x256xi1> to vector<1x256xi1>
    %202 = vector.broadcast %201 : vector<1x256xi1> to vector<4x256xi1>
    %203 = arith.select %202, %196, %197 : vector<4x256xi1>, vector<4x256xf32>
    %c1_i32_105 = arith.constant 1 : i32
    %204 = tpu.dynamic_rotate %200 by %c1_i32_105 dim 1 : vector<4x256xf32>, i32 -> vector<4x256xf32>
    %c255_i32_106 = arith.constant 255 : i32
    %205 = tpu.dynamic_rotate %200 by %c255_i32_106 dim 1 : vector<4x256xf32>, i32 -> vector<4x256xf32>
    %206 = vector.shape_cast %3 : vector<1x256xi1> to vector<1x256xi1>
    %207 = vector.broadcast %206 : vector<1x256xi1> to vector<4x256xi1>
    %208 = arith.select %207, %205, %204 : vector<4x256xi1>, vector<4x256xf32>
    %209 = vector.shape_cast %5 : vector<1x256xi1> to vector<1x256xi1>
    %210 = vector.broadcast %209 : vector<1x256xi1> to vector<4x256xi1>
    %211 = arith.select %210, %204, %205 : vector<4x256xi1>, vector<4x256xf32>
    %c0_107 = arith.constant 0 : index
    %c0_108 = arith.constant 0 : index
    %c0_109 = arith.constant 0 : index
    %212 = vector.load %arg2[%c0_107, %c0_108, %c0_109] : memref<9x4x4xf32, #tpu.memory_space<vmem>>, vector<1x4x4xf32>
    %213 = vector.shape_cast %212 : vector<1x4x4xf32> to vector<4x4xf32>
    %cst_110 = arith.constant dense<0.000000e+00> : vector<4x256xf32>
    %214 = tpu.matmul %213, %208, %cst_110 {dimension_numbers = #tpu.dot_dimension_numbers<[1], [0], [0], [1], [0, 0, 1, 1], [], []>} : vector<4x4xf32>, vector<4x256xf32>, vector<4x256xf32> -> vector<4x256xf32>
    %c1_111 = arith.constant 1 : index
    %c0_112 = arith.constant 0 : index
    %c0_113 = arith.constant 0 : index
    %215 = vector.load %arg2[%c1_111, %c0_112, %c0_113] : memref<9x4x4xf32, #tpu.memory_space<vmem>>, vector<1x4x4xf32>
    %216 = vector.shape_cast %215 : vector<1x4x4xf32> to vector<4x4xf32>
    %cst_114 = arith.constant dense<0.000000e+00> : vector<4x256xf32>
    %217 = tpu.matmul %216, %200, %cst_114 {dimension_numbers = #tpu.dot_dimension_numbers<[1], [0], [0], [1], [0, 0, 1, 1], [], []>} : vector<4x4xf32>, vector<4x256xf32>, vector<4x256xf32> -> vector<4x256xf32>
    %c2_115 = arith.constant 2 : index
    %c0_116 = arith.constant 0 : index
    %c0_117 = arith.constant 0 : index
    %218 = vector.load %arg2[%c2_115, %c0_116, %c0_117] : memref<9x4x4xf32, #tpu.memory_space<vmem>>, vector<1x4x4xf32>
    %219 = vector.shape_cast %218 : vector<1x4x4xf32> to vector<4x4xf32>
    %cst_118 = arith.constant dense<0.000000e+00> : vector<4x256xf32>
    %220 = tpu.matmul %219, %211, %cst_118 {dimension_numbers = #tpu.dot_dimension_numbers<[1], [0], [0], [1], [0, 0, 1, 1], [], []>} : vector<4x4xf32>, vector<4x256xf32>, vector<4x256xf32> -> vector<4x256xf32>
    %221 = arith.addf %214, %217 : vector<4x256xf32>
    %222 = arith.addf %221, %220 : vector<4x256xf32>
    %c1_i32_119 = arith.constant 1 : i32
    %223 = tpu.dynamic_rotate %195 by %c1_i32_119 dim 1 : vector<4x256xf32>, i32 -> vector<4x256xf32>
    %c255_i32_120 = arith.constant 255 : i32
    %224 = tpu.dynamic_rotate %195 by %c255_i32_120 dim 1 : vector<4x256xf32>, i32 -> vector<4x256xf32>
    %225 = vector.shape_cast %3 : vector<1x256xi1> to vector<1x256xi1>
    %226 = vector.broadcast %225 : vector<1x256xi1> to vector<4x256xi1>
    %227 = arith.select %226, %224, %223 : vector<4x256xi1>, vector<4x256xf32>
    %228 = vector.shape_cast %5 : vector<1x256xi1> to vector<1x256xi1>
    %229 = vector.broadcast %228 : vector<1x256xi1> to vector<4x256xi1>
    %230 = arith.select %229, %223, %224 : vector<4x256xi1>, vector<4x256xf32>
    %c3_121 = arith.constant 3 : index
    %c0_122 = arith.constant 0 : index
    %c0_123 = arith.constant 0 : index
    %231 = vector.load %arg2[%c3_121, %c0_122, %c0_123] : memref<9x4x4xf32, #tpu.memory_space<vmem>>, vector<1x4x4xf32>
    %232 = vector.shape_cast %231 : vector<1x4x4xf32> to vector<4x4xf32>
    %cst_124 = arith.constant dense<0.000000e+00> : vector<4x256xf32>
    %233 = tpu.matmul %232, %227, %cst_124 {dimension_numbers = #tpu.dot_dimension_numbers<[1], [0], [0], [1], [0, 0, 1, 1], [], []>} : vector<4x4xf32>, vector<4x256xf32>, vector<4x256xf32> -> vector<4x256xf32>
    %c4_125 = arith.constant 4 : index
    %c0_126 = arith.constant 0 : index
    %c0_127 = arith.constant 0 : index
    %234 = vector.load %arg2[%c4_125, %c0_126, %c0_127] : memref<9x4x4xf32, #tpu.memory_space<vmem>>, vector<1x4x4xf32>
    %235 = vector.shape_cast %234 : vector<1x4x4xf32> to vector<4x4xf32>
    %cst_128 = arith.constant dense<0.000000e+00> : vector<4x256xf32>
    %236 = tpu.matmul %235, %195, %cst_128 {dimension_numbers = #tpu.dot_dimension_numbers<[1], [0], [0], [1], [0, 0, 1, 1], [], []>} : vector<4x4xf32>, vector<4x256xf32>, vector<4x256xf32> -> vector<4x256xf32>
    %c5_129 = arith.constant 5 : index
    %c0_130 = arith.constant 0 : index
    %c0_131 = arith.constant 0 : index
    %237 = vector.load %arg2[%c5_129, %c0_130, %c0_131] : memref<9x4x4xf32, #tpu.memory_space<vmem>>, vector<1x4x4xf32>
    %238 = vector.shape_cast %237 : vector<1x4x4xf32> to vector<4x4xf32>
    %cst_132 = arith.constant dense<0.000000e+00> : vector<4x256xf32>
    %239 = tpu.matmul %238, %230, %cst_132 {dimension_numbers = #tpu.dot_dimension_numbers<[1], [0], [0], [1], [0, 0, 1, 1], [], []>} : vector<4x4xf32>, vector<4x256xf32>, vector<4x256xf32> -> vector<4x256xf32>
    %240 = arith.addf %222, %233 : vector<4x256xf32>
    %241 = arith.addf %240, %236 : vector<4x256xf32>
    %242 = arith.addf %241, %239 : vector<4x256xf32>
    %c1_i32_133 = arith.constant 1 : i32
    %243 = tpu.dynamic_rotate %203 by %c1_i32_133 dim 1 : vector<4x256xf32>, i32 -> vector<4x256xf32>
    %c255_i32_134 = arith.constant 255 : i32
    %244 = tpu.dynamic_rotate %203 by %c255_i32_134 dim 1 : vector<4x256xf32>, i32 -> vector<4x256xf32>
    %245 = vector.shape_cast %3 : vector<1x256xi1> to vector<1x256xi1>
    %246 = vector.broadcast %245 : vector<1x256xi1> to vector<4x256xi1>
    %247 = arith.select %246, %244, %243 : vector<4x256xi1>, vector<4x256xf32>
    %248 = vector.shape_cast %5 : vector<1x256xi1> to vector<1x256xi1>
    %249 = vector.broadcast %248 : vector<1x256xi1> to vector<4x256xi1>
    %250 = arith.select %249, %243, %244 : vector<4x256xi1>, vector<4x256xf32>
    %c6_135 = arith.constant 6 : index
    %c0_136 = arith.constant 0 : index
    %c0_137 = arith.constant 0 : index
    %251 = vector.load %arg2[%c6_135, %c0_136, %c0_137] : memref<9x4x4xf32, #tpu.memory_space<vmem>>, vector<1x4x4xf32>
    %252 = vector.shape_cast %251 : vector<1x4x4xf32> to vector<4x4xf32>
    %cst_138 = arith.constant dense<0.000000e+00> : vector<4x256xf32>
    %253 = tpu.matmul %252, %247, %cst_138 {dimension_numbers = #tpu.dot_dimension_numbers<[1], [0], [0], [1], [0, 0, 1, 1], [], []>} : vector<4x4xf32>, vector<4x256xf32>, vector<4x256xf32> -> vector<4x256xf32>
    %c7_139 = arith.constant 7 : index
    %c0_140 = arith.constant 0 : index
    %c0_141 = arith.constant 0 : index
    %254 = vector.load %arg2[%c7_139, %c0_140, %c0_141] : memref<9x4x4xf32, #tpu.memory_space<vmem>>, vector<1x4x4xf32>
    %255 = vector.shape_cast %254 : vector<1x4x4xf32> to vector<4x4xf32>
    %cst_142 = arith.constant dense<0.000000e+00> : vector<4x256xf32>
    %256 = tpu.matmul %255, %203, %cst_142 {dimension_numbers = #tpu.dot_dimension_numbers<[1], [0], [0], [1], [0, 0, 1, 1], [], []>} : vector<4x4xf32>, vector<4x256xf32>, vector<4x256xf32> -> vector<4x256xf32>
    %c8_143 = arith.constant 8 : index
    %c0_144 = arith.constant 0 : index
    %c0_145 = arith.constant 0 : index
    %257 = vector.load %arg2[%c8_143, %c0_144, %c0_145] : memref<9x4x4xf32, #tpu.memory_space<vmem>>, vector<1x4x4xf32>
    %258 = vector.shape_cast %257 : vector<1x4x4xf32> to vector<4x4xf32>
    %cst_146 = arith.constant dense<0.000000e+00> : vector<4x256xf32>
    %259 = tpu.matmul %258, %250, %cst_146 {dimension_numbers = #tpu.dot_dimension_numbers<[1], [0], [0], [1], [0, 0, 1, 1], [], []>} : vector<4x4xf32>, vector<4x256xf32>, vector<4x256xf32> -> vector<4x256xf32>
    %260 = arith.addf %242, %253 : vector<4x256xf32>
    %261 = arith.addf %260, %256 : vector<4x256xf32>
    %262 = arith.addf %261, %259 : vector<4x256xf32>
    %cst_147 = arith.constant dense<0.000000e+00> : vector<4xf32>
    %263 = vector.multi_reduction <add>, %262, %cst_147 [1] : vector<4x256xf32> to vector<4xf32>
    %264 = vector.shape_cast %263 : vector<4xf32> to vector<4x1xf32>
    %cst_148 = arith.constant 2.560000e+02 : f32
    %265 = vector.broadcast %cst_148 : f32 to vector<4x1xf32>
    %266 = arith.divf %264, %265 : vector<4x1xf32>
    %267 = arith.mulf %262, %262 : vector<4x256xf32>
    %cst_149 = arith.constant dense<0.000000e+00> : vector<4xf32>
    %268 = vector.multi_reduction <add>, %267, %cst_149 [1] : vector<4x256xf32> to vector<4xf32>
    %269 = vector.shape_cast %268 : vector<4xf32> to vector<4x1xf32>
    %cst_150 = arith.constant 2.560000e+02 : f32
    %270 = vector.broadcast %cst_150 : f32 to vector<4x1xf32>
    %271 = arith.divf %269, %270 : vector<4x1xf32>
    %272 = arith.mulf %266, %266 : vector<4x1xf32>
    %273 = arith.subf %271, %272 : vector<4x1xf32>
    %cst_151 = arith.constant 0.000000e+00 : f32
    %274 = vector.broadcast %cst_151 : f32 to vector<4x1xf32>
    %275 = arith.maximumf %273, %274 : vector<4x1xf32>
    %276 = vector.broadcast %266 : vector<4x1xf32> to vector<4x256xf32>
    %277 = arith.subf %262, %276 : vector<4x256xf32>
    %cst_152 = arith.constant 9.99999974E-6 : f32
    %278 = vector.broadcast %cst_152 : f32 to vector<4x1xf32>
    %279 = arith.addf %275, %278 : vector<4x1xf32>
    %280 = math.rsqrt %279 : vector<4x1xf32>
    %281 = vector.broadcast %280 : vector<4x1xf32> to vector<4x256xf32>
    %282 = arith.mulf %277, %281 : vector<4x256xf32>
    %cst_153 = arith.constant 0.000000e+00 : f32
    %283 = vector.broadcast %cst_153 : f32 to vector<4x256xf32>
    %284 = arith.maximumf %282, %283 : vector<4x256xf32>
    %c16_i32_154 = arith.constant 16 : i32
    %285 = tpu.dynamic_rotate %284 by %c16_i32_154 dim 1 : vector<4x256xf32>, i32 -> vector<4x256xf32>
    %c240_i32_155 = arith.constant 240 : i32
    %286 = tpu.dynamic_rotate %284 by %c240_i32_155 dim 1 : vector<4x256xf32>, i32 -> vector<4x256xf32>
    %287 = vector.shape_cast %7 : vector<1x256xi1> to vector<1x256xi1>
    %288 = vector.broadcast %287 : vector<1x256xi1> to vector<4x256xi1>
    %289 = arith.select %288, %286, %285 : vector<4x256xi1>, vector<4x256xf32>
    %290 = vector.shape_cast %9 : vector<1x256xi1> to vector<1x256xi1>
    %291 = vector.broadcast %290 : vector<1x256xi1> to vector<4x256xi1>
    %292 = arith.select %291, %285, %286 : vector<4x256xi1>, vector<4x256xf32>
    %c1_i32_156 = arith.constant 1 : i32
    %293 = tpu.dynamic_rotate %289 by %c1_i32_156 dim 1 : vector<4x256xf32>, i32 -> vector<4x256xf32>
    %c255_i32_157 = arith.constant 255 : i32
    %294 = tpu.dynamic_rotate %289 by %c255_i32_157 dim 1 : vector<4x256xf32>, i32 -> vector<4x256xf32>
    %295 = vector.shape_cast %3 : vector<1x256xi1> to vector<1x256xi1>
    %296 = vector.broadcast %295 : vector<1x256xi1> to vector<4x256xi1>
    %297 = arith.select %296, %294, %293 : vector<4x256xi1>, vector<4x256xf32>
    %298 = vector.shape_cast %5 : vector<1x256xi1> to vector<1x256xi1>
    %299 = vector.broadcast %298 : vector<1x256xi1> to vector<4x256xi1>
    %300 = arith.select %299, %293, %294 : vector<4x256xi1>, vector<4x256xf32>
    %c0_158 = arith.constant 0 : index
    %c0_159 = arith.constant 0 : index
    %c0_160 = arith.constant 0 : index
    %301 = vector.load %arg3[%c0_158, %c0_159, %c0_160] : memref<9x4x4xf32, #tpu.memory_space<vmem>>, vector<1x4x4xf32>
    %302 = vector.shape_cast %301 : vector<1x4x4xf32> to vector<4x4xf32>
    %cst_161 = arith.constant dense<0.000000e+00> : vector<4x256xf32>
    %303 = tpu.matmul %302, %297, %cst_161 {dimension_numbers = #tpu.dot_dimension_numbers<[1], [0], [0], [1], [0, 0, 1, 1], [], []>} : vector<4x4xf32>, vector<4x256xf32>, vector<4x256xf32> -> vector<4x256xf32>
    %c1_162 = arith.constant 1 : index
    %c0_163 = arith.constant 0 : index
    %c0_164 = arith.constant 0 : index
    %304 = vector.load %arg3[%c1_162, %c0_163, %c0_164] : memref<9x4x4xf32, #tpu.memory_space<vmem>>, vector<1x4x4xf32>
    %305 = vector.shape_cast %304 : vector<1x4x4xf32> to vector<4x4xf32>
    %cst_165 = arith.constant dense<0.000000e+00> : vector<4x256xf32>
    %306 = tpu.matmul %305, %289, %cst_165 {dimension_numbers = #tpu.dot_dimension_numbers<[1], [0], [0], [1], [0, 0, 1, 1], [], []>} : vector<4x4xf32>, vector<4x256xf32>, vector<4x256xf32> -> vector<4x256xf32>
    %c2_166 = arith.constant 2 : index
    %c0_167 = arith.constant 0 : index
    %c0_168 = arith.constant 0 : index
    %307 = vector.load %arg3[%c2_166, %c0_167, %c0_168] : memref<9x4x4xf32, #tpu.memory_space<vmem>>, vector<1x4x4xf32>
    %308 = vector.shape_cast %307 : vector<1x4x4xf32> to vector<4x4xf32>
    %cst_169 = arith.constant dense<0.000000e+00> : vector<4x256xf32>
    %309 = tpu.matmul %308, %300, %cst_169 {dimension_numbers = #tpu.dot_dimension_numbers<[1], [0], [0], [1], [0, 0, 1, 1], [], []>} : vector<4x4xf32>, vector<4x256xf32>, vector<4x256xf32> -> vector<4x256xf32>
    %310 = arith.addf %303, %306 : vector<4x256xf32>
    %311 = arith.addf %310, %309 : vector<4x256xf32>
    %c1_i32_170 = arith.constant 1 : i32
    %312 = tpu.dynamic_rotate %284 by %c1_i32_170 dim 1 : vector<4x256xf32>, i32 -> vector<4x256xf32>
    %c255_i32_171 = arith.constant 255 : i32
    %313 = tpu.dynamic_rotate %284 by %c255_i32_171 dim 1 : vector<4x256xf32>, i32 -> vector<4x256xf32>
    %314 = vector.shape_cast %3 : vector<1x256xi1> to vector<1x256xi1>
    %315 = vector.broadcast %314 : vector<1x256xi1> to vector<4x256xi1>
    %316 = arith.select %315, %313, %312 : vector<4x256xi1>, vector<4x256xf32>
    %317 = vector.shape_cast %5 : vector<1x256xi1> to vector<1x256xi1>
    %318 = vector.broadcast %317 : vector<1x256xi1> to vector<4x256xi1>
    %319 = arith.select %318, %312, %313 : vector<4x256xi1>, vector<4x256xf32>
    %c3_172 = arith.constant 3 : index
    %c0_173 = arith.constant 0 : index
    %c0_174 = arith.constant 0 : index
    %320 = vector.load %arg3[%c3_172, %c0_173, %c0_174] : memref<9x4x4xf32, #tpu.memory_space<vmem>>, vector<1x4x4xf32>
    %321 = vector.shape_cast %320 : vector<1x4x4xf32> to vector<4x4xf32>
    %cst_175 = arith.constant dense<0.000000e+00> : vector<4x256xf32>
    %322 = tpu.matmul %321, %316, %cst_175 {dimension_numbers = #tpu.dot_dimension_numbers<[1], [0], [0], [1], [0, 0, 1, 1], [], []>} : vector<4x4xf32>, vector<4x256xf32>, vector<4x256xf32> -> vector<4x256xf32>
    %c4_176 = arith.constant 4 : index
    %c0_177 = arith.constant 0 : index
    %c0_178 = arith.constant 0 : index
    %323 = vector.load %arg3[%c4_176, %c0_177, %c0_178] : memref<9x4x4xf32, #tpu.memory_space<vmem>>, vector<1x4x4xf32>
    %324 = vector.shape_cast %323 : vector<1x4x4xf32> to vector<4x4xf32>
    %cst_179 = arith.constant dense<0.000000e+00> : vector<4x256xf32>
    %325 = tpu.matmul %324, %284, %cst_179 {dimension_numbers = #tpu.dot_dimension_numbers<[1], [0], [0], [1], [0, 0, 1, 1], [], []>} : vector<4x4xf32>, vector<4x256xf32>, vector<4x256xf32> -> vector<4x256xf32>
    %c5_180 = arith.constant 5 : index
    %c0_181 = arith.constant 0 : index
    %c0_182 = arith.constant 0 : index
    %326 = vector.load %arg3[%c5_180, %c0_181, %c0_182] : memref<9x4x4xf32, #tpu.memory_space<vmem>>, vector<1x4x4xf32>
    %327 = vector.shape_cast %326 : vector<1x4x4xf32> to vector<4x4xf32>
    %cst_183 = arith.constant dense<0.000000e+00> : vector<4x256xf32>
    %328 = tpu.matmul %327, %319, %cst_183 {dimension_numbers = #tpu.dot_dimension_numbers<[1], [0], [0], [1], [0, 0, 1, 1], [], []>} : vector<4x4xf32>, vector<4x256xf32>, vector<4x256xf32> -> vector<4x256xf32>
    %329 = arith.addf %311, %322 : vector<4x256xf32>
    %330 = arith.addf %329, %325 : vector<4x256xf32>
    %331 = arith.addf %330, %328 : vector<4x256xf32>
    %c1_i32_184 = arith.constant 1 : i32
    %332 = tpu.dynamic_rotate %292 by %c1_i32_184 dim 1 : vector<4x256xf32>, i32 -> vector<4x256xf32>
    %c255_i32_185 = arith.constant 255 : i32
    %333 = tpu.dynamic_rotate %292 by %c255_i32_185 dim 1 : vector<4x256xf32>, i32 -> vector<4x256xf32>
    %334 = vector.shape_cast %3 : vector<1x256xi1> to vector<1x256xi1>
    %335 = vector.broadcast %334 : vector<1x256xi1> to vector<4x256xi1>
    %336 = arith.select %335, %333, %332 : vector<4x256xi1>, vector<4x256xf32>
    %337 = vector.shape_cast %5 : vector<1x256xi1> to vector<1x256xi1>
    %338 = vector.broadcast %337 : vector<1x256xi1> to vector<4x256xi1>
    %339 = arith.select %338, %332, %333 : vector<4x256xi1>, vector<4x256xf32>
    %c6_186 = arith.constant 6 : index
    %c0_187 = arith.constant 0 : index
    %c0_188 = arith.constant 0 : index
    %340 = vector.load %arg3[%c6_186, %c0_187, %c0_188] : memref<9x4x4xf32, #tpu.memory_space<vmem>>, vector<1x4x4xf32>
    %341 = vector.shape_cast %340 : vector<1x4x4xf32> to vector<4x4xf32>
    %cst_189 = arith.constant dense<0.000000e+00> : vector<4x256xf32>
    %342 = tpu.matmul %341, %336, %cst_189 {dimension_numbers = #tpu.dot_dimension_numbers<[1], [0], [0], [1], [0, 0, 1, 1], [], []>} : vector<4x4xf32>, vector<4x256xf32>, vector<4x256xf32> -> vector<4x256xf32>
    %c7_190 = arith.constant 7 : index
    %c0_191 = arith.constant 0 : index
    %c0_192 = arith.constant 0 : index
    %343 = vector.load %arg3[%c7_190, %c0_191, %c0_192] : memref<9x4x4xf32, #tpu.memory_space<vmem>>, vector<1x4x4xf32>
    %344 = vector.shape_cast %343 : vector<1x4x4xf32> to vector<4x4xf32>
    %cst_193 = arith.constant dense<0.000000e+00> : vector<4x256xf32>
    %345 = tpu.matmul %344, %292, %cst_193 {dimension_numbers = #tpu.dot_dimension_numbers<[1], [0], [0], [1], [0, 0, 1, 1], [], []>} : vector<4x4xf32>, vector<4x256xf32>, vector<4x256xf32> -> vector<4x256xf32>
    %c8_194 = arith.constant 8 : index
    %c0_195 = arith.constant 0 : index
    %c0_196 = arith.constant 0 : index
    %346 = vector.load %arg3[%c8_194, %c0_195, %c0_196] : memref<9x4x4xf32, #tpu.memory_space<vmem>>, vector<1x4x4xf32>
    %347 = vector.shape_cast %346 : vector<1x4x4xf32> to vector<4x4xf32>
    %cst_197 = arith.constant dense<0.000000e+00> : vector<4x256xf32>
    %348 = tpu.matmul %347, %339, %cst_197 {dimension_numbers = #tpu.dot_dimension_numbers<[1], [0], [0], [1], [0, 0, 1, 1], [], []>} : vector<4x4xf32>, vector<4x256xf32>, vector<4x256xf32> -> vector<4x256xf32>
    %349 = arith.addf %331, %342 : vector<4x256xf32>
    %350 = arith.addf %349, %345 : vector<4x256xf32>
    %351 = arith.addf %350, %348 : vector<4x256xf32>
    %cst_198 = arith.constant dense<0.000000e+00> : vector<4xf32>
    %352 = vector.multi_reduction <add>, %351, %cst_198 [1] : vector<4x256xf32> to vector<4xf32>
    %353 = vector.shape_cast %352 : vector<4xf32> to vector<4x1xf32>
    %cst_199 = arith.constant 2.560000e+02 : f32
    %354 = vector.broadcast %cst_199 : f32 to vector<4x1xf32>
    %355 = arith.divf %353, %354 : vector<4x1xf32>
    %356 = arith.mulf %351, %351 : vector<4x256xf32>
    %cst_200 = arith.constant dense<0.000000e+00> : vector<4xf32>
    %357 = vector.multi_reduction <add>, %356, %cst_200 [1] : vector<4x256xf32> to vector<4xf32>
    %358 = vector.shape_cast %357 : vector<4xf32> to vector<4x1xf32>
    %cst_201 = arith.constant 2.560000e+02 : f32
    %359 = vector.broadcast %cst_201 : f32 to vector<4x1xf32>
    %360 = arith.divf %358, %359 : vector<4x1xf32>
    %361 = arith.mulf %355, %355 : vector<4x1xf32>
    %362 = arith.subf %360, %361 : vector<4x1xf32>
    %cst_202 = arith.constant 0.000000e+00 : f32
    %363 = vector.broadcast %cst_202 : f32 to vector<4x1xf32>
    %364 = arith.maximumf %362, %363 : vector<4x1xf32>
    %365 = vector.broadcast %355 : vector<4x1xf32> to vector<4x256xf32>
    %366 = arith.subf %351, %365 : vector<4x256xf32>
    %cst_203 = arith.constant 9.99999974E-6 : f32
    %367 = vector.broadcast %cst_203 : f32 to vector<4x1xf32>
    %368 = arith.addf %364, %367 : vector<4x1xf32>
    %369 = math.rsqrt %368 : vector<4x1xf32>
    %370 = vector.broadcast %369 : vector<4x1xf32> to vector<4x256xf32>
    %371 = arith.mulf %366, %370 : vector<4x256xf32>
    %c1_204 = arith.constant 1 : index
    %c0_205 = arith.constant 0 : index
    %c0_206 = arith.constant 0 : index
    %372 = vector.load %arg1[%c1_204, %c0_205, %c0_206] : memref<2x4x256xf32, #tpu.memory_space<vmem>>, vector<1x4x256xf32>
    %373 = vector.shape_cast %372 : vector<1x4x256xf32> to vector<4x256xf32>
    %374 = arith.addf %373, %371 : vector<4x256xf32>
    %c1_207 = arith.constant 1 : index
    %c0_208 = arith.constant 0 : index
    %c0_209 = arith.constant 0 : index
    %375 = vector.load %arg5[%c1_207, %c0_208, %c0_209] : memref<2x4x256xf32, #tpu.memory_space<vmem>>, vector<1x4x256xf32>
    %376 = vector.shape_cast %375 : vector<1x4x256xf32> to vector<4x256xf32>
    %377 = vector.shape_cast %374 : vector<4x256xf32> to vector<1x4x256xf32>
    tpu.vector_store %arg5[%c1_207, %c0_208, %c0_209], %377 {strides = array<i32>} : memref<2x4x256xf32, #tpu.memory_space<vmem>>, vector<1x4x256xf32>,
    return
  }
  func.func @transform_0(%arg0: i32) -> (i32, i32, i32) {
    %c0_i32 = arith.constant 0 : i32
    %c0_i32_0 = arith.constant 0 : i32
    %c0_i32_1 = arith.constant 0 : i32
    return %arg0, %c0_i32, %c0_i32_0 : i32, i32, i32
  }
  func.func @transform_1(%arg0: i32) -> (i32, i32, i32) {
    %c0_i32 = arith.constant 0 : i32
    %c0_i32_0 = arith.constant 0 : i32
    %c0_i32_1 = arith.constant 0 : i32
    %c0_i32_2 = arith.constant 0 : i32
    return %c0_i32, %c0_i32_0, %c0_i32_1 : i32, i32, i32
  }
  func.func @transform_2(%arg0: i32) -> (i32, i32, i32) {
    %c0_i32 = arith.constant 0 : i32
    %c0_i32_0 = arith.constant 0 : i32
    %c0_i32_1 = arith.constant 0 : i32
    %c0_i32_2 = arith.constant 0 : i32
    return %c0_i32, %c0_i32_0, %c0_i32_1 : i32, i32, i32
  }
  func.func @transform_3(%arg0: i32) -> (i32, i32) {
    %c0_i32 = arith.constant 0 : i32
    %c0_i32_0 = arith.constant 0 : i32
    %c0_i32_1 = arith.constant 0 : i32
    return %c0_i32, %c0_i32_0 : i32, i32
  }
  func.func @transform_4(%arg0: i32) -> (i32, i32, i32) {
    %c0_i32 = arith.constant 0 : i32
    %c0_i32_0 = arith.constant 0 : i32
    %c0_i32_1 = arith.constant 0 : i32
    return %arg0, %c0_i32, %c0_i32_0 : i32, i32, i32
  }
}

module attributes {stable_mosaic.version = 11 : i64} {
  func.func @kernel(%arg0: i32, %arg1: memref<2x4x256xf32, #tpu.memory_space<vmem>>, %arg2: memref<9x4x4xf32, #tpu.memory_space<vmem>>, %arg3: memref<9x4x4xf32, #tpu.memory_space<vmem>>, %arg4: memref<1x256xi32, #tpu.memory_space<vmem>>, %arg5: memref<2x4x256xf32, #tpu.memory_space<vmem>>) attributes {dimension_semantics = [#tpu.dimension_semantics<parallel>], iteration_bounds = array<i64: 1>, scalar_prefetch = 0 : i64, scratch_operands = 0 : i64, tpu.core_type = #tpu.core_type<tc>, window_params = [{transform_indices = @transform_0, window_bounds = array<i64: 2, 4, 256>}, {pipeline_mode = #tpu.pipeline_mode<synchronous>, transform_indices = @transform_1, window_bounds = array<i64: 9, 4, 4>}, {pipeline_mode = #tpu.pipeline_mode<synchronous>, transform_indices = @transform_2, window_bounds = array<i64: 9, 4, 4>}, {pipeline_mode = #tpu.pipeline_mode<synchronous>, transform_indices = @transform_3, window_bounds = array<i64: 1, 256>}, {transform_indices = @transform_4, window_bounds = array<i64: 2, 4, 256>}]} {
    %0 = tpu.iota {dimensions = array<i32: 1>} : vector<1x256xi32>
    %c0 = arith.constant 0 : index
    %c0_0 = arith.constant 0 : index
    %1 = vector.load %arg4[%c0, %c0_0] : memref<1x256xi32, #tpu.memory_space<vmem>>, vector<1x256xi32>
    %c0_i32 = arith.constant 0 : i32
    %2 = vector.broadcast %c0_i32 : i32 to vector<1x256xi32>
    %3 = arith.cmpi eq, %1, %2 : vector<1x256xi32>
    %c15_i32 = arith.constant 15 : i32
    %4 = vector.broadcast %c15_i32 : i32 to vector<1x256xi32>
    %5 = arith.cmpi eq, %1, %4 : vector<1x256xi32>
    %c16_i32 = arith.constant 16 : i32
    %6 = vector.broadcast %c16_i32 : i32 to vector<1x256xi32>
    %7 = arith.cmpi slt, %0, %6 : vector<1x256xi32>
    %c240_i32 = arith.constant 240 : i32
    %8 = vector.broadcast %c240_i32 : i32 to vector<1x256xi32>
    %9 = arith.cmpi sge, %0, %8 : vector<1x256xi32>
    %c0_1 = arith.constant 0 : index
    %c0_2 = arith.constant 0 : index
    %c0_3 = arith.constant 0 : index
    %10 = vector.load %arg1[%c0_1, %c0_2, %c0_3] : memref<2x4x256xf32, #tpu.memory_space<vmem>>, vector<1x4x256xf32>
    %11 = vector.shape_cast %10 : vector<1x4x256xf32> to vector<4x256xf32>
    %c16_i32_4 = arith.constant 16 : i32
    %12 = tpu.dynamic_rotate %11 by %c16_i32_4 dim 1 : vector<4x256xf32>, i32 -> vector<4x256xf32>
    %c240_i32_5 = arith.constant 240 : i32
    %13 = tpu.dynamic_rotate %11 by %c240_i32_5 dim 1 : vector<4x256xf32>, i32 -> vector<4x256xf32>
    %14 = vector.shape_cast %7 : vector<1x256xi1> to vector<1x256xi1>
    %15 = vector.broadcast %14 : vector<1x256xi1> to vector<4x256xi1>
    %16 = arith.select %15, %13, %12 : vector<4x256xi1>, vector<4x256xf32>
    %17 = vector.shape_cast %9 : vector<1x256xi1> to vector<1x256xi1>
    %18 = vector.broadcast %17 : vector<1x256xi1> to vector<4x256xi1>
    %19 = arith.select %18, %12, %13 : vector<4x256xi1>, vector<4x256xf32>
    %c1_i32 = arith.constant 1 : i32
    %20 = tpu.dynamic_rotate %16 by %c1_i32 dim 1 : vector<4x256xf32>, i32 -> vector<4x256xf32>
    %c255_i32 = arith.constant 255 : i32
    %21 = tpu.dynamic_rotate %16 by %c255_i32 dim 1 : vector<4x256xf32>, i32 -> vector<4x256xf32>
    %22 = vector.shape_cast %3 : vector<1x256xi1> to vector<1x256xi1>
    %23 = vector.broadcast %22 : vector<1x256xi1> to vector<4x256xi1>
    %24 = arith.select %23, %21, %20 : vector<4x256xi1>, vector<4x256xf32>
    %25 = vector.shape_cast %5 : vector<1x256xi1> to vector<1x256xi1>
    %26 = vector.broadcast %25 : vector<1x256xi1> to vector<4x256xi1>
    %27 = arith.select %26, %20, %21 : vector<4x256xi1>, vector<4x256xf32>
    %c0_6 = arith.constant 0 : index
    %c0_7 = arith.constant 0 : index
    %c0_8 = arith.constant 0 : index
    %28 = vector.load %arg2[%c0_6, %c0_7, %c0_8] : memref<9x4x4xf32, #tpu.memory_space<vmem>>, vector<1x4x4xf32>
    %29 = vector.shape_cast %28 : vector<1x4x4xf32> to vector<4x4xf32>
    %cst = arith.constant dense<0.000000e+00> : vector<4x256xf32>
    %30 = tpu.matmul %29, %24, %cst {dimension_numbers = #tpu.dot_dimension_numbers<[1], [0], [0], [1], [0, 0, 1, 1], [], []>} : vector<4x4xf32>, vector<4x256xf32>, vector<4x256xf32> -> vector<4x256xf32>
    %c1 = arith.constant 1 : index
    %c0_9 = arith.constant 0 : index
    %c0_10 = arith.constant 0 : index
    %31 = vector.load %arg2[%c1, %c0_9, %c0_10] : memref<9x4x4xf32, #tpu.memory_space<vmem>>, vector<1x4x4xf32>
    %32 = vector.shape_cast %31 : vector<1x4x4xf32> to vector<4x4xf32>
    %cst_11 = arith.constant dense<0.000000e+00> : vector<4x256xf32>
    %33 = tpu.matmul %32, %16, %cst_11 {dimension_numbers = #tpu.dot_dimension_numbers<[1], [0], [0], [1], [0, 0, 1, 1], [], []>} : vector<4x4xf32>, vector<4x256xf32>, vector<4x256xf32> -> vector<4x256xf32>
    %c2 = arith.constant 2 : index
    %c0_12 = arith.constant 0 : index
    %c0_13 = arith.constant 0 : index
    %34 = vector.load %arg2[%c2, %c0_12, %c0_13] : memref<9x4x4xf32, #tpu.memory_space<vmem>>, vector<1x4x4xf32>
    %35 = vector.shape_cast %34 : vector<1x4x4xf32> to vector<4x4xf32>
    %cst_14 = arith.constant dense<0.000000e+00> : vector<4x256xf32>
    %36 = tpu.matmul %35, %27, %cst_14 {dimension_numbers = #tpu.dot_dimension_numbers<[1], [0], [0], [1], [0, 0, 1, 1], [], []>} : vector<4x4xf32>, vector<4x256xf32>, vector<4x256xf32> -> vector<4x256xf32>
    %37 = arith.addf %30, %33 : vector<4x256xf32>
    %38 = arith.addf %37, %36 : vector<4x256xf32>
    %c1_i32_15 = arith.constant 1 : i32
    %39 = tpu.dynamic_rotate %11 by %c1_i32_15 dim 1 : vector<4x256xf32>, i32 -> vector<4x256xf32>
    %c255_i32_16 = arith.constant 255 : i32
    %40 = tpu.dynamic_rotate %11 by %c255_i32_16 dim 1 : vector<4x256xf32>, i32 -> vector<4x256xf32>
    %41 = vector.shape_cast %3 : vector<1x256xi1> to vector<1x256xi1>
    %42 = vector.broadcast %41 : vector<1x256xi1> to vector<4x256xi1>
    %43 = arith.select %42, %40, %39 : vector<4x256xi1>, vector<4x256xf32>
    %44 = vector.shape_cast %5 : vector<1x256xi1> to vector<1x256xi1>
    %45 = vector.broadcast %44 : vector<1x256xi1> to vector<4x256xi1>
    %46 = arith.select %45, %39, %40 : vector<4x256xi1>, vector<4x256xf32>
    %c3 = arith.constant 3 : index
    %c0_17 = arith.constant 0 : index
    %c0_18 = arith.constant 0 : index
    %47 = vector.load %arg2[%c3, %c0_17, %c0_18] : memref<9x4x4xf32, #tpu.memory_space<vmem>>, vector<1x4x4xf32>
    %48 = vector.shape_cast %47 : vector<1x4x4xf32> to vector<4x4xf32>
    %cst_19 = arith.constant dense<0.000000e+00> : vector<4x256xf32>
    %49 = tpu.matmul %48, %43, %cst_19 {dimension_numbers = #tpu.dot_dimension_numbers<[1], [0], [0], [1], [0, 0, 1, 1], [], []>} : vector<4x4xf32>, vector<4x256xf32>, vector<4x256xf32> -> vector<4x256xf32>
    %c4 = arith.constant 4 : index
    %c0_20 = arith.constant 0 : index
    %c0_21 = arith.constant 0 : index
    %50 = vector.load %arg2[%c4, %c0_20, %c0_21] : memref<9x4x4xf32, #tpu.memory_space<vmem>>, vector<1x4x4xf32>
    %51 = vector.shape_cast %50 : vector<1x4x4xf32> to vector<4x4xf32>
    %cst_22 = arith.constant dense<0.000000e+00> : vector<4x256xf32>
    %52 = tpu.matmul %51, %11, %cst_22 {dimension_numbers = #tpu.dot_dimension_numbers<[1], [0], [0], [1], [0, 0, 1, 1], [], []>} : vector<4x4xf32>, vector<4x256xf32>, vector<4x256xf32> -> vector<4x256xf32>
    %c5 = arith.constant 5 : index
    %c0_23 = arith.constant 0 : index
    %c0_24 = arith.constant 0 : index
    %53 = vector.load %arg2[%c5, %c0_23, %c0_24] : memref<9x4x4xf32, #tpu.memory_space<vmem>>, vector<1x4x4xf32>
    %54 = vector.shape_cast %53 : vector<1x4x4xf32> to vector<4x4xf32>
    %cst_25 = arith.constant dense<0.000000e+00> : vector<4x256xf32>
    %55 = tpu.matmul %54, %46, %cst_25 {dimension_numbers = #tpu.dot_dimension_numbers<[1], [0], [0], [1], [0, 0, 1, 1], [], []>} : vector<4x4xf32>, vector<4x256xf32>, vector<4x256xf32> -> vector<4x256xf32>
    %56 = arith.addf %38, %49 : vector<4x256xf32>
    %57 = arith.addf %56, %52 : vector<4x256xf32>
    %58 = arith.addf %57, %55 : vector<4x256xf32>
    %c1_i32_26 = arith.constant 1 : i32
    %59 = tpu.dynamic_rotate %19 by %c1_i32_26 dim 1 : vector<4x256xf32>, i32 -> vector<4x256xf32>
    %c255_i32_27 = arith.constant 255 : i32
    %60 = tpu.dynamic_rotate %19 by %c255_i32_27 dim 1 : vector<4x256xf32>, i32 -> vector<4x256xf32>
    %61 = vector.shape_cast %3 : vector<1x256xi1> to vector<1x256xi1>
    %62 = vector.broadcast %61 : vector<1x256xi1> to vector<4x256xi1>
    %63 = arith.select %62, %60, %59 : vector<4x256xi1>, vector<4x256xf32>
    %64 = vector.shape_cast %5 : vector<1x256xi1> to vector<1x256xi1>
    %65 = vector.broadcast %64 : vector<1x256xi1> to vector<4x256xi1>
    %66 = arith.select %65, %59, %60 : vector<4x256xi1>, vector<4x256xf32>
    %c6 = arith.constant 6 : index
    %c0_28 = arith.constant 0 : index
    %c0_29 = arith.constant 0 : index
    %67 = vector.load %arg2[%c6, %c0_28, %c0_29] : memref<9x4x4xf32, #tpu.memory_space<vmem>>, vector<1x4x4xf32>
    %68 = vector.shape_cast %67 : vector<1x4x4xf32> to vector<4x4xf32>
    %cst_30 = arith.constant dense<0.000000e+00> : vector<4x256xf32>
    %69 = tpu.matmul %68, %63, %cst_30 {dimension_numbers = #tpu.dot_dimension_numbers<[1], [0], [0], [1], [0, 0, 1, 1], [], []>} : vector<4x4xf32>, vector<4x256xf32>, vector<4x256xf32> -> vector<4x256xf32>
    %c7 = arith.constant 7 : index
    %c0_31 = arith.constant 0 : index
    %c0_32 = arith.constant 0 : index
    %70 = vector.load %arg2[%c7, %c0_31, %c0_32] : memref<9x4x4xf32, #tpu.memory_space<vmem>>, vector<1x4x4xf32>
    %71 = vector.shape_cast %70 : vector<1x4x4xf32> to vector<4x4xf32>
    %cst_33 = arith.constant dense<0.000000e+00> : vector<4x256xf32>
    %72 = tpu.matmul %71, %19, %cst_33 {dimension_numbers = #tpu.dot_dimension_numbers<[1], [0], [0], [1], [0, 0, 1, 1], [], []>} : vector<4x4xf32>, vector<4x256xf32>, vector<4x256xf32> -> vector<4x256xf32>
    %c8 = arith.constant 8 : index
    %c0_34 = arith.constant 0 : index
    %c0_35 = arith.constant 0 : index
    %73 = vector.load %arg2[%c8, %c0_34, %c0_35] : memref<9x4x4xf32, #tpu.memory_space<vmem>>, vector<1x4x4xf32>
    %74 = vector.shape_cast %73 : vector<1x4x4xf32> to vector<4x4xf32>
    %cst_36 = arith.constant dense<0.000000e+00> : vector<4x256xf32>
    %75 = tpu.matmul %74, %66, %cst_36 {dimension_numbers = #tpu.dot_dimension_numbers<[1], [0], [0], [1], [0, 0, 1, 1], [], []>} : vector<4x4xf32>, vector<4x256xf32>, vector<4x256xf32> -> vector<4x256xf32>
    %76 = arith.addf %58, %69 : vector<4x256xf32>
    %77 = arith.addf %76, %72 : vector<4x256xf32>
    %78 = arith.addf %77, %75 : vector<4x256xf32>
    %cst_37 = arith.constant dense<0.000000e+00> : vector<4xf32>
    %79 = vector.multi_reduction <add>, %78, %cst_37 [1] : vector<4x256xf32> to vector<4xf32>
    %80 = vector.shape_cast %79 : vector<4xf32> to vector<4x1xf32>
    %cst_38 = arith.constant 2.560000e+02 : f32
    %81 = vector.broadcast %cst_38 : f32 to vector<4x1xf32>
    %82 = arith.divf %80, %81 : vector<4x1xf32>
    %83 = arith.mulf %78, %78 : vector<4x256xf32>
    %cst_39 = arith.constant dense<0.000000e+00> : vector<4xf32>
    %84 = vector.multi_reduction <add>, %83, %cst_39 [1] : vector<4x256xf32> to vector<4xf32>
    %85 = vector.shape_cast %84 : vector<4xf32> to vector<4x1xf32>
    %cst_40 = arith.constant 2.560000e+02 : f32
    %86 = vector.broadcast %cst_40 : f32 to vector<4x1xf32>
    %87 = arith.divf %85, %86 : vector<4x1xf32>
    %88 = arith.mulf %82, %82 : vector<4x1xf32>
    %89 = arith.subf %87, %88 : vector<4x1xf32>
    %cst_41 = arith.constant 0.000000e+00 : f32
    %90 = vector.broadcast %cst_41 : f32 to vector<4x1xf32>
    %91 = arith.maximumf %89, %90 : vector<4x1xf32>
    %92 = vector.broadcast %82 : vector<4x1xf32> to vector<4x256xf32>
    %93 = arith.subf %78, %92 : vector<4x256xf32>
    %cst_42 = arith.constant 9.99999974E-6 : f32
    %94 = vector.broadcast %cst_42 : f32 to vector<4x1xf32>
    %95 = arith.addf %91, %94 : vector<4x1xf32>
    %96 = math.rsqrt %95 : vector<4x1xf32>
    %97 = vector.broadcast %96 : vector<4x1xf32> to vector<4x256xf32>
    %98 = arith.mulf %93, %97 : vector<4x256xf32>
    %cst_43 = arith.constant 0.000000e+00 : f32
    %99 = vector.broadcast %cst_43 : f32 to vector<4x256xf32>
    %100 = arith.maximumf %98, %99 : vector<4x256xf32>
    %c16_i32_44 = arith.constant 16 : i32
    %101 = tpu.dynamic_rotate %100 by %c16_i32_44 dim 1 : vector<4x256xf32>, i32 -> vector<4x256xf32>
    %c240_i32_45 = arith.constant 240 : i32
    %102 = tpu.dynamic_rotate %100 by %c240_i32_45 dim 1 : vector<4x256xf32>, i32 -> vector<4x256xf32>
    %103 = vector.shape_cast %7 : vector<1x256xi1> to vector<1x256xi1>
    %104 = vector.broadcast %103 : vector<1x256xi1> to vector<4x256xi1>
    %105 = arith.select %104, %102, %101 : vector<4x256xi1>, vector<4x256xf32>
    %106 = vector.shape_cast %9 : vector<1x256xi1> to vector<1x256xi1>
    %107 = vector.broadcast %106 : vector<1x256xi1> to vector<4x256xi1>
    %108 = arith.select %107, %101, %102 : vector<4x256xi1>, vector<4x256xf32>
    %c1_i32_46 = arith.constant 1 : i32
    %109 = tpu.dynamic_rotate %105 by %c1_i32_46 dim 1 : vector<4x256xf32>, i32 -> vector<4x256xf32>
    %c255_i32_47 = arith.constant 255 : i32
    %110 = tpu.dynamic_rotate %105 by %c255_i32_47 dim 1 : vector<4x256xf32>, i32 -> vector<4x256xf32>
    %111 = vector.shape_cast %3 : vector<1x256xi1> to vector<1x256xi1>
    %112 = vector.broadcast %111 : vector<1x256xi1> to vector<4x256xi1>
    %113 = arith.select %112, %110, %109 : vector<4x256xi1>, vector<4x256xf32>
    %114 = vector.shape_cast %5 : vector<1x256xi1> to vector<1x256xi1>
    %115 = vector.broadcast %114 : vector<1x256xi1> to vector<4x256xi1>
    %116 = arith.select %115, %109, %110 : vector<4x256xi1>, vector<4x256xf32>
    %c0_48 = arith.constant 0 : index
    %c0_49 = arith.constant 0 : index
    %c0_50 = arith.constant 0 : index
    %117 = vector.load %arg3[%c0_48, %c0_49, %c0_50] : memref<9x4x4xf32, #tpu.memory_space<vmem>>, vector<1x4x4xf32>
    %118 = vector.shape_cast %117 : vector<1x4x4xf32> to vector<4x4xf32>
    %cst_51 = arith.constant dense<0.000000e+00> : vector<4x256xf32>
    %119 = tpu.matmul %118, %113, %cst_51 {dimension_numbers = #tpu.dot_dimension_numbers<[1], [0], [0], [1], [0, 0, 1, 1], [], []>} : vector<4x4xf32>, vector<4x256xf32>, vector<4x256xf32> -> vector<4x256xf32>
    %c1_52 = arith.constant 1 : index
    %c0_53 = arith.constant 0 : index
    %c0_54 = arith.constant 0 : index
    %120 = vector.load %arg3[%c1_52, %c0_53, %c0_54] : memref<9x4x4xf32, #tpu.memory_space<vmem>>, vector<1x4x4xf32>
    %121 = vector.shape_cast %120 : vector<1x4x4xf32> to vector<4x4xf32>
    %cst_55 = arith.constant dense<0.000000e+00> : vector<4x256xf32>
    %122 = tpu.matmul %121, %105, %cst_55 {dimension_numbers = #tpu.dot_dimension_numbers<[1], [0], [0], [1], [0, 0, 1, 1], [], []>} : vector<4x4xf32>, vector<4x256xf32>, vector<4x256xf32> -> vector<4x256xf32>
    %c2_56 = arith.constant 2 : index
    %c0_57 = arith.constant 0 : index
    %c0_58 = arith.constant 0 : index
    %123 = vector.load %arg3[%c2_56, %c0_57, %c0_58] : memref<9x4x4xf32, #tpu.memory_space<vmem>>, vector<1x4x4xf32>
    %124 = vector.shape_cast %123 : vector<1x4x4xf32> to vector<4x4xf32>
    %cst_59 = arith.constant dense<0.000000e+00> : vector<4x256xf32>
    %125 = tpu.matmul %124, %116, %cst_59 {dimension_numbers = #tpu.dot_dimension_numbers<[1], [0], [0], [1], [0, 0, 1, 1], [], []>} : vector<4x4xf32>, vector<4x256xf32>, vector<4x256xf32> -> vector<4x256xf32>
    %126 = arith.addf %119, %122 : vector<4x256xf32>
    %127 = arith.addf %126, %125 : vector<4x256xf32>
    %c1_i32_60 = arith.constant 1 : i32
    %128 = tpu.dynamic_rotate %100 by %c1_i32_60 dim 1 : vector<4x256xf32>, i32 -> vector<4x256xf32>
    %c255_i32_61 = arith.constant 255 : i32
    %129 = tpu.dynamic_rotate %100 by %c255_i32_61 dim 1 : vector<4x256xf32>, i32 -> vector<4x256xf32>
    %130 = vector.shape_cast %3 : vector<1x256xi1> to vector<1x256xi1>
    %131 = vector.broadcast %130 : vector<1x256xi1> to vector<4x256xi1>
    %132 = arith.select %131, %129, %128 : vector<4x256xi1>, vector<4x256xf32>
    %133 = vector.shape_cast %5 : vector<1x256xi1> to vector<1x256xi1>
    %134 = vector.broadcast %133 : vector<1x256xi1> to vector<4x256xi1>
    %135 = arith.select %134, %128, %129 : vector<4x256xi1>, vector<4x256xf32>
    %c3_62 = arith.constant 3 : index
    %c0_63 = arith.constant 0 : index
    %c0_64 = arith.constant 0 : index
    %136 = vector.load %arg3[%c3_62, %c0_63, %c0_64] : memref<9x4x4xf32, #tpu.memory_space<vmem>>, vector<1x4x4xf32>
    %137 = vector.shape_cast %136 : vector<1x4x4xf32> to vector<4x4xf32>
    %cst_65 = arith.constant dense<0.000000e+00> : vector<4x256xf32>
    %138 = tpu.matmul %137, %132, %cst_65 {dimension_numbers = #tpu.dot_dimension_numbers<[1], [0], [0], [1], [0, 0, 1, 1], [], []>} : vector<4x4xf32>, vector<4x256xf32>, vector<4x256xf32> -> vector<4x256xf32>
    %c4_66 = arith.constant 4 : index
    %c0_67 = arith.constant 0 : index
    %c0_68 = arith.constant 0 : index
    %139 = vector.load %arg3[%c4_66, %c0_67, %c0_68] : memref<9x4x4xf32, #tpu.memory_space<vmem>>, vector<1x4x4xf32>
    %140 = vector.shape_cast %139 : vector<1x4x4xf32> to vector<4x4xf32>
    %cst_69 = arith.constant dense<0.000000e+00> : vector<4x256xf32>
    %141 = tpu.matmul %140, %100, %cst_69 {dimension_numbers = #tpu.dot_dimension_numbers<[1], [0], [0], [1], [0, 0, 1, 1], [], []>} : vector<4x4xf32>, vector<4x256xf32>, vector<4x256xf32> -> vector<4x256xf32>
    %c5_70 = arith.constant 5 : index
    %c0_71 = arith.constant 0 : index
    %c0_72 = arith.constant 0 : index
    %142 = vector.load %arg3[%c5_70, %c0_71, %c0_72] : memref<9x4x4xf32, #tpu.memory_space<vmem>>, vector<1x4x4xf32>
    %143 = vector.shape_cast %142 : vector<1x4x4xf32> to vector<4x4xf32>
    %cst_73 = arith.constant dense<0.000000e+00> : vector<4x256xf32>
    %144 = tpu.matmul %143, %135, %cst_73 {dimension_numbers = #tpu.dot_dimension_numbers<[1], [0], [0], [1], [0, 0, 1, 1], [], []>} : vector<4x4xf32>, vector<4x256xf32>, vector<4x256xf32> -> vector<4x256xf32>
    %145 = arith.addf %127, %138 : vector<4x256xf32>
    %146 = arith.addf %145, %141 : vector<4x256xf32>
    %147 = arith.addf %146, %144 : vector<4x256xf32>
    %c1_i32_74 = arith.constant 1 : i32
    %148 = tpu.dynamic_rotate %108 by %c1_i32_74 dim 1 : vector<4x256xf32>, i32 -> vector<4x256xf32>
    %c255_i32_75 = arith.constant 255 : i32
    %149 = tpu.dynamic_rotate %108 by %c255_i32_75 dim 1 : vector<4x256xf32>, i32 -> vector<4x256xf32>
    %150 = vector.shape_cast %3 : vector<1x256xi1> to vector<1x256xi1>
    %151 = vector.broadcast %150 : vector<1x256xi1> to vector<4x256xi1>
    %152 = arith.select %151, %149, %148 : vector<4x256xi1>, vector<4x256xf32>
    %153 = vector.shape_cast %5 : vector<1x256xi1> to vector<1x256xi1>
    %154 = vector.broadcast %153 : vector<1x256xi1> to vector<4x256xi1>
    %155 = arith.select %154, %148, %149 : vector<4x256xi1>, vector<4x256xf32>
    %c6_76 = arith.constant 6 : index
    %c0_77 = arith.constant 0 : index
    %c0_78 = arith.constant 0 : index
    %156 = vector.load %arg3[%c6_76, %c0_77, %c0_78] : memref<9x4x4xf32, #tpu.memory_space<vmem>>, vector<1x4x4xf32>
    %157 = vector.shape_cast %156 : vector<1x4x4xf32> to vector<4x4xf32>
    %cst_79 = arith.constant dense<0.000000e+00> : vector<4x256xf32>
    %158 = tpu.matmul %157, %152, %cst_79 {dimension_numbers = #tpu.dot_dimension_numbers<[1], [0], [0], [1], [0, 0, 1, 1], [], []>} : vector<4x4xf32>, vector<4x256xf32>, vector<4x256xf32> -> vector<4x256xf32>
    %c7_80 = arith.constant 7 : index
    %c0_81 = arith.constant 0 : index
    %c0_82 = arith.constant 0 : index
    %159 = vector.load %arg3[%c7_80, %c0_81, %c0_82] : memref<9x4x4xf32, #tpu.memory_space<vmem>>, vector<1x4x4xf32>
    %160 = vector.shape_cast %159 : vector<1x4x4xf32> to vector<4x4xf32>
    %cst_83 = arith.constant dense<0.000000e+00> : vector<4x256xf32>
    %161 = tpu.matmul %160, %108, %cst_83 {dimension_numbers = #tpu.dot_dimension_numbers<[1], [0], [0], [1], [0, 0, 1, 1], [], []>} : vector<4x4xf32>, vector<4x256xf32>, vector<4x256xf32> -> vector<4x256xf32>
    %c8_84 = arith.constant 8 : index
    %c0_85 = arith.constant 0 : index
    %c0_86 = arith.constant 0 : index
    %162 = vector.load %arg3[%c8_84, %c0_85, %c0_86] : memref<9x4x4xf32, #tpu.memory_space<vmem>>, vector<1x4x4xf32>
    %163 = vector.shape_cast %162 : vector<1x4x4xf32> to vector<4x4xf32>
    %cst_87 = arith.constant dense<0.000000e+00> : vector<4x256xf32>
    %164 = tpu.matmul %163, %155, %cst_87 {dimension_numbers = #tpu.dot_dimension_numbers<[1], [0], [0], [1], [0, 0, 1, 1], [], []>} : vector<4x4xf32>, vector<4x256xf32>, vector<4x256xf32> -> vector<4x256xf32>
    %165 = arith.addf %147, %158 : vector<4x256xf32>
    %166 = arith.addf %165, %161 : vector<4x256xf32>
    %167 = arith.addf %166, %164 : vector<4x256xf32>
    %cst_88 = arith.constant dense<0.000000e+00> : vector<4xf32>
    %168 = vector.multi_reduction <add>, %167, %cst_88 [1] : vector<4x256xf32> to vector<4xf32>
    %169 = vector.shape_cast %168 : vector<4xf32> to vector<4x1xf32>
    %cst_89 = arith.constant 2.560000e+02 : f32
    %170 = vector.broadcast %cst_89 : f32 to vector<4x1xf32>
    %171 = arith.divf %169, %170 : vector<4x1xf32>
    %172 = arith.mulf %167, %167 : vector<4x256xf32>
    %cst_90 = arith.constant dense<0.000000e+00> : vector<4xf32>
    %173 = vector.multi_reduction <add>, %172, %cst_90 [1] : vector<4x256xf32> to vector<4xf32>
    %174 = vector.shape_cast %173 : vector<4xf32> to vector<4x1xf32>
    %cst_91 = arith.constant 2.560000e+02 : f32
    %175 = vector.broadcast %cst_91 : f32 to vector<4x1xf32>
    %176 = arith.divf %174, %175 : vector<4x1xf32>
    %177 = arith.mulf %171, %171 : vector<4x1xf32>
    %178 = arith.subf %176, %177 : vector<4x1xf32>
    %cst_92 = arith.constant 0.000000e+00 : f32
    %179 = vector.broadcast %cst_92 : f32 to vector<4x1xf32>
    %180 = arith.maximumf %178, %179 : vector<4x1xf32>
    %181 = vector.broadcast %171 : vector<4x1xf32> to vector<4x256xf32>
    %182 = arith.subf %167, %181 : vector<4x256xf32>
    %cst_93 = arith.constant 9.99999974E-6 : f32
    %183 = vector.broadcast %cst_93 : f32 to vector<4x1xf32>
    %184 = arith.addf %180, %183 : vector<4x1xf32>
    %185 = math.rsqrt %184 : vector<4x1xf32>
    %186 = vector.broadcast %185 : vector<4x1xf32> to vector<4x256xf32>
    %187 = arith.mulf %182, %186 : vector<4x256xf32>
    %c0_94 = arith.constant 0 : index
    %c0_95 = arith.constant 0 : index
    %c0_96 = arith.constant 0 : index
    %188 = vector.load %arg1[%c0_94, %c0_95, %c0_96] : memref<2x4x256xf32, #tpu.memory_space<vmem>>, vector<1x4x256xf32>
    %189 = vector.shape_cast %188 : vector<1x4x256xf32> to vector<4x256xf32>
    %190 = arith.addf %189, %187 : vector<4x256xf32>
    %c0_97 = arith.constant 0 : index
    %c0_98 = arith.constant 0 : index
    %c0_99 = arith.constant 0 : index
    %191 = vector.load %arg5[%c0_97, %c0_98, %c0_99] : memref<2x4x256xf32, #tpu.memory_space<vmem>>, vector<1x4x256xf32>
    %192 = vector.shape_cast %191 : vector<1x4x256xf32> to vector<4x256xf32>
    %193 = vector.shape_cast %190 : vector<4x256xf32> to vector<1x4x256xf32>
    tpu.vector_store %arg5[%c0_97, %c0_98, %c0_99], %193 {strides = array<i32>} : memref<2x4x256xf32, #tpu.memory_space<vmem>>, vector<1x4x256xf32>,
    %c1_100 = arith.constant 1 : index
    %c0_101 = arith.constant 0 : index
    %c0_102 = arith.constant 0 : index
    %194 = vector.load %arg1[%c1_100, %c0_101, %c0_102] : memref<2x4x256xf32, #tpu.memory_space<vmem>>, vector<1x4x256xf32>
    %195 = vector.shape_cast %194 : vector<1x4x256xf32> to vector<4x256xf32>
    %c16_i32_103 = arith.constant 16 : i32
    %196 = tpu.dynamic_rotate %195 by %c16_i32_103 dim 1 : vector<4x256xf32>, i32 -> vector<4x256xf32>
    %c240_i32_104 = arith.constant 240 : i32
    %197 = tpu.dynamic_rotate %195 by %c240_i32_104 dim 1 : vector<4x256xf32>, i32 -> vector<4x256xf32>
    %198 = vector.shape_cast %7 : vector<1x256xi1> to vector<1x256xi1>
    %199 = vector.broadcast %198 : vector<1x256xi1> to vector<4x256xi1>
    %200 = arith.select %199, %197, %196 : vector<4x256xi1>, vector<4x256xf32>
    %201 = vector.shape_cast %9 : vector<1x256xi1> to vector<1x256xi1>
    %202 = vector.broadcast %201 : vector<1x256xi1> to vector<4x256xi1>
    %203 = arith.select %202, %196, %197 : vector<4x256xi1>, vector<4x256xf32>
    %c1_i32_105 = arith.constant 1 : i32
    %204 = tpu.dynamic_rotate %200 by %c1_i32_105 dim 1 : vector<4x256xf32>, i32 -> vector<4x256xf32>
    %c255_i32_106 = arith.constant 255 : i32
    %205 = tpu.dynamic_rotate %200 by %c255_i32_106 dim 1 : vector<4x256xf32>, i32 -> vector<4x256xf32>
    %206 = vector.shape_cast %3 : vector<1x256xi1> to vector<1x256xi1>
    %207 = vector.broadcast %206 : vector<1x256xi1> to vector<4x256xi1>
    %208 = arith.select %207, %205, %204 : vector<4x256xi1>, vector<4x256xf32>
    %209 = vector.shape_cast %5 : vector<1x256xi1> to vector<1x256xi1>
    %210 = vector.broadcast %209 : vector<1x256xi1> to vector<4x256xi1>
    %211 = arith.select %210, %204, %205 : vector<4x256xi1>, vector<4x256xf32>
    %c0_107 = arith.constant 0 : index
    %c0_108 = arith.constant 0 : index
    %c0_109 = arith.constant 0 : index
    %212 = vector.load %arg2[%c0_107, %c0_108, %c0_109] : memref<9x4x4xf32, #tpu.memory_space<vmem>>, vector<1x4x4xf32>
    %213 = vector.shape_cast %212 : vector<1x4x4xf32> to vector<4x4xf32>
    %cst_110 = arith.constant dense<0.000000e+00> : vector<4x256xf32>
    %214 = tpu.matmul %213, %208, %cst_110 {dimension_numbers = #tpu.dot_dimension_numbers<[1], [0], [0], [1], [0, 0, 1, 1], [], []>} : vector<4x4xf32>, vector<4x256xf32>, vector<4x256xf32> -> vector<4x256xf32>
    %c1_111 = arith.constant 1 : index
    %c0_112 = arith.constant 0 : index
    %c0_113 = arith.constant 0 : index
    %215 = vector.load %arg2[%c1_111, %c0_112, %c0_113] : memref<9x4x4xf32, #tpu.memory_space<vmem>>, vector<1x4x4xf32>
    %216 = vector.shape_cast %215 : vector<1x4x4xf32> to vector<4x4xf32>
    %cst_114 = arith.constant dense<0.000000e+00> : vector<4x256xf32>
    %217 = tpu.matmul %216, %200, %cst_114 {dimension_numbers = #tpu.dot_dimension_numbers<[1], [0], [0], [1], [0, 0, 1, 1], [], []>} : vector<4x4xf32>, vector<4x256xf32>, vector<4x256xf32> -> vector<4x256xf32>
    %c2_115 = arith.constant 2 : index
    %c0_116 = arith.constant 0 : index
    %c0_117 = arith.constant 0 : index
    %218 = vector.load %arg2[%c2_115, %c0_116, %c0_117] : memref<9x4x4xf32, #tpu.memory_space<vmem>>, vector<1x4x4xf32>
    %219 = vector.shape_cast %218 : vector<1x4x4xf32> to vector<4x4xf32>
    %cst_118 = arith.constant dense<0.000000e+00> : vector<4x256xf32>
    %220 = tpu.matmul %219, %211, %cst_118 {dimension_numbers = #tpu.dot_dimension_numbers<[1], [0], [0], [1], [0, 0, 1, 1], [], []>} : vector<4x4xf32>, vector<4x256xf32>, vector<4x256xf32> -> vector<4x256xf32>
    %221 = arith.addf %214, %217 : vector<4x256xf32>
    %222 = arith.addf %221, %220 : vector<4x256xf32>
    %c1_i32_119 = arith.constant 1 : i32
    %223 = tpu.dynamic_rotate %195 by %c1_i32_119 dim 1 : vector<4x256xf32>, i32 -> vector<4x256xf32>
    %c255_i32_120 = arith.constant 255 : i32
    %224 = tpu.dynamic_rotate %195 by %c255_i32_120 dim 1 : vector<4x256xf32>, i32 -> vector<4x256xf32>
    %225 = vector.shape_cast %3 : vector<1x256xi1> to vector<1x256xi1>
    %226 = vector.broadcast %225 : vector<1x256xi1> to vector<4x256xi1>
    %227 = arith.select %226, %224, %223 : vector<4x256xi1>, vector<4x256xf32>
    %228 = vector.shape_cast %5 : vector<1x256xi1> to vector<1x256xi1>
    %229 = vector.broadcast %228 : vector<1x256xi1> to vector<4x256xi1>
    %230 = arith.select %229, %223, %224 : vector<4x256xi1>, vector<4x256xf32>
    %c3_121 = arith.constant 3 : index
    %c0_122 = arith.constant 0 : index
    %c0_123 = arith.constant 0 : index
    %231 = vector.load %arg2[%c3_121, %c0_122, %c0_123] : memref<9x4x4xf32, #tpu.memory_space<vmem>>, vector<1x4x4xf32>
    %232 = vector.shape_cast %231 : vector<1x4x4xf32> to vector<4x4xf32>
    %cst_124 = arith.constant dense<0.000000e+00> : vector<4x256xf32>
    %233 = tpu.matmul %232, %227, %cst_124 {dimension_numbers = #tpu.dot_dimension_numbers<[1], [0], [0], [1], [0, 0, 1, 1], [], []>} : vector<4x4xf32>, vector<4x256xf32>, vector<4x256xf32> -> vector<4x256xf32>
    %c4_125 = arith.constant 4 : index
    %c0_126 = arith.constant 0 : index
    %c0_127 = arith.constant 0 : index
    %234 = vector.load %arg2[%c4_125, %c0_126, %c0_127] : memref<9x4x4xf32, #tpu.memory_space<vmem>>, vector<1x4x4xf32>
    %235 = vector.shape_cast %234 : vector<1x4x4xf32> to vector<4x4xf32>
    %cst_128 = arith.constant dense<0.000000e+00> : vector<4x256xf32>
    %236 = tpu.matmul %235, %195, %cst_128 {dimension_numbers = #tpu.dot_dimension_numbers<[1], [0], [0], [1], [0, 0, 1, 1], [], []>} : vector<4x4xf32>, vector<4x256xf32>, vector<4x256xf32> -> vector<4x256xf32>
    %c5_129 = arith.constant 5 : index
    %c0_130 = arith.constant 0 : index
    %c0_131 = arith.constant 0 : index
    %237 = vector.load %arg2[%c5_129, %c0_130, %c0_131] : memref<9x4x4xf32, #tpu.memory_space<vmem>>, vector<1x4x4xf32>
    %238 = vector.shape_cast %237 : vector<1x4x4xf32> to vector<4x4xf32>
    %cst_132 = arith.constant dense<0.000000e+00> : vector<4x256xf32>
    %239 = tpu.matmul %238, %230, %cst_132 {dimension_numbers = #tpu.dot_dimension_numbers<[1], [0], [0], [1], [0, 0, 1, 1], [], []>} : vector<4x4xf32>, vector<4x256xf32>, vector<4x256xf32> -> vector<4x256xf32>
    %240 = arith.addf %222, %233 : vector<4x256xf32>
    %241 = arith.addf %240, %236 : vector<4x256xf32>
    %242 = arith.addf %241, %239 : vector<4x256xf32>
    %c1_i32_133 = arith.constant 1 : i32
    %243 = tpu.dynamic_rotate %203 by %c1_i32_133 dim 1 : vector<4x256xf32>, i32 -> vector<4x256xf32>
    %c255_i32_134 = arith.constant 255 : i32
    %244 = tpu.dynamic_rotate %203 by %c255_i32_134 dim 1 : vector<4x256xf32>, i32 -> vector<4x256xf32>
    %245 = vector.shape_cast %3 : vector<1x256xi1> to vector<1x256xi1>
    %246 = vector.broadcast %245 : vector<1x256xi1> to vector<4x256xi1>
    %247 = arith.select %246, %244, %243 : vector<4x256xi1>, vector<4x256xf32>
    %248 = vector.shape_cast %5 : vector<1x256xi1> to vector<1x256xi1>
    %249 = vector.broadcast %248 : vector<1x256xi1> to vector<4x256xi1>
    %250 = arith.select %249, %243, %244 : vector<4x256xi1>, vector<4x256xf32>
    %c6_135 = arith.constant 6 : index
    %c0_136 = arith.constant 0 : index
    %c0_137 = arith.constant 0 : index
    %251 = vector.load %arg2[%c6_135, %c0_136, %c0_137] : memref<9x4x4xf32, #tpu.memory_space<vmem>>, vector<1x4x4xf32>
    %252 = vector.shape_cast %251 : vector<1x4x4xf32> to vector<4x4xf32>
    %cst_138 = arith.constant dense<0.000000e+00> : vector<4x256xf32>
    %253 = tpu.matmul %252, %247, %cst_138 {dimension_numbers = #tpu.dot_dimension_numbers<[1], [0], [0], [1], [0, 0, 1, 1], [], []>} : vector<4x4xf32>, vector<4x256xf32>, vector<4x256xf32> -> vector<4x256xf32>
    %c7_139 = arith.constant 7 : index
    %c0_140 = arith.constant 0 : index
    %c0_141 = arith.constant 0 : index
    %254 = vector.load %arg2[%c7_139, %c0_140, %c0_141] : memref<9x4x4xf32, #tpu.memory_space<vmem>>, vector<1x4x4xf32>
    %255 = vector.shape_cast %254 : vector<1x4x4xf32> to vector<4x4xf32>
    %cst_142 = arith.constant dense<0.000000e+00> : vector<4x256xf32>
    %256 = tpu.matmul %255, %203, %cst_142 {dimension_numbers = #tpu.dot_dimension_numbers<[1], [0], [0], [1], [0, 0, 1, 1], [], []>} : vector<4x4xf32>, vector<4x256xf32>, vector<4x256xf32> -> vector<4x256xf32>
    %c8_143 = arith.constant 8 : index
    %c0_144 = arith.constant 0 : index
    %c0_145 = arith.constant 0 : index
    %257 = vector.load %arg2[%c8_143, %c0_144, %c0_145] : memref<9x4x4xf32, #tpu.memory_space<vmem>>, vector<1x4x4xf32>
    %258 = vector.shape_cast %257 : vector<1x4x4xf32> to vector<4x4xf32>
    %cst_146 = arith.constant dense<0.000000e+00> : vector<4x256xf32>
    %259 = tpu.matmul %258, %250, %cst_146 {dimension_numbers = #tpu.dot_dimension_numbers<[1], [0], [0], [1], [0, 0, 1, 1], [], []>} : vector<4x4xf32>, vector<4x256xf32>, vector<4x256xf32> -> vector<4x256xf32>
    %260 = arith.addf %242, %253 : vector<4x256xf32>
    %261 = arith.addf %260, %256 : vector<4x256xf32>
    %262 = arith.addf %261, %259 : vector<4x256xf32>
    %cst_147 = arith.constant dense<0.000000e+00> : vector<4xf32>
    %263 = vector.multi_reduction <add>, %262, %cst_147 [1] : vector<4x256xf32> to vector<4xf32>
    %264 = vector.shape_cast %263 : vector<4xf32> to vector<4x1xf32>
    %cst_148 = arith.constant 2.560000e+02 : f32
    %265 = vector.broadcast %cst_148 : f32 to vector<4x1xf32>
    %266 = arith.divf %264, %265 : vector<4x1xf32>
    %267 = arith.mulf %262, %262 : vector<4x256xf32>
    %cst_149 = arith.constant dense<0.000000e+00> : vector<4xf32>
    %268 = vector.multi_reduction <add>, %267, %cst_149 [1] : vector<4x256xf32> to vector<4xf32>
    %269 = vector.shape_cast %268 : vector<4xf32> to vector<4x1xf32>
    %cst_150 = arith.constant 2.560000e+02 : f32
    %270 = vector.broadcast %cst_150 : f32 to vector<4x1xf32>
    %271 = arith.divf %269, %270 : vector<4x1xf32>
    %272 = arith.mulf %266, %266 : vector<4x1xf32>
    %273 = arith.subf %271, %272 : vector<4x1xf32>
    %cst_151 = arith.constant 0.000000e+00 : f32
    %274 = vector.broadcast %cst_151 : f32 to vector<4x1xf32>
    %275 = arith.maximumf %273, %274 : vector<4x1xf32>
    %276 = vector.broadcast %266 : vector<4x1xf32> to vector<4x256xf32>
    %277 = arith.subf %262, %276 : vector<4x256xf32>
    %cst_152 = arith.constant 9.99999974E-6 : f32
    %278 = vector.broadcast %cst_152 : f32 to vector<4x1xf32>
    %279 = arith.addf %275, %278 : vector<4x1xf32>
    %280 = math.rsqrt %279 : vector<4x1xf32>
    %281 = vector.broadcast %280 : vector<4x1xf32> to vector<4x256xf32>
    %282 = arith.mulf %277, %281 : vector<4x256xf32>
    %cst_153 = arith.constant 0.000000e+00 : f32
    %283 = vector.broadcast %cst_153 : f32 to vector<4x256xf32>
    %284 = arith.maximumf %282, %283 : vector<4x256xf32>
    %c16_i32_154 = arith.constant 16 : i32
    %285 = tpu.dynamic_rotate %284 by %c16_i32_154 dim 1 : vector<4x256xf32>, i32 -> vector<4x256xf32>
    %c240_i32_155 = arith.constant 240 : i32
    %286 = tpu.dynamic_rotate %284 by %c240_i32_155 dim 1 : vector<4x256xf32>, i32 -> vector<4x256xf32>
    %287 = vector.shape_cast %7 : vector<1x256xi1> to vector<1x256xi1>
    %288 = vector.broadcast %287 : vector<1x256xi1> to vector<4x256xi1>
    %289 = arith.select %288, %286, %285 : vector<4x256xi1>, vector<4x256xf32>
    %290 = vector.shape_cast %9 : vector<1x256xi1> to vector<1x256xi1>
    %291 = vector.broadcast %290 : vector<1x256xi1> to vector<4x256xi1>
    %292 = arith.select %291, %285, %286 : vector<4x256xi1>, vector<4x256xf32>
    %c1_i32_156 = arith.constant 1 : i32
    %293 = tpu.dynamic_rotate %289 by %c1_i32_156 dim 1 : vector<4x256xf32>, i32 -> vector<4x256xf32>
    %c255_i32_157 = arith.constant 255 : i32
    %294 = tpu.dynamic_rotate %289 by %c255_i32_157 dim 1 : vector<4x256xf32>, i32 -> vector<4x256xf32>
    %295 = vector.shape_cast %3 : vector<1x256xi1> to vector<1x256xi1>
    %296 = vector.broadcast %295 : vector<1x256xi1> to vector<4x256xi1>
    %297 = arith.select %296, %294, %293 : vector<4x256xi1>, vector<4x256xf32>
    %298 = vector.shape_cast %5 : vector<1x256xi1> to vector<1x256xi1>
    %299 = vector.broadcast %298 : vector<1x256xi1> to vector<4x256xi1>
    %300 = arith.select %299, %293, %294 : vector<4x256xi1>, vector<4x256xf32>
    %c0_158 = arith.constant 0 : index
    %c0_159 = arith.constant 0 : index
    %c0_160 = arith.constant 0 : index
    %301 = vector.load %arg3[%c0_158, %c0_159, %c0_160] : memref<9x4x4xf32, #tpu.memory_space<vmem>>, vector<1x4x4xf32>
    %302 = vector.shape_cast %301 : vector<1x4x4xf32> to vector<4x4xf32>
    %cst_161 = arith.constant dense<0.000000e+00> : vector<4x256xf32>
    %303 = tpu.matmul %302, %297, %cst_161 {dimension_numbers = #tpu.dot_dimension_numbers<[1], [0], [0], [1], [0, 0, 1, 1], [], []>} : vector<4x4xf32>, vector<4x256xf32>, vector<4x256xf32> -> vector<4x256xf32>
    %c1_162 = arith.constant 1 : index
    %c0_163 = arith.constant 0 : index
    %c0_164 = arith.constant 0 : index
    %304 = vector.load %arg3[%c1_162, %c0_163, %c0_164] : memref<9x4x4xf32, #tpu.memory_space<vmem>>, vector<1x4x4xf32>
    %305 = vector.shape_cast %304 : vector<1x4x4xf32> to vector<4x4xf32>
    %cst_165 = arith.constant dense<0.000000e+00> : vector<4x256xf32>
    %306 = tpu.matmul %305, %289, %cst_165 {dimension_numbers = #tpu.dot_dimension_numbers<[1], [0], [0], [1], [0, 0, 1, 1], [], []>} : vector<4x4xf32>, vector<4x256xf32>, vector<4x256xf32> -> vector<4x256xf32>
    %c2_166 = arith.constant 2 : index
    %c0_167 = arith.constant 0 : index
    %c0_168 = arith.constant 0 : index
    %307 = vector.load %arg3[%c2_166, %c0_167, %c0_168] : memref<9x4x4xf32, #tpu.memory_space<vmem>>, vector<1x4x4xf32>
    %308 = vector.shape_cast %307 : vector<1x4x4xf32> to vector<4x4xf32>
    %cst_169 = arith.constant dense<0.000000e+00> : vector<4x256xf32>
    %309 = tpu.matmul %308, %300, %cst_169 {dimension_numbers = #tpu.dot_dimension_numbers<[1], [0], [0], [1], [0, 0, 1, 1], [], []>} : vector<4x4xf32>, vector<4x256xf32>, vector<4x256xf32> -> vector<4x256xf32>
    %310 = arith.addf %303, %306 : vector<4x256xf32>
    %311 = arith.addf %310, %309 : vector<4x256xf32>
    %c1_i32_170 = arith.constant 1 : i32
    %312 = tpu.dynamic_rotate %284 by %c1_i32_170 dim 1 : vector<4x256xf32>, i32 -> vector<4x256xf32>
    %c255_i32_171 = arith.constant 255 : i32
    %313 = tpu.dynamic_rotate %284 by %c255_i32_171 dim 1 : vector<4x256xf32>, i32 -> vector<4x256xf32>
    %314 = vector.shape_cast %3 : vector<1x256xi1> to vector<1x256xi1>
    %315 = vector.broadcast %314 : vector<1x256xi1> to vector<4x256xi1>
    %316 = arith.select %315, %313, %312 : vector<4x256xi1>, vector<4x256xf32>
    %317 = vector.shape_cast %5 : vector<1x256xi1> to vector<1x256xi1>
    %318 = vector.broadcast %317 : vector<1x256xi1> to vector<4x256xi1>
    %319 = arith.select %318, %312, %313 : vector<4x256xi1>, vector<4x256xf32>
    %c3_172 = arith.constant 3 : index
    %c0_173 = arith.constant 0 : index
    %c0_174 = arith.constant 0 : index
    %320 = vector.load %arg3[%c3_172, %c0_173, %c0_174] : memref<9x4x4xf32, #tpu.memory_space<vmem>>, vector<1x4x4xf32>
    %321 = vector.shape_cast %320 : vector<1x4x4xf32> to vector<4x4xf32>
    %cst_175 = arith.constant dense<0.000000e+00> : vector<4x256xf32>
    %322 = tpu.matmul %321, %316, %cst_175 {dimension_numbers = #tpu.dot_dimension_numbers<[1], [0], [0], [1], [0, 0, 1, 1], [], []>} : vector<4x4xf32>, vector<4x256xf32>, vector<4x256xf32> -> vector<4x256xf32>
    %c4_176 = arith.constant 4 : index
    %c0_177 = arith.constant 0 : index
    %c0_178 = arith.constant 0 : index
    %323 = vector.load %arg3[%c4_176, %c0_177, %c0_178] : memref<9x4x4xf32, #tpu.memory_space<vmem>>, vector<1x4x4xf32>
    %324 = vector.shape_cast %323 : vector<1x4x4xf32> to vector<4x4xf32>
    %cst_179 = arith.constant dense<0.000000e+00> : vector<4x256xf32>
    %325 = tpu.matmul %324, %284, %cst_179 {dimension_numbers = #tpu.dot_dimension_numbers<[1], [0], [0], [1], [0, 0, 1, 1], [], []>} : vector<4x4xf32>, vector<4x256xf32>, vector<4x256xf32> -> vector<4x256xf32>
    %c5_180 = arith.constant 5 : index
    %c0_181 = arith.constant 0 : index
    %c0_182 = arith.constant 0 : index
    %326 = vector.load %arg3[%c5_180, %c0_181, %c0_182] : memref<9x4x4xf32, #tpu.memory_space<vmem>>, vector<1x4x4xf32>
    %327 = vector.shape_cast %326 : vector<1x4x4xf32> to vector<4x4xf32>
    %cst_183 = arith.constant dense<0.000000e+00> : vector<4x256xf32>
    %328 = tpu.matmul %327, %319, %cst_183 {dimension_numbers = #tpu.dot_dimension_numbers<[1], [0], [0], [1], [0, 0, 1, 1], [], []>} : vector<4x4xf32>, vector<4x256xf32>, vector<4x256xf32> -> vector<4x256xf32>
    %329 = arith.addf %311, %322 : vector<4x256xf32>
    %330 = arith.addf %329, %325 : vector<4x256xf32>
    %331 = arith.addf %330, %328 : vector<4x256xf32>
    %c1_i32_184 = arith.constant 1 : i32
    %332 = tpu.dynamic_rotate %292 by %c1_i32_184 dim 1 : vector<4x256xf32>, i32 -> vector<4x256xf32>
    %c255_i32_185 = arith.constant 255 : i32
    %333 = tpu.dynamic_rotate %292 by %c255_i32_185 dim 1 : vector<4x256xf32>, i32 -> vector<4x256xf32>
    %334 = vector.shape_cast %3 : vector<1x256xi1> to vector<1x256xi1>
    %335 = vector.broadcast %334 : vector<1x256xi1> to vector<4x256xi1>
    %336 = arith.select %335, %333, %332 : vector<4x256xi1>, vector<4x256xf32>
    %337 = vector.shape_cast %5 : vector<1x256xi1> to vector<1x256xi1>
    %338 = vector.broadcast %337 : vector<1x256xi1> to vector<4x256xi1>
    %339 = arith.select %338, %332, %333 : vector<4x256xi1>, vector<4x256xf32>
    %c6_186 = arith.constant 6 : index
    %c0_187 = arith.constant 0 : index
    %c0_188 = arith.constant 0 : index
    %340 = vector.load %arg3[%c6_186, %c0_187, %c0_188] : memref<9x4x4xf32, #tpu.memory_space<vmem>>, vector<1x4x4xf32>
    %341 = vector.shape_cast %340 : vector<1x4x4xf32> to vector<4x4xf32>
    %cst_189 = arith.constant dense<0.000000e+00> : vector<4x256xf32>
    %342 = tpu.matmul %341, %336, %cst_189 {dimension_numbers = #tpu.dot_dimension_numbers<[1], [0], [0], [1], [0, 0, 1, 1], [], []>} : vector<4x4xf32>, vector<4x256xf32>, vector<4x256xf32> -> vector<4x256xf32>
    %c7_190 = arith.constant 7 : index
    %c0_191 = arith.constant 0 : index
    %c0_192 = arith.constant 0 : index
    %343 = vector.load %arg3[%c7_190, %c0_191, %c0_192] : memref<9x4x4xf32, #tpu.memory_space<vmem>>, vector<1x4x4xf32>
    %344 = vector.shape_cast %343 : vector<1x4x4xf32> to vector<4x4xf32>
    %cst_193 = arith.constant dense<0.000000e+00> : vector<4x256xf32>
    %345 = tpu.matmul %344, %292, %cst_193 {dimension_numbers = #tpu.dot_dimension_numbers<[1], [0], [0], [1], [0, 0, 1, 1], [], []>} : vector<4x4xf32>, vector<4x256xf32>, vector<4x256xf32> -> vector<4x256xf32>
    %c8_194 = arith.constant 8 : index
    %c0_195 = arith.constant 0 : index
    %c0_196 = arith.constant 0 : index
    %346 = vector.load %arg3[%c8_194, %c0_195, %c0_196] : memref<9x4x4xf32, #tpu.memory_space<vmem>>, vector<1x4x4xf32>
    %347 = vector.shape_cast %346 : vector<1x4x4xf32> to vector<4x4xf32>
    %cst_197 = arith.constant dense<0.000000e+00> : vector<4x256xf32>
    %348 = tpu.matmul %347, %339, %cst_197 {dimension_numbers = #tpu.dot_dimension_numbers<[1], [0], [0], [1], [0, 0, 1, 1], [], []>} : vector<4x4xf32>, vector<4x256xf32>, vector<4x256xf32> -> vector<4x256xf32>
    %349 = arith.addf %331, %342 : vector<4x256xf32>
    %350 = arith.addf %349, %345 : vector<4x256xf32>
    %351 = arith.addf %350, %348 : vector<4x256xf32>
    %cst_198 = arith.constant dense<0.000000e+00> : vector<4xf32>
    %352 = vector.multi_reduction <add>, %351, %cst_198 [1] : vector<4x256xf32> to vector<4xf32>
    %353 = vector.shape_cast %352 : vector<4xf32> to vector<4x1xf32>
    %cst_199 = arith.constant 2.560000e+02 : f32
    %354 = vector.broadcast %cst_199 : f32 to vector<4x1xf32>
    %355 = arith.divf %353, %354 : vector<4x1xf32>
    %356 = arith.mulf %351, %351 : vector<4x256xf32>
    %cst_200 = arith.constant dense<0.000000e+00> : vector<4xf32>
    %357 = vector.multi_reduction <add>, %356, %cst_200 [1] : vector<4x256xf32> to vector<4xf32>
    %358 = vector.shape_cast %357 : vector<4xf32> to vector<4x1xf32>
    %cst_201 = arith.constant 2.560000e+02 : f32
    %359 = vector.broadcast %cst_201 : f32 to vector<4x1xf32>
    %360 = arith.divf %358, %359 : vector<4x1xf32>
    %361 = arith.mulf %355, %355 : vector<4x1xf32>
    %362 = arith.subf %360, %361 : vector<4x1xf32>
    %cst_202 = arith.constant 0.000000e+00 : f32
    %363 = vector.broadcast %cst_202 : f32 to vector<4x1xf32>
    %364 = arith.maximumf %362, %363 : vector<4x1xf32>
    %365 = vector.broadcast %355 : vector<4x1xf32> to vector<4x256xf32>
    %366 = arith.subf %351, %365 : vector<4x256xf32>
    %cst_203 = arith.constant 9.99999974E-6 : f32
    %367 = vector.broadcast %cst_203 : f32 to vector<4x1xf32>
    %368 = arith.addf %364, %367 : vector<4x1xf32>
    %369 = math.rsqrt %368 : vector<4x1xf32>
    %370 = vector.broadcast %369 : vector<4x1xf32> to vector<4x256xf32>
    %371 = arith.mulf %366, %370 : vector<4x256xf32>
    %c1_204 = arith.constant 1 : index
    %c0_205 = arith.constant 0 : index
    %c0_206 = arith.constant 0 : index
    %372 = vector.load %arg1[%c1_204, %c0_205, %c0_206] : memref<2x4x256xf32, #tpu.memory_space<vmem>>, vector<1x4x256xf32>
    %373 = vector.shape_cast %372 : vector<1x4x256xf32> to vector<4x256xf32>
    %374 = arith.addf %373, %371 : vector<4x256xf32>
    %c1_207 = arith.constant 1 : index
    %c0_208 = arith.constant 0 : index
    %c0_209 = arith.constant 0 : index
    %375 = vector.load %arg5[%c1_207, %c0_208, %c0_209] : memref<2x4x256xf32, #tpu.memory_space<vmem>>, vector<1x4x256xf32>
    %376 = vector.shape_cast %375 : vector<1x4x256xf32> to vector<4x256xf32>
    %377 = vector.shape_cast %374 : vector<4x256xf32> to vector<1x4x256xf32>
    tpu.vector_store %arg5[%c1_207, %c0_208, %c0_209], %377 {strides = array<i32>} : memref<2x4x256xf32, #tpu.memory_space<vmem>>, vector<1x4x256xf32>,
    return
  }
  func.func @transform_0(%arg0: i32) -> (i32, i32, i32) {
    %c0_i32 = arith.constant 0 : i32
    %c0_i32_0 = arith.constant 0 : i32
    %c0_i32_1 = arith.constant 0 : i32
    return %arg0, %c0_i32, %c0_i32_0 : i32, i32, i32
  }
  func.func @transform_1(%arg0: i32) -> (i32, i32, i32) {
    %c0_i32 = arith.constant 0 : i32
    %c0_i32_0 = arith.constant 0 : i32
    %c0_i32_1 = arith.constant 0 : i32
    %c0_i32_2 = arith.constant 0 : i32
    return %c0_i32, %c0_i32_0, %c0_i32_1 : i32, i32, i32
  }
  func.func @transform_2(%arg0: i32) -> (i32, i32, i32) {
    %c0_i32 = arith.constant 0 : i32
    %c0_i32_0 = arith.constant 0 : i32
    %c0_i32_1 = arith.constant 0 : i32
    %c0_i32_2 = arith.constant 0 : i32
    return %c0_i32, %c0_i32_0, %c0_i32_1 : i32, i32, i32
  }
  func.func @transform_3(%arg0: i32) -> (i32, i32) {
    %c0_i32 = arith.constant 0 : i32
    %c0_i32_0 = arith.constant 0 : i32
    %c0_i32_1 = arith.constant 0 : i32
    return %c0_i32, %c0_i32_0 : i32, i32
  }
  func.func @transform_4(%arg0: i32) -> (i32, i32, i32) {
    %c0_i32 = arith.constant 0 : i32
    %c0_i32_0 = arith.constant 0 : i32
    %c0_i32_1 = arith.constant 0 : i32
    return %arg0, %c0_i32, %c0_i32_0 : i32, i32, i32
  }
}

</mosaic_0001>

<bundles_post_ra>
// kernel: tpu_custom_call.1
= control target key start
LH: loop header
LB: loop body
LE: loop exit
PB: predicated region body
PF: predicated region fallthrough
CT: control target
= control target key end

     0   :  { %s3688_s17 = smov 112   ;;  %s3689_s18 = smov 16   ;;  %s4469_s0 = inlined_call_operand.vmem [shape: f32[2,4,256], index: 0, kind: input, shape index: {}]   ;;  %s4470_s1 = inlined_call_operand.vmem [shape: f32[9,4,4], index: 1, kind: input, shape index: {}]   ;;  %s4471_s2 = inlined_call_operand.vmem [shape: f32[9,4,4], index: 2, kind: input, shape index: {}]   ;;  %s4472_s3 = inlined_call_operand.vmem [shape: s32[1,256], index: 3, kind: input, shape index: {}]   ;;  %s4473_s4 = inlined_call_operand.hbm [shape: f32[2,4,256], index: 4, kind: output, shape index: {}]  }
   0x1   :  { %v3725_v0 = vld [vmem:[%s4469_s0] sm:$0xff] }
   0x2   :  { %38 = vrot.lane.b32.xlu1 %v3725_v0, %s3688_s17  ;;  %32 = vrot.lane.b32.xlu0 %v3725_v0, %s3689_s18  ;;  %v3733_v1 = vcombine.high %v3725_v0, %v3725_v0 }
   0x3   :  { %9 = vsyncpa [#allocation3], 0  ;;  %v3690_v2 = vmov 0.0   ;;  %v18_v3 = vlaneseq  ;;  %vm104_vm2 = vcmask 1043456   ;;  %v3438_v12 = vld [vmem:[%s4470_s1 + $0x4] sm:$0xf] }
   0x4   :  { %175 = vmatprep.mubr.f32.mxu0 %v3690_v2  ;;  %1014 = vmatprep.mubr.f32.mxu1 %v3690_v2  ;;  %vm100_vm3 = vcmask 31744   ;;  %s3691_s21 = smov 1   ;;  %v3766_v14 = vld [vmem:[%s4469_s0 + $0x8] sm:$0xff]  ;;  %s3692_s24 = smov 127   ;;  %v21_v19 = vld [vmem:[%s4472_s3] sm:$0x3] }
   0x5   :  { %v3741_v4 = vand.u32 127, %v18_v3  ;;  %v3773_v15 = vcombine.high %v3766_v14, %v3766_v14  ;;  %v73_v20 = vshrl.u32 %v18_v3, 7  ;;  %vm23_vm5 = vcmp.eq.s32.totalorder %v21_v19, 15  ;;  %v3442_v40 = vld [vmem:[%s4470_s1 + $0x8] sm:$0xf]  ;;  %s3694_s19 = smov [#allocation2]  }
   0x6   :  { %40 = vrot.lane.b32.xlu1 %v3733_v1, %s3688_s17  ;;  %34 = vrot.lane.b32.xlu0 %v3733_v1, %s3689_s18  ;;  %vm22_vm6 = vcmp.eq.s32.totalorder %v21_v19, 0  ;;  %v3693_v23 = vmov 0   ;;  %v97_v51 = vld [vmem:[%s4470_s1] sm:$0xf]  ;;  %v3449_v63 = vld [vmem:[%s4470_s1 + $0xc] sm:$0xf] }
   0x7   :  { %vm42_vm0 = vcmp.lt.s32.totalorder %v3741_v4, 112  ;;  %vm24_vm1 = vcmp.lt.s32.totalorder %v3741_v4, 16  ;;  %v3787_v16 = vadd.s32 128, %v3741_v4  ;;  %v74_v21 = vsub.s32 0, %v73_v20  ;;  %v3457_v19 = vld [vmem:[%s4470_s1 + $0x14] sm:$0xf] }
   0x8   :  { %v78_v22 = vsub.s32 1, %v73_v20  ;;  %v84_v24 = vsel %vm23_vm5, 1, %v3693_v23  ;;  %v71_v25 = vsel %vm22_vm6, 1, %v3693_v23  ;;  %vm61_vm7 = vcmp.lt.s32.totalorder %v3741_v4, 1 }
   0x9   :  { %vm27_vm4 = vcmp.ge.s32.totalorder %v3787_v16, 240  ;;  %v3813_v26 = vrot.slane %v84_v24, %v74_v21  ;;  %vm68_vm8 = vcmp.lt.s32.totalorder %v3741_v4, 127  ;;  %v3821_v31 = vrot.slane %v71_v25, %v74_v21 }
   0xa   :  { %v3815_v27 = vrot.slane %v84_v24, %v78_v22  ;;  %v3817_v29 = vrot.slane %v71_v25, %v78_v22  ;;  %v3461_v22 = vld [vmem:[%s4470_s1 + $0x18] sm:$0xf]  ;;  %v3509_v25 = vld [vmem:[%s4470_s1 + $0x4] sm:$0xf] }
   0xb   :  { %vm93_vm9 = vcmp.eq.s32.totalorder %v3813_v26, 1  ;;  %vm80_vm12 = vcmp.eq.s32.totalorder %v3821_v31, 1  ;;  %v3571_v31 = vld [vmem:[%s4471_s2 + $0x1c] sm:$0xf] }
   0xc   :  { %vm94_vm10 = vcmp.eq.s32.totalorder %v3815_v27, 1  ;;  %vm81_vm11 = vcmp.eq.s32.totalorder %v3817_v29, 1  ;;  %v3567_v29 = vld [vmem:[%s4471_s2 + $0x18] sm:$0xf]  ;;  %v3575_v27 = vld [vmem:[%s4471_s2 + $0x20] sm:$0xf] }
  0x74   :  { %v39_v5 = vpop.permute.xlu1 %38  ;;  %v33_v6 = vpop.permute.xlu0 %32 }
  0x78   :  { %v41_v7 = vpop.permute.xlu1 %40  ;;  %v35_v8 = vpop.permute.xlu0 %34 }
  0x79   :  { %v3747_v9 = vsel %vm42_vm0, %v39_v5, %v41_v7  ;;  %v36_v10 = vsel %vm24_vm1, %v33_v6, %v35_v8  ;;  %v37_v11 = vsel %vm24_vm1, %v35_v8, %v33_v6  ;;  %v44_v17 = vsel %vm42_vm0, %v41_v7, %v39_v5 }
  0x7a   :  { %59 = vrot.lane.b32.xlu1 %v36_v10, %s3691_s21  ;;  %3439 = vmatprep.subr.msk.mxu0 %vm104_vm2, %v36_v10  ;;  %v49_v13 = vsel %vm24_vm1, %v3747_v9, %v37_v11  ;;  %v3800_v18 = vsel %vm27_vm4, %v36_v10, %v44_v17 }
  0x7b   :  { %57 = vrot.lane.b32.xlu0 %v49_v13, %s3691_s21  ;;  %3440 = vmatpush1.msk.msra.mxu0 %vm104_vm2, %v49_v13 }
  0x7c   :  { %3441 = vmatmul.mubr.msk.f32.vlgmr.msra.gmra.mrb[0].mxu0 %vm100_vm3, %v3438_v12 }
  0x7d   :  { %257 = vmatprep.mubr.f32.mxu0 %v3690_v2 }
  0x7e   :  { %66 = vrot.lane.b32.xlu1 %v36_v10, %s3692_s24 }
  0x7f   :  { %64 = vrot.lane.b32.xlu0 %v49_v13, %s3692_s24 }
  0x82   :  { %1757 = vrot.lane.b32.xlu1 %v3773_v15, %s3689_s18 }
  0x83   :  { %1755 = vrot.lane.b32.xlu0 %v3766_v14, %s3689_s18 }
  0x86   :  { %1763 = vrot.lane.b32.xlu1 %v3773_v15, %s3688_s17 }
  0x87   :  { %1761 = vrot.lane.b32.xlu0 %v3766_v14, %s3688_s17 }
  0x8a   :  { %348 = vrot.lane.b32.xlu1 %v3733_v1, %s3691_s21 }
  0x8b   :  { %346 = vrot.lane.b32.xlu0 %v3725_v0, %s3691_s21 }
  0x8e   :  { %354 = vrot.lane.b32.xlu1 %v3733_v1, %s3692_s24 }
  0x8f   :  { %352 = vrot.lane.b32.xlu0 %v3725_v0, %s3692_s24 }
  0x92   :  { %614 = vrot.lane.b32.xlu1 %v3800_v18, %s3691_s21 }
  0x93   :  { %612 = vrot.lane.b32.xlu0 %v3747_v9, %s3691_s21 }
  0x96   :  { %620 = vrot.lane.b32.xlu1 %v3800_v18, %s3692_s24 }
  0x97   :  { %618 = vrot.lane.b32.xlu0 %v3747_v9, %s3692_s24 }
  0xec   :  { %v60_v28 = vpop.permute.xlu1 %59 }
  0xed   :  { %v58_v30 = vpop.permute.xlu0 %57 }
  0xee   :  { %v62_v34 = vsel %vm61_vm7, %v58_v30, %v60_v28  ;;  %v63_v35 = vsel %vm61_vm7, %v60_v28, %v58_v30 }
  0xf0   :  { %v67_v32 = vpop.permute.xlu1 %66 }
  0xf1   :  { %v65_v33 = vpop.permute.xlu0 %64 }
  0xf2   :  { %v69_v36 = vsel %vm68_vm8, %v65_v33, %v67_v32  ;;  %v70_v37 = vsel %vm68_vm8, %v67_v32, %v65_v33 }
  0xf3   :  { %v95_v38 = vsel %vm93_vm9, %v63_v35, %v69_v36  ;;  %v96_v39 = vsel %vm94_vm10, %v62_v34, %v70_v37  ;;  %v83_v43 = vsel %vm81_vm11, %v70_v37, %v62_v34  ;;  %v82_v44 = vsel %vm80_vm12, %v69_v36, %v63_v35 }
  0xf4   :  { %v1758_v41 = vpop.permute.xlu1 %1757  ;;  %3443 = vmatprep.subr.msk.mxu0 %vm104_vm2, %v96_v39 }
  0xf5   :  { %v1756_v42 = vpop.permute.xlu0 %1755  ;;  %3444 = vmatpush1.msk.msra.mxu0 %vm104_vm2, %v95_v38 }
  0xf6   :  { %v3850_v45 = vsel %vm24_vm1, %v1756_v42, %v1758_v41  ;;  %3445 = vmatmul.mubr.msk.f32.vlgmr.msra.gmra.mrb[0].mxu0 %vm100_vm3, %v3442_v40  ;;  %3446 = vmatprep.subr.msk.mxu0 %vm104_vm2, %v83_v43  ;;  %v1760_v48 = vsel %vm24_vm1, %v1758_v41, %v1756_v42  ;;  %v3513_v41 = vld [vmem:[%s4470_s1 + $0x8] sm:$0xf] }
  0xf7   :  { %3447 = vmatpush1.msk.msra.mxu0 %vm104_vm2, %v82_v44  ;;  %1773 = vrot.lane.b32.xlu1 %v3850_v45, %s3691_s21 }
  0xf8   :  { %v1764_v46 = vpop.permute.xlu1 %1763  ;;  %337 = vmatprep.mubr.f32.mxu0 %v3690_v2 }
  0xf9   :  { %v1762_v47 = vpop.permute.xlu0 %1761 }
  0xfa   :  { %v3862_v49 = vsel %vm42_vm0, %v1762_v47, %v1764_v46  ;;  %v1766_v60 = vsel %vm42_vm0, %v1764_v46, %v1762_v47 }
  0xfb   :  { %1779 = vrot.lane.b32.xlu1 %v3850_v45, %s3692_s24  ;;  %v3869_v50 = vsel %vm24_vm1, %v3862_v49, %v1760_v48  ;;  %v3911_v6 = vsel %vm27_vm4, %v3850_v45, %v1766_v60  ;;  %v3524_v60 = vld [vmem:[%s4470_s1 + $0x10] sm:$0xf] }
  0xfc   :  { %1771 = vrot.lane.b32.xlu0 %v3869_v50, %s3691_s21  ;;  %v349_v52 = vpop.permute.xlu1 %348 }
  0xfd   :  { %v347_v53 = vpop.permute.xlu0 %346 }
  0xfe   :  { %3448 = vmatmul.mubr.msk.f32.vlgmr.msra.gmra.mrb[0].mxu0 %vm100_vm3, %v97_v51  ;;  %v350_v56 = vsel %vm61_vm7, %v347_v53, %v349_v52  ;;  %v351_v57 = vsel %vm61_vm7, %v349_v52, %v347_v53  ;;  %v1787_v52 = vld [vmem:[%s4470_s1] sm:$0xf] }
  0xff   :  { %2034 = vrot.lane.b32.xlu1 %v3773_v15, %s3691_s21  ;;  %437 = vmatprep.mubr.f32.mxu0 %v3690_v2 }
 0x100   :  { %1777 = vrot.lane.b32.xlu0 %v3869_v50, %s3692_s24  ;;  %v355_v54 = vpop.permute.xlu1 %354 }
 0x101   :  { %v353_v55 = vpop.permute.xlu0 %352 }
 0x102   :  { %v356_v58 = vsel %vm68_vm8, %v353_v55, %v355_v54  ;;  %v357_v59 = vsel %vm68_vm8, %v355_v54, %v353_v55 }
 0x103   :  { %v358_v61 = vsel %vm80_vm12, %v356_v58, %v351_v57  ;;  %2040 = vrot.lane.b32.xlu1 %v3773_v15, %s3692_s24  ;;  %v359_v62 = vsel %vm81_vm11, %v357_v59, %v350_v56  ;;  %v361_v7 = vsel %vm94_vm10, %v350_v56, %v357_v59  ;;  %v360_v11 = vsel %vm93_vm9, %v351_v57, %v356_v58  ;;  %v3520_v56 = vld [vmem:[%s4470_s1 + $0xc] sm:$0xf] }
 0x104   :  { %2032 = vrot.lane.b32.xlu0 %v3766_v14, %s3691_s21  ;;  %3450 = vmatprep.subr.msk.mxu0 %vm104_vm2, %v359_v62  ;;  %v615_v3 = vpop.permute.xlu1 %614 }
 0x105   :  { %v613_v5 = vpop.permute.xlu0 %612  ;;  %3451 = vmatpush1.msk.msra.mxu0 %vm104_vm2, %v358_v61 }
 0x106   :  { %3452 = vmatmul.mubr.msk.f32.vlgmr.msra.gmra.mrb[0].mxu0 %vm100_vm3, %v3449_v63  ;;  %3454 = vmatprep.subr.msk.mxu0 %vm104_vm2, %v3733_v1  ;;  %v616_v12 = vsel %vm61_vm7, %v613_v5, %v615_v3  ;;  %v617_v20 = vsel %vm61_vm7, %v615_v3, %v613_v5  ;;  %v3528_v5 = vld [vmem:[%s4470_s1 + $0x14] sm:$0xf] }
 0x107   :  { %3455 = vmatpush1.msk.msra.mxu0 %vm104_vm2, %v3725_v0  ;;  %2297 = vrot.lane.b32.xlu1 %v3911_v6, %s3691_s21  ;;  %v3453_v0 = vld [vmem:[%s4470_s1 + $0x10] sm:$0xf] }
 0x108   :  { %2038 = vrot.lane.b32.xlu0 %v3766_v14, %s3692_s24  ;;  %3458 = vmatprep.subr.msk.mxu0 %vm104_vm2, %v361_v7  ;;  %v621_v1 = vpop.permute.xlu1 %620 }
 0x109   :  { %v619_v8 = vpop.permute.xlu0 %618  ;;  %517 = vmatprep.mubr.f32.mxu0 %v3690_v2 }
 0x10a   :  { %v623_v10 = vsel %vm68_vm8, %v621_v1, %v619_v8  ;;  %v622_v17 = vsel %vm68_vm8, %v619_v8, %v621_v1  ;;  %v3532_v8 = vld [vmem:[%s4470_s1 + $0x18] sm:$0xf] }
 0x10b   :  { %2303 = vrot.lane.b32.xlu1 %v3911_v6, %s3692_s24  ;;  %v625_v13 = vsel %vm81_vm11, %v623_v10, %v616_v12  ;;  %v624_v21 = vsel %vm80_vm12, %v622_v17, %v617_v20  ;;  %v627_v23 = vsel %vm94_vm10, %v616_v12, %v623_v10  ;;  %v626_v24 = vsel %vm93_vm9, %v617_v20, %v622_v17 }
 0x10c   :  { %2295 = vrot.lane.b32.xlu0 %v3862_v49, %s3691_s21 }
 0x10e   :  { %3456 = vmatmul.mubr.msk.f32.vlgmr.msra.gmra.mrb[0].mxu0 %vm100_vm3, %v3453_v0 }
 0x10f   :  { %3459 = vmatpush1.msk.msra.mxu0 %vm104_vm2, %v360_v11  ;;  %599 = vmatprep.mubr.f32.mxu0 %v3690_v2 }
 0x110   :  { %3462 = vmatprep.subr.msk.mxu0 %vm104_vm2, %v625_v13  ;;  %2301 = vrot.lane.b32.xlu0 %v3862_v49, %s3692_s24 }
 0x116   :  { %3460 = vmatmul.mubr.msk.f32.vlgmr.msra.gmra.mrb[0].mxu0 %vm100_vm3, %v3457_v19 }
 0x117   :  { %3463 = vmatpush1.msk.msra.mxu0 %vm104_vm2, %v624_v21  ;;  %703 = vmatprep.mubr.f32.mxu0 %v3690_v2 }
 0x118   :  { %3466 = vmatprep.subr.msk.mxu0 %vm104_vm2, %v3800_v18  ;;  %v3465_v18 = vld [vmem:[%s4470_s1 + $0x1c] sm:$0xf] }
 0x11e   :  { %3464 = vmatmul.mubr.msk.f32.vlgmr.msra.gmra.mrb[0].mxu0 %vm100_vm3, %v3461_v22 }
 0x11f   :  { %3467 = vmatpush1.msk.msra.mxu0 %vm104_vm2, %v3747_v9  ;;  %785 = vmatprep.mubr.f32.mxu0 %v3690_v2  ;;  %v3469_v9 = vld [vmem:[%s4470_s1 + $0x20] sm:$0xf] }
 0x120   :  { %3470 = vmatprep.subr.msk.mxu0 %vm104_vm2, %v627_v23 }
 0x126   :  { %3468 = vmatmul.mubr.msk.f32.vlgmr.msra.gmra.mrb[0].mxu0 %vm100_vm3, %v3465_v18 }
 0x127   :  { %3471 = vmatpush1.msk.msra.mxu0 %vm104_vm2, %v626_v24  ;;  %867 = vmatprep.mubr.f32.mxu0 %v3690_v2 }
 0x128   :  { %3510 = vmatprep.subr.msk.mxu0 %vm104_vm2, %v3850_v45 }
 0x12e   :  { %3472 = vmatmul.mubr.msk.f32.vlgmr.msra.gmra.mrb[0].mxu0 %vm100_vm3, %v3469_v9 }
 0x12f   :  { %3511 = vmatpush1.msk.msra.mxu0 %vm104_vm2, %v3869_v50  ;;  %1862 = vmatprep.mubr.f32.mxu0 %v3690_v2 }
 0x132   :  { %3512 = vmatmul.mubr.msk.f32.vlgmr.msra.gmra.mrb[2].mxu0 %vm100_vm3, %v3509_v25 }
 0x133   :  { %1943 = vmatprep.mubr.f32.mxu0 %v3690_v2 }
 0x169   :  { %v1774_v28 = vpop.permute.xlu1 %1773 }
 0x16d   :  { %v1780_v30 = vpop.permute.xlu1 %1779 }
 0x16e   :  { %v1772_v32 = vpop.permute.xlu0 %1771 }
 0x16f   :  { %v1775_v34 = vsel %vm61_vm7, %v1772_v32, %v1774_v28  ;;  %v1776_v35 = vsel %vm61_vm7, %v1774_v28, %v1772_v32 }
 0x171   :  { %v2035_v38 = vpop.permute.xlu1 %2034 }
 0x172   :  { %v1778_v33 = vpop.permute.xlu0 %1777 }
 0x173   :  { %v1781_v36 = vsel %vm68_vm8, %v1778_v33, %v1780_v30  ;;  %v1782_v37 = vsel %vm68_vm8, %v1780_v30, %v1778_v33 }
 0x174   :  { %v1785_v39 = vsel %vm93_vm9, %v1776_v35, %v1781_v36  ;;  %v1786_v40 = vsel %vm94_vm10, %v1775_v34, %v1782_v37  ;;  %v1784_v43 = vsel %vm81_vm11, %v1782_v37, %v1775_v34  ;;  %v1783_v44 = vsel %vm80_vm12, %v1781_v36, %v1776_v35 }
 0x175   :  { %3514 = vmatprep.subr.msk.mxu0 %vm104_vm2, %v1786_v40  ;;  %v2041_v46 = vpop.permute.xlu1 %2040 }
 0x176   :  { %v2033_v42 = vpop.permute.xlu0 %2032  ;;  %3515 = vmatpush1.msk.msra.mxu0 %vm104_vm2, %v1785_v39 }
 0x177   :  { %3516 = vmatmul.mubr.msk.f32.vlgmr.msra.gmra.mrb[2].mxu0 %vm100_vm3, %v3513_v41  ;;  %3517 = vmatprep.subr.msk.mxu0 %vm104_vm2, %v1784_v43  ;;  %v2036_v45 = vsel %vm61_vm7, %v2033_v42, %v2035_v38  ;;  %v2037_v47 = vsel %vm61_vm7, %v2035_v38, %v2033_v42 }
 0x178   :  { %3518 = vmatpush1.msk.msra.mxu0 %vm104_vm2, %v1783_v44  ;;  %2023 = vmatprep.mubr.f32.mxu0 %v3690_v2 }
 0x179   :  { %v2298_v57 = vpop.permute.xlu1 %2297 }
 0x17a   :  { %v2039_v48 = vpop.permute.xlu0 %2038 }
 0x17b   :  { %v2042_v50 = vsel %vm68_vm8, %v2039_v48, %v2041_v46  ;;  %v2043_v51 = vsel %vm68_vm8, %v2041_v46, %v2039_v48 }
 0x17c   :  { %v2045_v53 = vsel %vm81_vm11, %v2043_v51, %v2036_v45  ;;  %v2044_v54 = vsel %vm80_vm12, %v2042_v50, %v2037_v47  ;;  %v2047_v58 = vsel %vm94_vm10, %v2036_v45, %v2043_v51  ;;  %v2046_v62 = vsel %vm93_vm9, %v2037_v47, %v2042_v50 }
 0x17d   :  { %3521 = vmatprep.subr.msk.mxu0 %vm104_vm2, %v2045_v53 }
 0x17e   :  { %v2296_v55 = vpop.permute.xlu0 %2295 }
 0x17f   :  { %3519 = vmatmul.mubr.msk.f32.vlgmr.msra.gmra.mrb[2].mxu0 %vm100_vm3, %v1787_v52  ;;  %v2300_v7 = vsel %vm61_vm7, %v2298_v57, %v2296_v55 }
 0x180   :  { %3522 = vmatpush1.msk.msra.mxu0 %vm104_vm2, %v2044_v54  ;;  %2122 = vmatprep.mubr.f32.mxu0 %v3690_v2 }
 0x181   :  { %3525 = vmatprep.subr.msk.mxu0 %vm104_vm2, %v3773_v15  ;;  %v2304_v15 = vpop.permute.xlu1 %2303 }
 0x182   :  { %v2302_v59 = vpop.permute.xlu0 %2301 }
 0x183   :  { %v2306_v61 = vsel %vm68_vm8, %v2304_v15, %v2302_v59  ;;  %v2305_v3 = vsel %vm68_vm8, %v2302_v59, %v2304_v15 }
 0x184   :  { %v2307_v1 = vsel %vm80_vm12, %v2305_v3, %v2300_v7  ;;  %v2309_v10 = vsel %vm93_vm9, %v2300_v7, %v2305_v3  ;;  %v3473_v7 = vld [vmem:[%s4471_s2 + $0x4] sm:$0xf] }
 0x187   :  { %3523 = vmatmul.mubr.msk.f32.vlgmr.msra.gmra.mrb[2].mxu0 %vm100_vm3, %v3520_v56 }
 0x188   :  { %3526 = vmatpush1.msk.msra.mxu0 %vm104_vm2, %v3766_v14  ;;  %2201 = vmatprep.mubr.f32.mxu0 %v3690_v2  ;;  %v2299_v14 = vsel %vm61_vm7, %v2296_v55, %v2298_v57 }
 0x189   :  { %3529 = vmatprep.subr.msk.mxu0 %vm104_vm2, %v2047_v58  ;;  %v2308_v63 = vsel %vm81_vm11, %v2306_v61, %v2299_v14  ;;  %v2310_v0 = vsel %vm94_vm10, %v2299_v14, %v2306_v61 }
 0x18f   :  { %3527 = vmatmul.mubr.msk.f32.vlgmr.msra.gmra.mrb[2].mxu0 %vm100_vm3, %v3524_v60 }
 0x190   :  { %3530 = vmatpush1.msk.msra.mxu0 %vm104_vm2, %v2046_v62  ;;  %2282 = vmatprep.mubr.f32.mxu0 %v3690_v2 }
 0x191   :  { %3533 = vmatprep.subr.msk.mxu0 %vm104_vm2, %v2308_v63 }
 0x197   :  { %3531 = vmatmul.mubr.msk.f32.vlgmr.msra.gmra.mrb[2].mxu0 %vm100_vm3, %v3528_v5 }
 0x198   :  { %3534 = vmatpush1.msk.msra.mxu0 %vm104_vm2, %v2307_v1  ;;  %2385 = vmatprep.mubr.f32.mxu0 %v3690_v2 }
 0x199   :  { %3537 = vmatprep.subr.msk.mxu0 %vm104_vm2, %v3911_v6  ;;  %v3536_v6 = vld [vmem:[%s4470_s1 + $0x1c] sm:$0xf] }
 0x19f   :  { %3535 = vmatmul.mubr.msk.f32.vlgmr.msra.gmra.mrb[2].mxu0 %vm100_vm3, %v3532_v8 }
 0x1a0   :  { %3538 = vmatpush1.msk.msra.mxu0 %vm104_vm2, %v3862_v49  ;;  %2466 = vmatprep.mubr.f32.mxu0 %v3690_v2  ;;  %v3540_v49 = vld [vmem:[%s4470_s1 + $0x20] sm:$0xf] }
 0x1a1   :  { %3541 = vmatprep.subr.msk.mxu0 %vm104_vm2, %v2310_v0 }
 0x1a7   :  { %3539 = vmatmul.mubr.msk.f32.vlgmr.msra.gmra.mrb[2].mxu0 %vm100_vm3, %v3536_v6 }
 0x1a8   :  { %3542 = vmatpush1.msk.msra.mxu0 %vm104_vm2, %v2309_v10  ;;  %2547 = vmatprep.mubr.f32.mxu0 %v3690_v2 }
 0x1af   :  { %3543 = vmatmul.mubr.msk.f32.vlgmr.msra.gmra.mrb[2].mxu0 %vm100_vm3, %v3540_v49 }
 0x201   :  { %v869_v11 = vpop.f32.mrb[0].mxu0 }
 0x202   :  { %v887_v12 = vmul.f32 %v869_v11, %v869_v11  ;;  %v871_v13 = vpop.f32.mrb[1].mxu0  ;;  %v880_v17 = vsel %vm104_vm2, %v869_v11, 0.0 }
 0x203   :  { %v888_v19 = vmul.f32 %v871_v13, %v871_v13  ;;  %v881_v20 = vsel %vm104_vm2, %v871_v13, 0.0 }
 0x204   :  { %v882_v21 = vadd.f32 %v881_v20, %v880_v17  ;;  %v889_v22 = vsel %vm104_vm2, %v887_v12, 0.0 }
 0x205   :  { %v890_v23 = vsel %vm104_vm2, %v888_v19, 0.0 }
 0x206   :  { %883 = vadd.xlane.f32.xlu0 %v882_v21  ;;  %v891_v18 = vadd.f32 %v890_v23, %v889_v22 }
 0x208   :  { %892 = vadd.xlane.f32.xlu1 %v891_v18 }
 0x282   :  { %v2549_v24 = vpop.f32.mrb[2].mxu0 }
 0x283   :  { %v2566_v9 = vmul.f32 %v2549_v24, %v2549_v24  ;;  %v2551_v25 = vpop.f32.mrb[3].mxu0  ;;  %v2560_v28 = vsel %vm104_vm2, %v2549_v24, 0.0 }
 0x284   :  { %v2561_v30 = vsel %vm104_vm2, %v2551_v25, 0.0  ;;  %v2567_v32 = vmul.f32 %v2551_v25, %v2551_v25 }
 0x285   :  { %v2562_v33 = vadd.f32 %v2561_v30, %v2560_v28  ;;  %v2568_v34 = vsel %vm104_vm2, %v2566_v9, 0.0 }
 0x286   :  { %v2569_v35 = vsel %vm104_vm2, %v2567_v32, 0.0  ;;  %v3477_v32 = vld [vmem:[%s4471_s2 + $0x8] sm:$0xf] }
 0x287   :  { %2563 = vadd.xlane.f32.xlu0 %v2562_v33  ;;  %v2570_v36 = vadd.f32 %v2569_v35, %v2568_v34 }
 0x28b   :  { %2571 = vadd.xlane.f32.xlu0 %v2570_v36 }
 0x293   :  { %v884_v37 = vpop.xlane.xlu0 %883 }
 0x294   :  { %v886_v38 = vmul.f32 0.00390625, %v884_v37 }
 0x295   :  { %v893_v39 = vpop.xlane.xlu1 %892 }
 0x296   :  { %v895_v40 = vmul.f32 %v886_v38, %v886_v38  ;;  %v894_v41 = vmul.f32 0.00390625, %v893_v39  ;;  %v898_v45 = vsub.f32 %v869_v11, %v886_v38  ;;  %v899_v46 = vsub.f32 %v871_v13, %v886_v38 }
 0x298   :  { %v896_v42 = vsub.f32 %v894_v41, %v895_v40 }
 0x29a   :  { %v897_v43 = vmax.f32 %v896_v42, 0.0 }
 0x29c   :  { %v900_v44 = vadd.f32 1e-05, %v897_v43  ;;  %v938_v43 = vld [vmem:[%s4471_s2] sm:$0xf] }
 0x29e   :  { %3654 = vrsqrt.f32 %v900_v44 }
 0x2a8   :  { %v3655_v47 = vpop.eup %3654 }
 0x2a9   :  { %v903_v48 = vmul.f32 %v3655_v47, %v899_v46  ;;  %v902_v50 = vmul.f32 %v3655_v47, %v898_v45 }
 0x2ab   :  { %v4105_v51 = vmax.f32 %v903_v48, 0.0  ;;  %v4107_v52 = vmax.f32 %v902_v50, 0.0 }
 0x2ad   :  { %908 = vrot.lane.b32.xlu0 %v4105_v51, %s3689_s18  ;;  %906 = vrot.lane.b32.xlu1 %v4107_v52, %s3689_s18 }
 0x2b1   :  { %912 = vrot.lane.b32.xlu1 %v4107_v52, %s3688_s17 }
 0x2b5   :  { %914 = vrot.lane.b32.xlu1 %v4105_v51, %s3688_s17 }
 0x314   :  { %v2564_v53 = vpop.xlane.xlu0 %2563 }
 0x315   :  { %v2565_v54 = vmul.f32 0.00390625, %v2564_v53 }
 0x317   :  { %v2574_v56 = vmul.f32 %v2565_v54, %v2565_v54  ;;  %v2577_v8 = vsub.f32 %v2549_v24, %v2565_v54  ;;  %v2578_v0 = vsub.f32 %v2551_v25, %v2565_v54 }
 0x318   :  { %v2572_v55 = vpop.xlane.xlu0 %2571 }
 0x319   :  { %v2573_v57 = vmul.f32 0.00390625, %v2572_v55 }
 0x31b   :  { %v2575_v58 = vsub.f32 %v2573_v57, %v2574_v56  ;;  %v3484_v57 = vld [vmem:[%s4471_s2 + $0xc] sm:$0xf] }
 0x31d   :  { %v2576_v59 = vmax.f32 %v2575_v58, 0.0 }
 0x31f   :  { %v2579_v15 = vadd.f32 1e-05, %v2576_v59  ;;  %v909_v60 = vpop.permute.xlu0 %908  ;;  %v907_v61 = vpop.permute.xlu1 %906 }
 0x320   :  { %v910_v62 = vsel %vm24_vm1, %v907_v61, %v909_v60  ;;  %v911_v3 = vsel %vm24_vm1, %v909_v60, %v907_v61  ;;  %v3488_v61 = vld [vmem:[%s4471_s2 + $0x10] sm:$0xf] }
 0x321   :  { %3656 = vrsqrt.f32 %v2579_v15  ;;  %924 = vrot.lane.b32.xlu1 %v910_v62, %s3691_s21  ;;  %3474 = vmatprep.subr.msk.mxu1 %vm104_vm2, %v910_v62 }
 0x323   :  { %v913_v14 = vpop.permute.xlu1 %912 }
 0x325   :  { %930 = vrot.lane.b32.xlu1 %v910_v62, %s3692_s24 }
 0x327   :  { %v915_v63 = vpop.permute.xlu1 %914 }
 0x328   :  { %v4126_v5 = vsel %vm42_vm0, %v913_v14, %v915_v63  ;;  %v917_v13 = vsel %vm42_vm0, %v915_v63, %v913_v14 }
 0x329   :  { %v918_v1 = vsel %vm24_vm1, %v4126_v5, %v911_v3  ;;  %v4163_v17 = vsel %vm27_vm4, %v910_v62, %v917_v13  ;;  %v3544_v13 = vld [vmem:[%s4471_s2 + $0x4] sm:$0xf] }
 0x32a   :  { %922 = vrot.lane.b32.xlu0 %v918_v1, %s3691_s21  ;;  %3475 = vmatpush1.msk.msra.mxu1 %vm104_vm2, %v918_v1 }
 0x32b   :  { %v3657_v6 = vpop.eup %3656  ;;  %3476 = vmatmul.mubr.msk.f32.vlgmr.msra.gmra.mrb[0].mxu1 %vm100_vm3, %v3473_v7  ;;  %v3492_v7 = vld [vmem:[%s4471_s2 + $0x14] sm:$0xf] }
 0x32c   :  { %v2582_v10 = vmul.f32 %v3657_v6, %v2578_v0  ;;  %v2581_v49 = vmul.f32 %v3657_v6, %v2577_v8  ;;  %1096 = vmatprep.mubr.f32.mxu1 %v3690_v2  ;;  %v3496_v0 = vld [vmem:[%s4471_s2 + $0x18] sm:$0xf] }
 0x32e   :  { %928 = vrot.lane.b32.xlu0 %v918_v1, %s3692_s24  ;;  %v4139_v11 = vmax.f32 %v2582_v10, 0.0  ;;  %v4143_v12 = vmax.f32 %v2581_v49, 0.0  ;;  %v3500_v10 = vld [vmem:[%s4471_s2 + $0x1c] sm:$0xf] }
 0x330   :  { %2587 = vrot.lane.b32.xlu1 %v4139_v11, %s3689_s18 }
 0x332   :  { %2585 = vrot.lane.b32.xlu0 %v4143_v12, %s3689_s18 }
 0x334   :  { %2593 = vrot.lane.b32.xlu1 %v4139_v11, %s3688_s17 }
 0x336   :  { %2591 = vrot.lane.b32.xlu0 %v4143_v12, %s3688_s17 }
 0x338   :  { %1187 = vrot.lane.b32.xlu1 %v4105_v51, %s3691_s21 }
 0x33a   :  { %1185 = vrot.lane.b32.xlu0 %v4107_v52, %s3691_s21 }
 0x33c   :  { %1193 = vrot.lane.b32.xlu1 %v4105_v51, %s3692_s24 }
 0x33e   :  { %1191 = vrot.lane.b32.xlu0 %v4107_v52, %s3692_s24 }
 0x340   :  { %1455 = vrot.lane.b32.xlu1 %v4163_v17, %s3691_s21 }
 0x342   :  { %1453 = vrot.lane.b32.xlu0 %v4126_v5, %s3691_s21 }
 0x344   :  { %1461 = vrot.lane.b32.xlu1 %v4163_v17, %s3692_s24 }
 0x346   :  { %1459 = vrot.lane.b32.xlu0 %v4126_v5, %s3692_s24 }
 0x393   :  { %v925_v19 = vpop.permute.xlu1 %924 }
 0x397   :  { %v931_v21 = vpop.permute.xlu1 %930 }
 0x39c   :  { %v923_v20 = vpop.permute.xlu0 %922 }
 0x39d   :  { %v926_v23 = vsel %vm61_vm7, %v923_v20, %v925_v19  ;;  %v927_v18 = vsel %vm61_vm7, %v925_v19, %v923_v20 }
 0x3a0   :  { %v929_v22 = vpop.permute.xlu0 %928 }
 0x3a1   :  { %v932_v24 = vsel %vm68_vm8, %v929_v22, %v931_v21  ;;  %v933_v9 = vsel %vm68_vm8, %v931_v21, %v929_v22 }
 0x3a2   :  { %v936_v25 = vsel %vm93_vm9, %v927_v18, %v932_v24  ;;  %v2588_v28 = vpop.permute.xlu1 %2587  ;;  %v937_v30 = vsel %vm94_vm10, %v926_v23, %v933_v9  ;;  %v935_v34 = vsel %vm81_vm11, %v933_v9, %v926_v23  ;;  %v934_v35 = vsel %vm80_vm12, %v932_v24, %v927_v18 }
 0x3a3   :  { %3478 = vmatprep.subr.msk.mxu1 %vm104_vm2, %v937_v30  ;;  %v3548_v30 = vld [vmem:[%s4471_s2 + $0x8] sm:$0xf] }
 0x3a4   :  { %v2586_v33 = vpop.permute.xlu0 %2585  ;;  %3479 = vmatpush1.msk.msra.mxu1 %vm104_vm2, %v936_v25 }
 0x3a5   :  { %v4196_v36 = vsel %vm24_vm1, %v2586_v33, %v2588_v28  ;;  %3480 = vmatmul.mubr.msk.f32.vlgmr.msra.gmra.mrb[0].mxu1 %vm100_vm3, %v3477_v32  ;;  %3481 = vmatprep.subr.msk.mxu1 %vm104_vm2, %v935_v34  ;;  %v2590_v39 = vsel %vm24_vm1, %v2588_v28, %v2586_v33 }
 0x3a6   :  { %3482 = vmatpush1.msk.msra.mxu1 %vm104_vm2, %v934_v35  ;;  %2603 = vrot.lane.b32.xlu1 %v4196_v36, %s3691_s21  ;;  %v2594_v37 = vpop.permute.xlu1 %2593 }
 0x3a7   :  { %1176 = vmatprep.mubr.f32.mxu1 %v3690_v2 }
 0x3a8   :  { %v2592_v38 = vpop.permute.xlu0 %2591 }
 0x3a9   :  { %v4208_v40 = vsel %vm42_vm0, %v2592_v38, %v2594_v37  ;;  %v2596_v54 = vsel %vm42_vm0, %v2594_v37, %v2592_v38 }
 0x3aa   :  { %2609 = vrot.lane.b32.xlu1 %v4196_v36, %s3692_s24  ;;  %v1188_v41 = vpop.permute.xlu1 %1187  ;;  %v4215_v42 = vsel %vm24_vm1, %v4208_v40, %v2590_v39  ;;  %v4257_v15 = vsel %vm27_vm4, %v4196_v36, %v2596_v54 }
 0x3ab   :  { %2601 = vrot.lane.b32.xlu0 %v4215_v42, %s3691_s21 }
 0x3ac   :  { %v1186_v44 = vpop.permute.xlu0 %1185 }
 0x3ad   :  { %3483 = vmatmul.mubr.msk.f32.vlgmr.msra.gmra.mrb[0].mxu1 %vm100_vm3, %v938_v43  ;;  %v1189_v47 = vsel %vm61_vm7, %v1186_v44, %v1188_v41  ;;  %v1190_v48 = vsel %vm61_vm7, %v1188_v41, %v1186_v44 }
 0x3ae   :  { %2864 = vrot.lane.b32.xlu1 %v4139_v11, %s3691_s21  ;;  %v1194_v45 = vpop.permute.xlu1 %1193  ;;  %1276 = vmatprep.mubr.f32.mxu1 %v3690_v2 }
 0x3af   :  { %2607 = vrot.lane.b32.xlu0 %v4215_v42, %s3692_s24 }
 0x3b0   :  { %v1192_v46 = vpop.permute.xlu0 %1191 }
 0x3b1   :  { %v1195_v50 = vsel %vm68_vm8, %v1192_v46, %v1194_v45  ;;  %v1196_v53 = vsel %vm68_vm8, %v1194_v45, %v1192_v46  ;;  %v3555_v46 = vld [vmem:[%s4471_s2 + $0xc] sm:$0xf] }
 0x3b2   :  { %v1197_v55 = vsel %vm80_vm12, %v1195_v50, %v1190_v48  ;;  %2870 = vrot.lane.b32.xlu1 %v4139_v11, %s3692_s24  ;;  %v1198_v56 = vsel %vm81_vm11, %v1196_v53, %v1189_v47  ;;  %v1456_v58 = vpop.permute.xlu1 %1455  ;;  %v1200_v60 = vsel %vm94_vm10, %v1189_v47, %v1196_v53  ;;  %v1199_v62 = vsel %vm93_vm9, %v1190_v48, %v1195_v50  ;;  %v3559_v53 = vld [vmem:[%s4471_s2 + $0x10] sm:$0xf] }
 0x3b3   :  { %2862 = vrot.lane.b32.xlu0 %v4143_v12, %s3691_s21  ;;  %3485 = vmatprep.subr.msk.mxu1 %vm104_vm2, %v1198_v56 }
 0x3b4   :  { %v1454_v59 = vpop.permute.xlu0 %1453  ;;  %3486 = vmatpush1.msk.msra.mxu1 %vm104_vm2, %v1197_v55 }
 0x3b5   :  { %3487 = vmatmul.mubr.msk.f32.vlgmr.msra.gmra.mrb[0].mxu1 %vm100_vm3, %v3484_v57  ;;  %3489 = vmatprep.subr.msk.mxu1 %vm104_vm2, %v4105_v51  ;;  %v1457_v14 = vsel %vm61_vm7, %v1454_v59, %v1456_v58  ;;  %v1458_v1 = vsel %vm61_vm7, %v1456_v58, %v1454_v59  ;;  %v3563_v58 = vld [vmem:[%s4471_s2 + $0x14] sm:$0xf] }
 0x3b6   :  { %3129 = vrot.lane.b32.xlu1 %v4257_v15, %s3691_s21  ;;  %3490 = vmatpush1.msk.msra.mxu1 %vm104_vm2, %v4107_v52  ;;  %v1462_v16 = vpop.permute.xlu1 %1461 }
 0x3b7   :  { %2868 = vrot.lane.b32.xlu0 %v4143_v12, %s3692_s24  ;;  %3493 = vmatprep.subr.msk.mxu1 %vm104_vm2, %v1200_v60 }
 0x3b8   :  { %v1460_v51 = vpop.permute.xlu0 %1459  ;;  %1358 = vmatprep.mubr.f32.mxu1 %v3690_v2 }
 0x3b9   :  { %v1464_v52 = vsel %vm68_vm8, %v1462_v16, %v1460_v51  ;;  %v1463_v3 = vsel %vm68_vm8, %v1460_v51, %v1462_v16 }
 0x3ba   :  { %3135 = vrot.lane.b32.xlu1 %v4257_v15, %s3692_s24  ;;  %v1466_v63 = vsel %vm81_vm11, %v1464_v52, %v1457_v14  ;;  %v1465_v8 = vsel %vm80_vm12, %v1463_v3, %v1458_v1  ;;  %v1468_v6 = vsel %vm94_vm10, %v1457_v14, %v1464_v52  ;;  %v1467_v49 = vsel %vm93_vm9, %v1458_v1, %v1463_v3 }
 0x3bb   :  { %3127 = vrot.lane.b32.xlu0 %v4208_v40, %s3691_s21  ;;  %s3427_s21 = sshll.u32 %s3694_s19, 4  ;;  %s3428_s21 = int_to_ptr.vmem [resolvable:$true] %s3427_s21 }
 0x3bc   :  { %s3664_s22 = scalar_lea.vmem %s3428_s21, 256  ;;  %p3669_p1 = scmp.lt.s32.totalorder %s3428_s21, %s3428_s21 }
 0x3bd   :  { %3491 = vmatmul.mubr.msk.f32.vlgmr.msra.gmra.mrb[0].mxu1 %vm100_vm3, %v3488_v61  ;;  %p3665_p0 = scmp.ne.s32.totalorder %s3428_s21, %s3664_s22  ;;  %p3670_p2 = scmp.lt.s32.totalorder %s3664_s22, %s3664_s22 }
 0x3be   :  { %3494 = vmatpush1.msk.msra.mxu1 %vm104_vm2, %v1199_v62  ;;  %1440 = vmatprep.mubr.f32.mxu1 %v3690_v2 }
 0x3bf   :  { %3497 = vmatprep.subr.msk.mxu1 %vm104_vm2, %v1466_v63  ;;  %3133 = vrot.lane.b32.xlu0 %v4208_v40, %s3692_s24  ;;  %p3671_p3 = por %p3670_p2, %p3669_p1 }
 0x3c1   :  { %p3672_p4 = pnand %p3671_p3, %p3665_p0 }
 0x3c5   :  { %3495 = vmatmul.mubr.msk.f32.vlgmr.msra.gmra.mrb[0].mxu1 %vm100_vm3, %v3492_v7 }
 0x3c6   :  { %3498 = vmatpush1.msk.msra.mxu1 %vm104_vm2, %v1465_v8  ;;  %1544 = vmatprep.mubr.f32.mxu1 %v3690_v2 }
 0x3c7   :  { %3501 = vmatprep.subr.msk.mxu1 %vm104_vm2, %v4163_v17 }
 0x3cd   :  { %3499 = vmatmul.mubr.msk.f32.vlgmr.msra.gmra.mrb[0].mxu1 %vm100_vm3, %v3496_v0 }
 0x3ce   :  { %3502 = vmatpush1.msk.msra.mxu1 %vm104_vm2, %v4126_v5  ;;  %1626 = vmatprep.mubr.f32.mxu1 %v3690_v2  ;;  %v3504_v5 = vld [vmem:[%s4471_s2 + $0x20] sm:$0xf] }
 0x3cf   :  { %3505 = vmatprep.subr.msk.mxu1 %vm104_vm2, %v1468_v6 }
 0x3d5   :  { %3503 = vmatmul.mubr.msk.f32.vlgmr.msra.gmra.mrb[0].mxu1 %vm100_vm3, %v3500_v10 }
 0x3d6   :  { %3506 = vmatpush1.msk.msra.mxu1 %vm104_vm2, %v1467_v49  ;;  %1708 = vmatprep.mubr.f32.mxu1 %v3690_v2 }
 0x3d7   :  { %3545 = vmatprep.subr.msk.mxu1 %vm104_vm2, %v4196_v36 }
 0x3dd   :  { %3507 = vmatmul.mubr.msk.f32.vlgmr.msra.gmra.mrb[0].mxu1 %vm100_vm3, %v3504_v5 }
 0x3de   :  { %3546 = vmatpush1.msk.msra.mxu1 %vm104_vm2, %v4215_v42  ;;  %2692 = vmatprep.mubr.f32.mxu1 %v3690_v2  ;;  %v2617_v42 = vld [vmem:[%s4471_s2] sm:$0xf] }
 0x3e1   :  { %3547 = vmatmul.mubr.msk.f32.vlgmr.msra.gmra.mrb[2].mxu1 %vm100_vm3, %v3544_v13 }
 0x3e2   :  { %2773 = vmatprep.mubr.f32.mxu1 %v3690_v2 }
 0x418   :  { %v2604_v17 = vpop.permute.xlu1 %2603 }
 0x41c   :  { %v2610_v19 = vpop.permute.xlu1 %2609 }
 0x41d   :  { %v2602_v20 = vpop.permute.xlu0 %2601 }
 0x41e   :  { %v2605_v22 = vsel %vm61_vm7, %v2602_v20, %v2604_v17  ;;  %v2606_v23 = vsel %vm61_vm7, %v2604_v17, %v2602_v20 }
 0x420   :  { %v2865_v9 = vpop.permute.xlu1 %2864 }
 0x421   :  { %v2608_v21 = vpop.permute.xlu0 %2607 }
 0x422   :  { %v2611_v18 = vsel %vm68_vm8, %v2608_v21, %v2610_v19  ;;  %v2612_v24 = vsel %vm68_vm8, %v2610_v19, %v2608_v21 }
 0x423   :  { %v2615_v25 = vsel %vm93_vm9, %v2606_v23, %v2611_v18  ;;  %v2616_v28 = vsel %vm94_vm10, %v2605_v22, %v2612_v24  ;;  %v2614_v33 = vsel %vm81_vm11, %v2612_v24, %v2605_v22  ;;  %v2613_v34 = vsel %vm80_vm12, %v2611_v18, %v2606_v23 }
 0x424   :  { %3549 = vmatprep.subr.msk.mxu1 %vm104_vm2, %v2616_v28  ;;  %v2871_v35 = vpop.permute.xlu1 %2870 }
 0x425   :  { %v2863_v32 = vpop.permute.xlu0 %2862  ;;  %3550 = vmatpush1.msk.msra.mxu1 %vm104_vm2, %v2615_v25 }
 0x426   :  { %3551 = vmatmul.mubr.msk.f32.vlgmr.msra.gmra.mrb[2].mxu1 %vm100_vm3, %v3548_v30  ;;  %3552 = vmatprep.subr.msk.mxu1 %vm104_vm2, %v2614_v33  ;;  %v2866_v37 = vsel %vm61_vm7, %v2863_v32, %v2865_v9  ;;  %v2867_v43 = vsel %vm61_vm7, %v2865_v9, %v2863_v32 }
 0x427   :  { %3553 = vmatpush1.msk.msra.mxu1 %vm104_vm2, %v2613_v34  ;;  %2853 = vmatprep.mubr.f32.mxu1 %v3690_v2  ;;  %v3662_v34 = vld [vmem:[%s4469_s0] sm:$0xff] }
 0x428   :  { %v3130_v47 = vpop.permute.xlu1 %3129 }
 0x429   :  { %v2869_v36 = vpop.permute.xlu0 %2868 }
 0x42a   :  { %v2873_v38 = vsel %vm68_vm8, %v2871_v35, %v2869_v36  ;;  %v2872_v39 = vsel %vm68_vm8, %v2869_v36, %v2871_v35 }
 0x42b   :  { %v2875_v41 = vsel %vm81_vm11, %v2873_v38, %v2866_v37  ;;  %v2874_v44 = vsel %vm80_vm12, %v2872_v39, %v2867_v43  ;;  %v2877_v48 = vsel %vm94_vm10, %v2866_v37, %v2873_v38  ;;  %v2876_v55 = vsel %vm93_vm9, %v2867_v43, %v2872_v39 }
 0x42c   :  { %3556 = vmatprep.subr.msk.mxu1 %vm104_vm2, %v2875_v41 }
 0x42d   :  { %v3128_v45 = vpop.permute.xlu0 %3127 }
 0x42e   :  { %3554 = vmatmul.mubr.msk.f32.vlgmr.msra.gmra.mrb[2].mxu1 %vm100_vm3, %v2617_v42  ;;  %v3132_v59 = vsel %vm61_vm7, %v3130_v47, %v3128_v45 }
 0x42f   :  { %3557 = vmatpush1.msk.msra.mxu1 %vm104_vm2, %v2874_v44  ;;  %2952 = vmatprep.mubr.f32.mxu1 %v3690_v2 }
 0x430   :  { %3560 = vmatprep.subr.msk.mxu1 %vm104_vm2, %v4139_v11  ;;  %v3136_v11 = vpop.permute.xlu1 %3135 }
 0x431   :  { %v3134_v50 = vpop.permute.xlu0 %3133 }
 0x432   :  { %v3138_v54 = vsel %vm68_vm8, %v3136_v11, %v3134_v50  ;;  %v3137_v57 = vsel %vm68_vm8, %v3134_v50, %v3136_v11 }
 0x433   :  { %v3139_v60 = vsel %vm80_vm12, %v3137_v57, %v3132_v59 }
 0x436   :  { %3558 = vmatmul.mubr.msk.f32.vlgmr.msra.gmra.mrb[2].mxu1 %vm100_vm3, %v3555_v46 }
 0x437   :  { %3561 = vmatpush1.msk.msra.mxu1 %vm104_vm2, %v4143_v12  ;;  %3033 = vmatprep.mubr.f32.mxu1 %v3690_v2  ;;  %v3131_v12 = vsel %vm61_vm7, %v3128_v45, %v3130_v47 }
 0x438   :  { %3564 = vmatprep.subr.msk.mxu1 %vm104_vm2, %v2877_v48  ;;  %v3140_v56 = vsel %vm81_vm11, %v3138_v54, %v3131_v12  ;;  %v3142_v4 = vsel %vm94_vm10, %v3131_v12, %v3138_v54 }
 0x43e   :  { %3562 = vmatmul.mubr.msk.f32.vlgmr.msra.gmra.mrb[2].mxu1 %vm100_vm3, %v3559_v53  ;;  %v3663_v53 = vld [vmem:[%s4469_s0 + $0x8] sm:$0xff] }
 0x43f   :  { %3565 = vmatpush1.msk.msra.mxu1 %vm104_vm2, %v2876_v55  ;;  %3114 = vmatprep.mubr.f32.mxu1 %v3690_v2 }
 0x440   :  { %3568 = vmatprep.subr.msk.mxu1 %vm104_vm2, %v3140_v56 }
 0x446   :  { %3566 = vmatmul.mubr.msk.f32.vlgmr.msra.gmra.mrb[2].mxu1 %vm100_vm3, %v3563_v58 }
 0x447   :  { %3569 = vmatpush1.msk.msra.mxu1 %vm104_vm2, %v3139_v60  ;;  %3217 = vmatprep.mubr.f32.mxu1 %v3690_v2 }
 0x448   :  { %3572 = vmatprep.subr.msk.mxu1 %vm104_vm2, %v4257_v15  ;;  %v3141_v15 = vsel %vm93_vm9, %v3132_v59, %v3137_v57 }
 0x44e   :  { %3570 = vmatmul.mubr.msk.f32.vlgmr.msra.gmra.mrb[2].mxu1 %vm100_vm3, %v3567_v29 }
 0x44f   :  { %3573 = vmatpush1.msk.msra.mxu1 %vm104_vm2, %v4208_v40  ;;  %3298 = vmatprep.mubr.f32.mxu1 %v3690_v2 }
 0x450   :  { %3576 = vmatprep.subr.msk.mxu1 %vm104_vm2, %v3142_v4 }
 0x456   :  { %3574 = vmatmul.mubr.msk.f32.vlgmr.msra.gmra.mrb[2].mxu1 %vm100_vm3, %v3571_v31 }
 0x457   :  { %3577 = vmatpush1.msk.msra.mxu1 %vm104_vm2, %v3141_v15  ;;  %3379 = vmatprep.mubr.f32.mxu1 %v3690_v2 }
 0x45e   :  { %3578 = vmatmul.mubr.msk.f32.vlgmr.msra.gmra.mrb[2].mxu1 %vm100_vm3, %v3575_v27 }
 0x4b0   :  { %v1710_v40 = vpop.f32.mrb[0].mxu1 }
 0x4b1   :  { %v1727_v51 = vmul.f32 %v1710_v40, %v1710_v40  ;;  %v1712_v16 = vpop.f32.mrb[1].mxu1  ;;  %v1721_v61 = vsel %vm104_vm2, %v1710_v40, 0.0 }
 0x4b2   :  { %v1728_v52 = vmul.f32 %v1712_v16, %v1712_v16  ;;  %v1722_v26 = vsel %vm104_vm2, %v1712_v16, 0.0 }
 0x4b3   :  { %v1723_v62 = vadd.f32 %v1722_v26, %v1721_v61  ;;  %v1729_v14 = vsel %vm104_vm2, %v1727_v51, 0.0 }
 0x4b4   :  { %v1730_v63 = vsel %vm104_vm2, %v1728_v52, 0.0 }
 0x4b5   :  { %1724 = vadd.xlane.f32.xlu0 %v1723_v62  ;;  %v1731_v2 = vadd.f32 %v1730_v63, %v1729_v14 }
 0x4b9   :  { %1732 = vadd.xlane.f32.xlu0 %v1731_v2 }
 0x531   :  { %v3381_v3 = vpop.f32.mrb[2].mxu1 }
 0x532   :  { %v3398_v7 = vmul.f32 %v3381_v3, %v3381_v3  ;;  %v3383_v1 = vpop.f32.mrb[3].mxu1  ;;  %v3392_v8 = vsel %vm104_vm2, %v3381_v3, 0.0 }
 0x533   :  { %v3393_v0 = vsel %vm104_vm2, %v3383_v1, 0.0  ;;  %v3399_v6 = vmul.f32 %v3383_v1, %v3383_v1 }
 0x534   :  { %v3394_v10 = vadd.f32 %v3393_v0, %v3392_v8  ;;  %v3400_v49 = vsel %vm104_vm2, %v3398_v7, 0.0 }
 0x535   :  { %v3401_v5 = vsel %vm104_vm2, %v3399_v6, 0.0 }
 0x536   :  { %3395 = vadd.xlane.f32.xlu1 %v3394_v10  ;;  %v3402_v13 = vadd.f32 %v3401_v5, %v3400_v49 }
 0x538   :  { %3403 = vadd.xlane.f32.xlu0 %v3402_v13 }
 0x542   :  { %v1725_v17 = vpop.xlane.xlu0 %1724 }
 0x543   :  { %v1726_v19 = vmul.f32 0.00390625, %v1725_v17 }
 0x545   :  { %v1735_v21 = vmul.f32 %v1726_v19, %v1726_v19  ;;  %v1738_v9 = vsub.f32 %v1710_v40, %v1726_v19  ;;  %v1739_v25 = vsub.f32 %v1712_v16, %v1726_v19 }
 0x546   :  { %v1733_v20 = vpop.xlane.xlu0 %1732 }
 0x547   :  { %v1734_v22 = vmul.f32 0.00390625, %v1733_v20 }
 0x549   :  { %v1736_v23 = vsub.f32 %v1734_v22, %v1735_v21 }
 0x54b   :  { %v1737_v18 = vmax.f32 %v1736_v23, 0.0 }
 0x54d   :  { %v1740_v24 = vadd.f32 1e-05, %v1737_v18 }
 0x54f   :  { %3658 = vrsqrt.f32 %v1740_v24 }
 0x559   :  { %v3659_v28 = vpop.eup %3658 }
 0x55a   :  { %v1742_v30 = vmul.f32 %v3659_v28, %v1738_v9  ;;  %v1743_v32 = vmul.f32 %v3659_v28, %v1739_v25 }
 0x55c   :  { %v1746_v33 = vcombine.low %v1742_v30, %v1743_v32 }
 0x55e   :  { %v1748_v35 = vadd.f32 %v3662_v34, %v1746_v33 }
 0x560   :  { %1749 = vst [vmem:[#allocation2] sm:$0xff] %v1748_v35 }
 0x5c3   :  { %v3396_v36 = vpop.xlane.xlu1 %3395 }
 0x5c4   :  { %v3397_v37 = vmul.f32 0.00390625, %v3396_v36 }
 0x5c5   :  { %v3404_v38 = vpop.xlane.xlu0 %3403 }
 0x5c6   :  { %v3405_v39 = vmul.f32 0.00390625, %v3404_v38  ;;  %v3406_v41 = vmul.f32 %v3397_v37, %v3397_v37  ;;  %v3409_v45 = vsub.f32 %v3381_v3, %v3397_v37  ;;  %v3410_v46 = vsub.f32 %v3383_v1, %v3397_v37 }
 0x5c8   :  { %v3407_v42 = vsub.f32 %v3405_v39, %v3406_v41 }
 0x5ca   :  { %v3408_v43 = vmax.f32 %v3407_v42, 0.0 }
 0x5cc   :  { %v3411_v44 = vadd.f32 1e-05, %v3408_v43 }
 0x5ce   :  { %3660 = vrsqrt.f32 %v3411_v44 }
 0x5d8   :  { %v3661_v47 = vpop.eup %3660 }
 0x5d9   :  { %v3413_v48 = vmul.f32 %v3661_v47, %v3409_v45  ;;  %v3414_v50 = vmul.f32 %v3661_v47, %v3410_v46 }
 0x5db   :  { %v3417_v11 = vcombine.low %v3413_v48, %v3414_v50 }
 0x5dd   :  { %v3419_v54 = vadd.f32 %v3663_v53, %v3417_v11 }
 0x5df   :  { %3421 = vst [vmem:[#allocation2 + $0x8] sm:$0xff] %v3419_v54 }
 0x5e0   :  { %3675 = shalt.err (!%p3672_p4)
}
 0x5e1   :  { %s3676_s26 = scalar_lea.hbm %s4473_s4, 256 }
 0x5e2   :  { %p3677_p5 = scmp.ne.s32.totalorder %s4473_s4, %s3676_s26  ;;  %p3680_p6 = scmp.lt.u32.totalorder %s3676_s26, %s4473_s4 }
 0x5e4   :  { %p3682_p7 = pnand %p3680_p6, %p3677_p5 }
 0x5e6   :  { %3685 = shalt.err (!%p3682_p7)
}
 0x5e7   :  { %s3695_s29 = smov 128   ;;  %s3696_s30 = smov 8  }
 0x5e8   :  { %3433 = dma.vmem_to_hbm [thread:$0]  %s3428_s21, 256, %s4473_s4, [#allocation3], %s3695_s29, %s3695_s29, %s3696_s30  }
 0x5e9   :  { %3686 = dma.done.wait [#allocation3], 256  }
 0x5ea   :  { %3687 = vsyncadd [#allocation3], 4294967040 }
 0x5eb   :  { %3437 = vsyncpa [#allocation3], 1 }

// kernel: tpu_custom_call.1
= control target key start
LH: loop header
LB: loop body
LE: loop exit
PB: predicated region body
PF: predicated region fallthrough
CT: control target
= control target key end

     0   :  { %s3688_s17 = smov 112   ;;  %s3689_s18 = smov 16   ;;  %s4469_s0 = inlined_call_operand.vmem [shape: f32[2,4,256], index: 0, kind: input, shape index: {}]   ;;  %s4470_s1 = inlined_call_operand.vmem [shape: f32[9,4,4], index: 1, kind: input, shape index: {}]   ;;  %s4471_s2 = inlined_call_operand.vmem [shape: f32[9,4,4], index: 2, kind: input, shape index: {}]   ;;  %s4472_s3 = inlined_call_operand.vmem [shape: s32[1,256], index: 3, kind: input, shape index: {}]   ;;  %s4473_s4 = inlined_call_operand.hbm [shape: f32[2,4,256], index: 4, kind: output, shape index: {}]  }
   0x1   :  { %v3725_v0 = vld [vmem:[%s4469_s0] sm:$0xff] }
   0x2   :  { %38 = vrot.lane.b32.xlu1 %v3725_v0, %s3688_s17  ;;  %32 = vrot.lane.b32.xlu0 %v3725_v0, %s3689_s18  ;;  %v3733_v1 = vcombine.high %v3725_v0, %v3725_v0 }
   0x3   :  { %9 = vsyncpa [#allocation3], 0  ;;  %v3690_v2 = vmov 0.0   ;;  %v18_v3 = vlaneseq  ;;  %vm104_vm2 = vcmask 1043456   ;;  %v3438_v12 = vld [vmem:[%s4470_s1 + $0x4] sm:$0xf] }
   0x4   :  { %175 = vmatprep.mubr.f32.mxu0 %v3690_v2  ;;  %1014 = vmatprep.mubr.f32.mxu1 %v3690_v2  ;;  %vm100_vm3 = vcmask 31744   ;;  %s3691_s21 = smov 1   ;;  %v3766_v14 = vld [vmem:[%s4469_s0 + $0x8] sm:$0xff]  ;;  %s3692_s24 = smov 127   ;;  %v21_v19 = vld [vmem:[%s4472_s3] sm:$0x3] }
   0x5   :  { %v3741_v4 = vand.u32 127, %v18_v3  ;;  %v3773_v15 = vcombine.high %v3766_v14, %v3766_v14  ;;  %v73_v20 = vshrl.u32 %v18_v3, 7  ;;  %vm23_vm5 = vcmp.eq.s32.totalorder %v21_v19, 15  ;;  %v3442_v40 = vld [vmem:[%s4470_s1 + $0x8] sm:$0xf]  ;;  %s3694_s19 = smov [#allocation2]  }
   0x6   :  { %40 = vrot.lane.b32.xlu1 %v3733_v1, %s3688_s17  ;;  %34 = vrot.lane.b32.xlu0 %v3733_v1, %s3689_s18  ;;  %vm22_vm6 = vcmp.eq.s32.totalorder %v21_v19, 0  ;;  %v3693_v23 = vmov 0   ;;  %v97_v51 = vld [vmem:[%s4470_s1] sm:$0xf]  ;;  %v3449_v63 = vld [vmem:[%s4470_s1 + $0xc] sm:$0xf] }
   0x7   :  { %vm42_vm0 = vcmp.lt.s32.totalorder %v3741_v4, 112  ;;  %vm24_vm1 = vcmp.lt.s32.totalorder %v3741_v4, 16  ;;  %v3787_v16 = vadd.s32 128, %v3741_v4  ;;  %v74_v21 = vsub.s32 0, %v73_v20  ;;  %v3457_v19 = vld [vmem:[%s4470_s1 + $0x14] sm:$0xf] }
   0x8   :  { %v78_v22 = vsub.s32 1, %v73_v20  ;;  %v84_v24 = vsel %vm23_vm5, 1, %v3693_v23  ;;  %v71_v25 = vsel %vm22_vm6, 1, %v3693_v23  ;;  %vm61_vm7 = vcmp.lt.s32.totalorder %v3741_v4, 1 }
   0x9   :  { %vm27_vm4 = vcmp.ge.s32.totalorder %v3787_v16, 240  ;;  %v3813_v26 = vrot.slane %v84_v24, %v74_v21  ;;  %vm68_vm8 = vcmp.lt.s32.totalorder %v3741_v4, 127  ;;  %v3821_v31 = vrot.slane %v71_v25, %v74_v21 }
   0xa   :  { %v3815_v27 = vrot.slane %v84_v24, %v78_v22  ;;  %v3817_v29 = vrot.slane %v71_v25, %v78_v22  ;;  %v3461_v22 = vld [vmem:[%s4470_s1 + $0x18] sm:$0xf]  ;;  %v3509_v25 = vld [vmem:[%s4470_s1 + $0x4] sm:$0xf] }
   0xb   :  { %vm93_vm9 = vcmp.eq.s32.totalorder %v3813_v26, 1  ;;  %vm80_vm12 = vcmp.eq.s32.totalorder %v3821_v31, 1  ;;  %v3571_v31 = vld [vmem:[%s4471_s2 + $0x1c] sm:$0xf] }
   0xc   :  { %vm94_vm10 = vcmp.eq.s32.totalorder %v3815_v27, 1  ;;  %vm81_vm11 = vcmp.eq.s32.totalorder %v3817_v29, 1  ;;  %v3567_v29 = vld [vmem:[%s4471_s2 + $0x18] sm:$0xf]  ;;  %v3575_v27 = vld [vmem:[%s4471_s2 + $0x20] sm:$0xf] }
  0x74   :  { %v39_v5 = vpop.permute.xlu1 %38  ;;  %v33_v6 = vpop.permute.xlu0 %32 }
  0x78   :  { %v41_v7 = vpop.permute.xlu1 %40  ;;  %v35_v8 = vpop.permute.xlu0 %34 }
  0x79   :  { %v3747_v9 = vsel %vm42_vm0, %v39_v5, %v41_v7  ;;  %v36_v10 = vsel %vm24_vm1, %v33_v6, %v35_v8  ;;  %v37_v11 = vsel %vm24_vm1, %v35_v8, %v33_v6  ;;  %v44_v17 = vsel %vm42_vm0, %v41_v7, %v39_v5 }
  0x7a   :  { %59 = vrot.lane.b32.xlu1 %v36_v10, %s3691_s21  ;;  %3439 = vmatprep.subr.msk.mxu0 %vm104_vm2, %v36_v10  ;;  %v49_v13 = vsel %vm24_vm1, %v3747_v9, %v37_v11  ;;  %v3800_v18 = vsel %vm27_vm4, %v36_v10, %v44_v17 }
  0x7b   :  { %57 = vrot.lane.b32.xlu0 %v49_v13, %s3691_s21  ;;  %3440 = vmatpush1.msk.msra.mxu0 %vm104_vm2, %v49_v13 }
  0x7c   :  { %3441 = vmatmul.mubr.msk.f32.vlgmr.msra.gmra.mrb[0].mxu0 %vm100_vm3, %v3438_v12 }
  0x7d   :  { %257 = vmatprep.mubr.f32.mxu0 %v3690_v2 }
  0x7e   :  { %66 = vrot.lane.b32.xlu1 %v36_v10, %s3692_s24 }
  0x7f   :  { %64 = vrot.lane.b32.xlu0 %v49_v13, %s3692_s24 }
  0x82   :  { %1757 = vrot.lane.b32.xlu1 %v3773_v15, %s3689_s18 }
  0x83   :  { %1755 = vrot.lane.b32.xlu0 %v3766_v14, %s3689_s18 }
  0x86   :  { %1763 = vrot.lane.b32.xlu1 %v3773_v15, %s3688_s17 }
  0x87   :  { %1761 = vrot.lane.b32.xlu0 %v3766_v14, %s3688_s17 }
  0x8a   :  { %348 = vrot.lane.b32.xlu1 %v3733_v1, %s3691_s21 }
  0x8b   :  { %346 = vrot.lane.b32.xlu0 %v3725_v0, %s3691_s21 }
  0x8e   :  { %354 = vrot.lane.b32.xlu1 %v3733_v1, %s3692_s24 }
  0x8f   :  { %352 = vrot.lane.b32.xlu0 %v3725_v0, %s3692_s24 }
  0x92   :  { %614 = vrot.lane.b32.xlu1 %v3800_v18, %s3691_s21 }
  0x93   :  { %612 = vrot.lane.b32.xlu0 %v3747_v9, %s3691_s21 }
  0x96   :  { %620 = vrot.lane.b32.xlu1 %v3800_v18, %s3692_s24 }
  0x97   :  { %618 = vrot.lane.b32.xlu0 %v3747_v9, %s3692_s24 }
  0xec   :  { %v60_v28 = vpop.permute.xlu1 %59 }
  0xed   :  { %v58_v30 = vpop.permute.xlu0 %57 }
  0xee   :  { %v62_v34 = vsel %vm61_vm7, %v58_v30, %v60_v28  ;;  %v63_v35 = vsel %vm61_vm7, %v60_v28, %v58_v30 }
  0xf0   :  { %v67_v32 = vpop.permute.xlu1 %66 }
  0xf1   :  { %v65_v33 = vpop.permute.xlu0 %64 }
  0xf2   :  { %v69_v36 = vsel %vm68_vm8, %v65_v33, %v67_v32  ;;  %v70_v37 = vsel %vm68_vm8, %v67_v32, %v65_v33 }
  0xf3   :  { %v95_v38 = vsel %vm93_vm9, %v63_v35, %v69_v36  ;;  %v96_v39 = vsel %vm94_vm10, %v62_v34, %v70_v37  ;;  %v83_v43 = vsel %vm81_vm11, %v70_v37, %v62_v34  ;;  %v82_v44 = vsel %vm80_vm12, %v69_v36, %v63_v35 }
  0xf4   :  { %v1758_v41 = vpop.permute.xlu1 %1757  ;;  %3443 = vmatprep.subr.msk.mxu0 %vm104_vm2, %v96_v39 }
  0xf5   :  { %v1756_v42 = vpop.permute.xlu0 %1755  ;;  %3444 = vmatpush1.msk.msra.mxu0 %vm104_vm2, %v95_v38 }
  0xf6   :  { %v3850_v45 = vsel %vm24_vm1, %v1756_v42, %v1758_v41  ;;  %3445 = vmatmul.mubr.msk.f32.vlgmr.msra.gmra.mrb[0].mxu0 %vm100_vm3, %v3442_v40  ;;  %3446 = vmatprep.subr.msk.mxu0 %vm104_vm2, %v83_v43  ;;  %v1760_v48 = vsel %vm24_vm1, %v1758_v41, %v1756_v42  ;;  %v3513_v41 = vld [vmem:[%s4470_s1 + $0x8] sm:$0xf] }
  0xf7   :  { %3447 = vmatpush1.msk.msra.mxu0 %vm104_vm2, %v82_v44  ;;  %1773 = vrot.lane.b32.xlu1 %v3850_v45, %s3691_s21 }
  0xf8   :  { %v1764_v46 = vpop.permute.xlu1 %1763  ;;  %337 = vmatprep.mubr.f32.mxu0 %v3690_v2 }
  0xf9   :  { %v1762_v47 = vpop.permute.xlu0 %1761 }
  0xfa   :  { %v3862_v49 = vsel %vm42_vm0, %v1762_v47, %v1764_v46  ;;  %v1766_v60 = vsel %vm42_vm0, %v1764_v46, %v1762_v47 }
  0xfb   :  { %1779 = vrot.lane.b32.xlu1 %v3850_v45, %s3692_s24  ;;  %v3869_v50 = vsel %vm24_vm1, %v3862_v49, %v1760_v48  ;;  %v3911_v6 = vsel %vm27_vm4, %v3850_v45, %v1766_v60  ;;  %v3524_v60 = vld [vmem:[%s4470_s1 + $0x10] sm:$0xf] }
  0xfc   :  { %1771 = vrot.lane.b32.xlu0 %v3869_v50, %s3691_s21  ;;  %v349_v52 = vpop.permute.xlu1 %348 }
  0xfd   :  { %v347_v53 = vpop.permute.xlu0 %346 }
  0xfe   :  { %3448 = vmatmul.mubr.msk.f32.vlgmr.msra.gmra.mrb[0].mxu0 %vm100_vm3, %v97_v51  ;;  %v350_v56 = vsel %vm61_vm7, %v347_v53, %v349_v52  ;;  %v351_v57 = vsel %vm61_vm7, %v349_v52, %v347_v53  ;;  %v1787_v52 = vld [vmem:[%s4470_s1] sm:$0xf] }
  0xff   :  { %2034 = vrot.lane.b32.xlu1 %v3773_v15, %s3691_s21  ;;  %437 = vmatprep.mubr.f32.mxu0 %v3690_v2 }
 0x100   :  { %1777 = vrot.lane.b32.xlu0 %v3869_v50, %s3692_s24  ;;  %v355_v54 = vpop.permute.xlu1 %354 }
 0x101   :  { %v353_v55 = vpop.permute.xlu0 %352 }
 0x102   :  { %v356_v58 = vsel %vm68_vm8, %v353_v55, %v355_v54  ;;  %v357_v59 = vsel %vm68_vm8, %v355_v54, %v353_v55 }
 0x103   :  { %v358_v61 = vsel %vm80_vm12, %v356_v58, %v351_v57  ;;  %2040 = vrot.lane.b32.xlu1 %v3773_v15, %s3692_s24  ;;  %v359_v62 = vsel %vm81_vm11, %v357_v59, %v350_v56  ;;  %v361_v7 = vsel %vm94_vm10, %v350_v56, %v357_v59  ;;  %v360_v11 = vsel %vm93_vm9, %v351_v57, %v356_v58  ;;  %v3520_v56 = vld [vmem:[%s4470_s1 + $0xc] sm:$0xf] }
 0x104   :  { %2032 = vrot.lane.b32.xlu0 %v3766_v14, %s3691_s21  ;;  %3450 = vmatprep.subr.msk.mxu0 %vm104_vm2, %v359_v62  ;;  %v615_v3 = vpop.permute.xlu1 %614 }
 0x105   :  { %v613_v5 = vpop.permute.xlu0 %612  ;;  %3451 = vmatpush1.msk.msra.mxu0 %vm104_vm2, %v358_v61 }
 0x106   :  { %3452 = vmatmul.mubr.msk.f32.vlgmr.msra.gmra.mrb[0].mxu0 %vm100_vm3, %v3449_v63  ;;  %3454 = vmatprep.subr.msk.mxu0 %vm104_vm2, %v3733_v1  ;;  %v616_v12 = vsel %vm61_vm7, %v613_v5, %v615_v3  ;;  %v617_v20 = vsel %vm61_vm7, %v615_v3, %v613_v5  ;;  %v3528_v5 = vld [vmem:[%s4470_s1 + $0x14] sm:$0xf] }
 0x107   :  { %3455 = vmatpush1.msk.msra.mxu0 %vm104_vm2, %v3725_v0  ;;  %2297 = vrot.lane.b32.xlu1 %v3911_v6, %s3691_s21  ;;  %v3453_v0 = vld [vmem:[%s4470_s1 + $0x10] sm:$0xf] }
 0x108   :  { %2038 = vrot.lane.b32.xlu0 %v3766_v14, %s3692_s24  ;;  %3458 = vmatprep.subr.msk.mxu0 %vm104_vm2, %v361_v7  ;;  %v621_v1 = vpop.permute.xlu1 %620 }
 0x109   :  { %v619_v8 = vpop.permute.xlu0 %618  ;;  %517 = vmatprep.mubr.f32.mxu0 %v3690_v2 }
 0x10a   :  { %v623_v10 = vsel %vm68_vm8, %v621_v1, %v619_v8  ;;  %v622_v17 = vsel %vm68_vm8, %v619_v8, %v621_v1  ;;  %v3532_v8 = vld [vmem:[%s4470_s1 + $0x18] sm:$0xf] }
 0x10b   :  { %2303 = vrot.lane.b32.xlu1 %v3911_v6, %s3692_s24  ;;  %v625_v13 = vsel %vm81_vm11, %v623_v10, %v616_v12  ;;  %v624_v21 = vsel %vm80_vm12, %v622_v17, %v617_v20  ;;  %v627_v23 = vsel %vm94_vm10, %v616_v12, %v623_v10  ;;  %v626_v24 = vsel %vm93_vm9, %v617_v20, %v622_v17 }
 0x10c   :  { %2295 = vrot.lane.b32.xlu0 %v3862_v49, %s3691_s21 }
 0x10e   :  { %3456 = vmatmul.mubr.msk.f32.vlgmr.msra.gmra.mrb[0].mxu0 %vm100_vm3, %v3453_v0 }
 0x10f   :  { %3459 = vmatpush1.msk.msra.mxu0 %vm104_vm2, %v360_v11  ;;  %599 = vmatprep.mubr.f32.mxu0 %v3690_v2 }
 0x110   :  { %3462 = vmatprep.subr.msk.mxu0 %vm104_vm2, %v625_v13  ;;  %2301 = vrot.lane.b32.xlu0 %v3862_v49, %s3692_s24 }
 0x116   :  { %3460 = vmatmul.mubr.msk.f32.vlgmr.msra.gmra.mrb[0].mxu0 %vm100_vm3, %v3457_v19 }
 0x117   :  { %3463 = vmatpush1.msk.msra.mxu0 %vm104_vm2, %v624_v21  ;;  %703 = vmatprep.mubr.f32.mxu0 %v3690_v2 }
 0x118   :  { %3466 = vmatprep.subr.msk.mxu0 %vm104_vm2, %v3800_v18  ;;  %v3465_v18 = vld [vmem:[%s4470_s1 + $0x1c] sm:$0xf] }
 0x11e   :  { %3464 = vmatmul.mubr.msk.f32.vlgmr.msra.gmra.mrb[0].mxu0 %vm100_vm3, %v3461_v22 }
 0x11f   :  { %3467 = vmatpush1.msk.msra.mxu0 %vm104_vm2, %v3747_v9  ;;  %785 = vmatprep.mubr.f32.mxu0 %v3690_v2  ;;  %v3469_v9 = vld [vmem:[%s4470_s1 + $0x20] sm:$0xf] }
 0x120   :  { %3470 = vmatprep.subr.msk.mxu0 %vm104_vm2, %v627_v23 }
 0x126   :  { %3468 = vmatmul.mubr.msk.f32.vlgmr.msra.gmra.mrb[0].mxu0 %vm100_vm3, %v3465_v18 }
 0x127   :  { %3471 = vmatpush1.msk.msra.mxu0 %vm104_vm2, %v626_v24  ;;  %867 = vmatprep.mubr.f32.mxu0 %v3690_v2 }
 0x128   :  { %3510 = vmatprep.subr.msk.mxu0 %vm104_vm2, %v3850_v45 }
 0x12e   :  { %3472 = vmatmul.mubr.msk.f32.vlgmr.msra.gmra.mrb[0].mxu0 %vm100_vm3, %v3469_v9 }
 0x12f   :  { %3511 = vmatpush1.msk.msra.mxu0 %vm104_vm2, %v3869_v50  ;;  %1862 = vmatprep.mubr.f32.mxu0 %v3690_v2 }
 0x132   :  { %3512 = vmatmul.mubr.msk.f32.vlgmr.msra.gmra.mrb[2].mxu0 %vm100_vm3, %v3509_v25 }
 0x133   :  { %1943 = vmatprep.mubr.f32.mxu0 %v3690_v2 }
 0x169   :  { %v1774_v28 = vpop.permute.xlu1 %1773 }
 0x16d   :  { %v1780_v30 = vpop.permute.xlu1 %1779 }
 0x16e   :  { %v1772_v32 = vpop.permute.xlu0 %1771 }
 0x16f   :  { %v1775_v34 = vsel %vm61_vm7, %v1772_v32, %v1774_v28  ;;  %v1776_v35 = vsel %vm61_vm7, %v1774_v28, %v1772_v32 }
 0x171   :  { %v2035_v38 = vpop.permute.xlu1 %2034 }
 0x172   :  { %v1778_v33 = vpop.permute.xlu0 %1777 }
 0x173   :  { %v1781_v36 = vsel %vm68_vm8, %v1778_v33, %v1780_v30  ;;  %v1782_v37 = vsel %vm68_vm8, %v1780_v30, %v1778_v33 }
 0x174   :  { %v1785_v39 = vsel %vm93_vm9, %v1776_v35, %v1781_v36  ;;  %v1786_v40 = vsel %vm94_vm10, %v1775_v34, %v1782_v37  ;;  %v1784_v43 = vsel %vm81_vm11, %v1782_v37, %v1775_v34  ;;  %v1783_v44 = vsel %vm80_vm12, %v1781_v36, %v1776_v35 }
 0x175   :  { %3514 = vmatprep.subr.msk.mxu0 %vm104_vm2, %v1786_v40  ;;  %v2041_v46 = vpop.permute.xlu1 %2040 }
 0x176   :  { %v2033_v42 = vpop.permute.xlu0 %2032  ;;  %3515 = vmatpush1.msk.msra.mxu0 %vm104_vm2, %v1785_v39 }
 0x177   :  { %3516 = vmatmul.mubr.msk.f32.vlgmr.msra.gmra.mrb[2].mxu0 %vm100_vm3, %v3513_v41  ;;  %3517 = vmatprep.subr.msk.mxu0 %vm104_vm2, %v1784_v43  ;;  %v2036_v45 = vsel %vm61_vm7, %v2033_v42, %v2035_v38  ;;  %v2037_v47 = vsel %vm61_vm7, %v2035_v38, %v2033_v42 }
 0x178   :  { %3518 = vmatpush1.msk.msra.mxu0 %vm104_vm2, %v1783_v44  ;;  %2023 = vmatprep.mubr.f32.mxu0 %v3690_v2 }
 0x179   :  { %v2298_v57 = vpop.permute.xlu1 %2297 }
 0x17a   :  { %v2039_v48 = vpop.permute.xlu0 %2038 }
 0x17b   :  { %v2042_v50 = vsel %vm68_vm8, %v2039_v48, %v2041_v46  ;;  %v2043_v51 = vsel %vm68_vm8, %v2041_v46, %v2039_v48 }
 0x17c   :  { %v2045_v53 = vsel %vm81_vm11, %v2043_v51, %v2036_v45  ;;  %v2044_v54 = vsel %vm80_vm12, %v2042_v50, %v2037_v47  ;;  %v2047_v58 = vsel %vm94_vm10, %v2036_v45, %v2043_v51  ;;  %v2046_v62 = vsel %vm93_vm9, %v2037_v47, %v2042_v50 }
 0x17d   :  { %3521 = vmatprep.subr.msk.mxu0 %vm104_vm2, %v2045_v53 }
 0x17e   :  { %v2296_v55 = vpop.permute.xlu0 %2295 }
 0x17f   :  { %3519 = vmatmul.mubr.msk.f32.vlgmr.msra.gmra.mrb[2].mxu0 %vm100_vm3, %v1787_v52  ;;  %v2300_v7 = vsel %vm61_vm7, %v2298_v57, %v2296_v55 }
 0x180   :  { %3522 = vmatpush1.msk.msra.mxu0 %vm104_vm2, %v2044_v54  ;;  %2122 = vmatprep.mubr.f32.mxu0 %v3690_v2 }
 0x181   :  { %3525 = vmatprep.subr.msk.mxu0 %vm104_vm2, %v3773_v15  ;;  %v2304_v15 = vpop.permute.xlu1 %2303 }
 0x182   :  { %v2302_v59 = vpop.permute.xlu0 %2301 }
 0x183   :  { %v2306_v61 = vsel %vm68_vm8, %v2304_v15, %v2302_v59  ;;  %v2305_v3 = vsel %vm68_vm8, %v2302_v59, %v2304_v15 }
 0x184   :  { %v2307_v1 = vsel %vm80_vm12, %v2305_v3, %v2300_v7  ;;  %v2309_v10 = vsel %vm93_vm9, %v2300_v7, %v2305_v3  ;;  %v3473_v7 = vld [vmem:[%s4471_s2 + $0x4] sm:$0xf] }
 0x187   :  { %3523 = vmatmul.mubr.msk.f32.vlgmr.msra.gmra.mrb[2].mxu0 %vm100_vm3, %v3520_v56 }
 0x188   :  { %3526 = vmatpush1.msk.msra.mxu0 %vm104_vm2, %v3766_v14  ;;  %2201 = vmatprep.mubr.f32.mxu0 %v3690_v2  ;;  %v2299_v14 = vsel %vm61_vm7, %v2296_v55, %v2298_v57 }
 0x189   :  { %3529 = vmatprep.subr.msk.mxu0 %vm104_vm2, %v2047_v58  ;;  %v2308_v63 = vsel %vm81_vm11, %v2306_v61, %v2299_v14  ;;  %v2310_v0 = vsel %vm94_vm10, %v2299_v14, %v2306_v61 }
 0x18f   :  { %3527 = vmatmul.mubr.msk.f32.vlgmr.msra.gmra.mrb[2].mxu0 %vm100_vm3, %v3524_v60 }
 0x190   :  { %3530 = vmatpush1.msk.msra.mxu0 %vm104_vm2, %v2046_v62  ;;  %2282 = vmatprep.mubr.f32.mxu0 %v3690_v2 }
 0x191   :  { %3533 = vmatprep.subr.msk.mxu0 %vm104_vm2, %v2308_v63 }
 0x197   :  { %3531 = vmatmul.mubr.msk.f32.vlgmr.msra.gmra.mrb[2].mxu0 %vm100_vm3, %v3528_v5 }
 0x198   :  { %3534 = vmatpush1.msk.msra.mxu0 %vm104_vm2, %v2307_v1  ;;  %2385 = vmatprep.mubr.f32.mxu0 %v3690_v2 }
 0x199   :  { %3537 = vmatprep.subr.msk.mxu0 %vm104_vm2, %v3911_v6  ;;  %v3536_v6 = vld [vmem:[%s4470_s1 + $0x1c] sm:$0xf] }
 0x19f   :  { %3535 = vmatmul.mubr.msk.f32.vlgmr.msra.gmra.mrb[2].mxu0 %vm100_vm3, %v3532_v8 }
 0x1a0   :  { %3538 = vmatpush1.msk.msra.mxu0 %vm104_vm2, %v3862_v49  ;;  %2466 = vmatprep.mubr.f32.mxu0 %v3690_v2  ;;  %v3540_v49 = vld [vmem:[%s4470_s1 + $0x20] sm:$0xf] }
 0x1a1   :  { %3541 = vmatprep.subr.msk.mxu0 %vm104_vm2, %v2310_v0 }
 0x1a7   :  { %3539 = vmatmul.mubr.msk.f32.vlgmr.msra.gmra.mrb[2].mxu0 %vm100_vm3, %v3536_v6 }
 0x1a8   :  { %3542 = vmatpush1.msk.msra.mxu0 %vm104_vm2, %v2309_v10  ;;  %2547 = vmatprep.mubr.f32.mxu0 %v3690_v2 }
 0x1af   :  { %3543 = vmatmul.mubr.msk.f32.vlgmr.msra.gmra.mrb[2].mxu0 %vm100_vm3, %v3540_v49 }
 0x201   :  { %v869_v11 = vpop.f32.mrb[0].mxu0 }
 0x202   :  { %v887_v12 = vmul.f32 %v869_v11, %v869_v11  ;;  %v871_v13 = vpop.f32.mrb[1].mxu0  ;;  %v880_v17 = vsel %vm104_vm2, %v869_v11, 0.0 }
 0x203   :  { %v888_v19 = vmul.f32 %v871_v13, %v871_v13  ;;  %v881_v20 = vsel %vm104_vm2, %v871_v13, 0.0 }
 0x204   :  { %v882_v21 = vadd.f32 %v881_v20, %v880_v17  ;;  %v889_v22 = vsel %vm104_vm2, %v887_v12, 0.0 }
 0x205   :  { %v890_v23 = vsel %vm104_vm2, %v888_v19, 0.0 }
 0x206   :  { %883 = vadd.xlane.f32.xlu0 %v882_v21  ;;  %v891_v18 = vadd.f32 %v890_v23, %v889_v22 }
 0x208   :  { %892 = vadd.xlane.f32.xlu1 %v891_v18 }
 0x282   :  { %v2549_v24 = vpop.f32.mrb[2].mxu0 }
 0x283   :  { %v2566_v9 = vmul.f32 %v2549_v24, %v2549_v24  ;;  %v2551_v25 = vpop.f32.mrb[3].mxu0  ;;  %v2560_v28 = vsel %vm104_vm2, %v2549_v24, 0.0 }
 0x284   :  { %v2561_v30 = vsel %vm104_vm2, %v2551_v25, 0.0  ;;  %v2567_v32 = vmul.f32 %v2551_v25, %v2551_v25 }
 0x285   :  { %v2562_v33 = vadd.f32 %v2561_v30, %v2560_v28  ;;  %v2568_v34 = vsel %vm104_vm2, %v2566_v9, 0.0 }
 0x286   :  { %v2569_v35 = vsel %vm104_vm2, %v2567_v32, 0.0  ;;  %v3477_v32 = vld [vmem:[%s4471_s2 + $0x8] sm:$0xf] }
 0x287   :  { %2563 = vadd.xlane.f32.xlu0 %v2562_v33  ;;  %v2570_v36 = vadd.f32 %v2569_v35, %v2568_v34 }
 0x28b   :  { %2571 = vadd.xlane.f32.xlu0 %v2570_v36 }
 0x293   :  { %v884_v37 = vpop.xlane.xlu0 %883 }
 0x294   :  { %v886_v38 = vmul.f32 0.00390625, %v884_v37 }
 0x295   :  { %v893_v39 = vpop.xlane.xlu1 %892 }
 0x296   :  { %v895_v40 = vmul.f32 %v886_v38, %v886_v38  ;;  %v894_v41 = vmul.f32 0.00390625, %v893_v39  ;;  %v898_v45 = vsub.f32 %v869_v11, %v886_v38  ;;  %v899_v46 = vsub.f32 %v871_v13, %v886_v38 }
 0x298   :  { %v896_v42 = vsub.f32 %v894_v41, %v895_v40 }
 0x29a   :  { %v897_v43 = vmax.f32 %v896_v42, 0.0 }
 0x29c   :  { %v900_v44 = vadd.f32 1e-05, %v897_v43  ;;  %v938_v43 = vld [vmem:[%s4471_s2] sm:$0xf] }
 0x29e   :  { %3654 = vrsqrt.f32 %v900_v44 }
 0x2a8   :  { %v3655_v47 = vpop.eup %3654 }
 0x2a9   :  { %v903_v48 = vmul.f32 %v3655_v47, %v899_v46  ;;  %v902_v50 = vmul.f32 %v3655_v47, %v898_v45 }
 0x2ab   :  { %v4105_v51 = vmax.f32 %v903_v48, 0.0  ;;  %v4107_v52 = vmax.f32 %v902_v50, 0.0 }
 0x2ad   :  { %908 = vrot.lane.b32.xlu0 %v4105_v51, %s3689_s18  ;;  %906 = vrot.lane.b32.xlu1 %v4107_v52, %s3689_s18 }
 0x2b1   :  { %912 = vrot.lane.b32.xlu1 %v4107_v52, %s3688_s17 }
 0x2b5   :  { %914 = vrot.lane.b32.xlu1 %v4105_v51, %s3688_s17 }
 0x314   :  { %v2564_v53 = vpop.xlane.xlu0 %2563 }
 0x315   :  { %v2565_v54 = vmul.f32 0.00390625, %v2564_v53 }
 0x317   :  { %v2574_v56 = vmul.f32 %v2565_v54, %v2565_v54  ;;  %v2577_v8 = vsub.f32 %v2549_v24, %v2565_v54  ;;  %v2578_v0 = vsub.f32 %v2551_v25, %v2565_v54 }
 0x318   :  { %v2572_v55 = vpop.xlane.xlu0 %2571 }
 0x319   :  { %v2573_v57 = vmul.f32 0.00390625, %v2572_v55 }
 0x31b   :  { %v2575_v58 = vsub.f32 %v2573_v57, %v2574_v56  ;;  %v3484_v57 = vld [vmem:[%s4471_s2 + $0xc] sm:$0xf] }
 0x31d   :  { %v2576_v59 = vmax.f32 %v2575_v58, 0.0 }
 0x31f   :  { %v2579_v15 = vadd.f32 1e-05, %v2576_v59  ;;  %v909_v60 = vpop.permute.xlu0 %908  ;;  %v907_v61 = vpop.permute.xlu1 %906 }
 0x320   :  { %v910_v62 = vsel %vm24_vm1, %v907_v61, %v909_v60  ;;  %v911_v3 = vsel %vm24_vm1, %v909_v60, %v907_v61  ;;  %v3488_v61 = vld [vmem:[%s4471_s2 + $0x10] sm:$0xf] }
 0x321   :  { %3656 = vrsqrt.f32 %v2579_v15  ;;  %924 = vrot.lane.b32.xlu1 %v910_v62, %s3691_s21  ;;  %3474 = vmatprep.subr.msk.mxu1 %vm104_vm2, %v910_v62 }
 0x323   :  { %v913_v14 = vpop.permute.xlu1 %912 }
 0x325   :  { %930 = vrot.lane.b32.xlu1 %v910_v62, %s3692_s24 }
 0x327   :  { %v915_v63 = vpop.permute.xlu1 %914 }
 0x328   :  { %v4126_v5 = vsel %vm42_vm0, %v913_v14, %v915_v63  ;;  %v917_v13 = vsel %vm42_vm0, %v915_v63, %v913_v14 }
 0x329   :  { %v918_v1 = vsel %vm24_vm1, %v4126_v5, %v911_v3  ;;  %v4163_v17 = vsel %vm27_vm4, %v910_v62, %v917_v13  ;;  %v3544_v13 = vld [vmem:[%s4471_s2 + $0x4] sm:$0xf] }
 0x32a   :  { %922 = vrot.lane.b32.xlu0 %v918_v1, %s3691_s21  ;;  %3475 = vmatpush1.msk.msra.mxu1 %vm104_vm2, %v918_v1 }
 0x32b   :  { %v3657_v6 = vpop.eup %3656  ;;  %3476 = vmatmul.mubr.msk.f32.vlgmr.msra.gmra.mrb[0].mxu1 %vm100_vm3, %v3473_v7  ;;  %v3492_v7 = vld [vmem:[%s4471_s2 + $0x14] sm:$0xf] }
 0x32c   :  { %v2582_v10 = vmul.f32 %v3657_v6, %v2578_v0  ;;  %v2581_v49 = vmul.f32 %v3657_v6, %v2577_v8  ;;  %1096 = vmatprep.mubr.f32.mxu1 %v3690_v2  ;;  %v3496_v0 = vld [vmem:[%s4471_s2 + $0x18] sm:$0xf] }
 0x32e   :  { %928 = vrot.lane.b32.xlu0 %v918_v1, %s3692_s24  ;;  %v4139_v11 = vmax.f32 %v2582_v10, 0.0  ;;  %v4143_v12 = vmax.f32 %v2581_v49, 0.0  ;;  %v3500_v10 = vld [vmem:[%s4471_s2 + $0x1c] sm:$0xf] }
 0x330   :  { %2587 = vrot.lane.b32.xlu1 %v4139_v11, %s3689_s18 }
 0x332   :  { %2585 = vrot.lane.b32.xlu0 %v4143_v12, %s3689_s18 }
 0x334   :  { %2593 = vrot.lane.b32.xlu1 %v4139_v11, %s3688_s17 }
 0x336   :  { %2591 = vrot.lane.b32.xlu0 %v4143_v12, %s3688_s17 }
 0x338   :  { %1187 = vrot.lane.b32.xlu1 %v4105_v51, %s3691_s21 }
 0x33a   :  { %1185 = vrot.lane.b32.xlu0 %v4107_v52, %s3691_s21 }
 0x33c   :  { %1193 = vrot.lane.b32.xlu1 %v4105_v51, %s3692_s24 }
 0x33e   :  { %1191 = vrot.lane.b32.xlu0 %v4107_v52, %s3692_s24 }
 0x340   :  { %1455 = vrot.lane.b32.xlu1 %v4163_v17, %s3691_s21 }
 0x342   :  { %1453 = vrot.lane.b32.xlu0 %v4126_v5, %s3691_s21 }
 0x344   :  { %1461 = vrot.lane.b32.xlu1 %v4163_v17, %s3692_s24 }
 0x346   :  { %1459 = vrot.lane.b32.xlu0 %v4126_v5, %s3692_s24 }
 0x393   :  { %v925_v19 = vpop.permute.xlu1 %924 }
 0x397   :  { %v931_v21 = vpop.permute.xlu1 %930 }
 0x39c   :  { %v923_v20 = vpop.permute.xlu0 %922 }
 0x39d   :  { %v926_v23 = vsel %vm61_vm7, %v923_v20, %v925_v19  ;;  %v927_v18 = vsel %vm61_vm7, %v925_v19, %v923_v20 }
 0x3a0   :  { %v929_v22 = vpop.permute.xlu0 %928 }
 0x3a1   :  { %v932_v24 = vsel %vm68_vm8, %v929_v22, %v931_v21  ;;  %v933_v9 = vsel %vm68_vm8, %v931_v21, %v929_v22 }
 0x3a2   :  { %v936_v25 = vsel %vm93_vm9, %v927_v18, %v932_v24  ;;  %v2588_v28 = vpop.permute.xlu1 %2587  ;;  %v937_v30 = vsel %vm94_vm10, %v926_v23, %v933_v9  ;;  %v935_v34 = vsel %vm81_vm11, %v933_v9, %v926_v23  ;;  %v934_v35 = vsel %vm80_vm12, %v932_v24, %v927_v18 }
 0x3a3   :  { %3478 = vmatprep.subr.msk.mxu1 %vm104_vm2, %v937_v30  ;;  %v3548_v30 = vld [vmem:[%s4471_s2 + $0x8] sm:$0xf] }
 0x3a4   :  { %v2586_v33 = vpop.permute.xlu0 %2585  ;;  %3479 = vmatpush1.msk.msra.mxu1 %vm104_vm2, %v936_v25 }
 0x3a5   :  { %v4196_v36 = vsel %vm24_vm1, %v2586_v33, %v2588_v28  ;;  %3480 = vmatmul.mubr.msk.f32.vlgmr.msra.gmra.mrb[0].mxu1 %vm100_vm3, %v3477_v32  ;;  %3481 = vmatprep.subr.msk.mxu1 %vm104_vm2, %v935_v34  ;;  %v2590_v39 = vsel %vm24_vm1, %v2588_v28, %v2586_v33 }
 0x3a6   :  { %3482 = vmatpush1.msk.msra.mxu1 %vm104_vm2, %v934_v35  ;;  %2603 = vrot.lane.b32.xlu1 %v4196_v36, %s3691_s21  ;;  %v2594_v37 = vpop.permute.xlu1 %2593 }
 0x3a7   :  { %1176 = vmatprep.mubr.f32.mxu1 %v3690_v2 }
 0x3a8   :  { %v2592_v38 = vpop.permute.xlu0 %2591 }
 0x3a9   :  { %v4208_v40 = vsel %vm42_vm0, %v2592_v38, %v2594_v37  ;;  %v2596_v54 = vsel %vm42_vm0, %v2594_v37, %v2592_v38 }
 0x3aa   :  { %2609 = vrot.lane.b32.xlu1 %v4196_v36, %s3692_s24  ;;  %v1188_v41 = vpop.permute.xlu1 %1187  ;;  %v4215_v42 = vsel %vm24_vm1, %v4208_v40, %v2590_v39  ;;  %v4257_v15 = vsel %vm27_vm4, %v4196_v36, %v2596_v54 }
 0x3ab   :  { %2601 = vrot.lane.b32.xlu0 %v4215_v42, %s3691_s21 }
 0x3ac   :  { %v1186_v44 = vpop.permute.xlu0 %1185 }
 0x3ad   :  { %3483 = vmatmul.mubr.msk.f32.vlgmr.msra.gmra.mrb[0].mxu1 %vm100_vm3, %v938_v43  ;;  %v1189_v47 = vsel %vm61_vm7, %v1186_v44, %v1188_v41  ;;  %v1190_v48 = vsel %vm61_vm7, %v1188_v41, %v1186_v44 }
 0x3ae   :  { %2864 = vrot.lane.b32.xlu1 %v4139_v11, %s3691_s21  ;;  %v1194_v45 = vpop.permute.xlu1 %1193  ;;  %1276 = vmatprep.mubr.f32.mxu1 %v3690_v2 }
 0x3af   :  { %2607 = vrot.lane.b32.xlu0 %v4215_v42, %s3692_s24 }
 0x3b0   :  { %v1192_v46 = vpop.permute.xlu0 %1191 }
 0x3b1   :  { %v1195_v50 = vsel %vm68_vm8, %v1192_v46, %v1194_v45  ;;  %v1196_v53 = vsel %vm68_vm8, %v1194_v45, %v1192_v46  ;;  %v3555_v46 = vld [vmem:[%s4471_s2 + $0xc] sm:$0xf] }
 0x3b2   :  { %v1197_v55 = vsel %vm80_vm12, %v1195_v50, %v1190_v48  ;;  %2870 = vrot.lane.b32.xlu1 %v4139_v11, %s3692_s24  ;;  %v1198_v56 = vsel %vm81_vm11, %v1196_v53, %v1189_v47  ;;  %v1456_v58 = vpop.permute.xlu1 %1455  ;;  %v1200_v60 = vsel %vm94_vm10, %v1189_v47, %v1196_v53  ;;  %v1199_v62 = vsel %vm93_vm9, %v1190_v48, %v1195_v50  ;;  %v3559_v53 = vld [vmem:[%s4471_s2 + $0x10] sm:$0xf] }
 0x3b3   :  { %2862 = vrot.lane.b32.xlu0 %v4143_v12, %s3691_s21  ;;  %3485 = vmatprep.subr.msk.mxu1 %vm104_vm2, %v1198_v56 }
 0x3b4   :  { %v1454_v59 = vpop.permute.xlu0 %1453  ;;  %3486 = vmatpush1.msk.msra.mxu1 %vm104_vm2, %v1197_v55 }
 0x3b5   :  { %3487 = vmatmul.mubr.msk.f32.vlgmr.msra.gmra.mrb[0].mxu1 %vm100_vm3, %v3484_v57  ;;  %3489 = vmatprep.subr.msk.mxu1 %vm104_vm2, %v4105_v51  ;;  %v1457_v14 = vsel %vm61_vm7, %v1454_v59, %v1456_v58  ;;  %v1458_v1 = vsel %vm61_vm7, %v1456_v58, %v1454_v59  ;;  %v3563_v58 = vld [vmem:[%s4471_s2 + $0x14] sm:$0xf] }
 0x3b6   :  { %3129 = vrot.lane.b32.xlu1 %v4257_v15, %s3691_s21  ;;  %3490 = vmatpush1.msk.msra.mxu1 %vm104_vm2, %v4107_v52  ;;  %v1462_v16 = vpop.permute.xlu1 %1461 }
 0x3b7   :  { %2868 = vrot.lane.b32.xlu0 %v4143_v12, %s3692_s24  ;;  %3493 = vmatprep.subr.msk.mxu1 %vm104_vm2, %v1200_v60 }
 0x3b8   :  { %v1460_v51 = vpop.permute.xlu0 %1459  ;;  %1358 = vmatprep.mubr.f32.mxu1 %v3690_v2 }
 0x3b9   :  { %v1464_v52 = vsel %vm68_vm8, %v1462_v16, %v1460_v51  ;;  %v1463_v3 = vsel %vm68_vm8, %v1460_v51, %v1462_v16 }
 0x3ba   :  { %3135 = vrot.lane.b32.xlu1 %v4257_v15, %s3692_s24  ;;  %v1466_v63 = vsel %vm81_vm11, %v1464_v52, %v1457_v14  ;;  %v1465_v8 = vsel %vm80_vm12, %v1463_v3, %v1458_v1  ;;  %v1468_v6 = vsel %vm94_vm10, %v1457_v14, %v1464_v52  ;;  %v1467_v49 = vsel %vm93_vm9, %v1458_v1, %v1463_v3 }
 0x3bb   :  { %3127 = vrot.lane.b32.xlu0 %v4208_v40, %s3691_s21  ;;  %s3427_s21 = sshll.u32 %s3694_s19, 4  ;;  %s3428_s21 = int_to_ptr.vmem [resolvable:$true] %s3427_s21 }
 0x3bc   :  { %s3664_s22 = scalar_lea.vmem %s3428_s21, 256  ;;  %p3669_p1 = scmp.lt.s32.totalorder %s3428_s21, %s3428_s21 }
 0x3bd   :  { %3491 = vmatmul.mubr.msk.f32.vlgmr.msra.gmra.mrb[0].mxu1 %vm100_vm3, %v3488_v61  ;;  %p3665_p0 = scmp.ne.s32.totalorder %s3428_s21, %s3664_s22  ;;  %p3670_p2 = scmp.lt.s32.totalorder %s3664_s22, %s3664_s22 }
 0x3be   :  { %3494 = vmatpush1.msk.msra.mxu1 %vm104_vm2, %v1199_v62  ;;  %1440 = vmatprep.mubr.f32.mxu1 %v3690_v2 }
 0x3bf   :  { %3497 = vmatprep.subr.msk.mxu1 %vm104_vm2, %v1466_v63  ;;  %3133 = vrot.lane.b32.xlu0 %v4208_v40, %s3692_s24  ;;  %p3671_p3 = por %p3670_p2, %p3669_p1 }
 0x3c1   :  { %p3672_p4 = pnand %p3671_p3, %p3665_p0 }
 0x3c5   :  { %3495 = vmatmul.mubr.msk.f32.vlgmr.msra.gmra.mrb[0].mxu1 %vm100_vm3, %v3492_v7 }
 0x3c6   :  { %3498 = vmatpush1.msk.msra.mxu1 %vm104_vm2, %v1465_v8  ;;  %1544 = vmatprep.mubr.f32.mxu1 %v3690_v2 }
 0x3c7   :  { %3501 = vmatprep.subr.msk.mxu1 %vm104_vm2, %v4163_v17 }
 0x3cd   :  { %3499 = vmatmul.mubr.msk.f32.vlgmr.msra.gmra.mrb[0].mxu1 %vm100_vm3, %v3496_v0 }
 0x3ce   :  { %3502 = vmatpush1.msk.msra.mxu1 %vm104_vm2, %v4126_v5  ;;  %1626 = vmatprep.mubr.f32.mxu1 %v3690_v2  ;;  %v3504_v5 = vld [vmem:[%s4471_s2 + $0x20] sm:$0xf] }
 0x3cf   :  { %3505 = vmatprep.subr.msk.mxu1 %vm104_vm2, %v1468_v6 }
 0x3d5   :  { %3503 = vmatmul.mubr.msk.f32.vlgmr.msra.gmra.mrb[0].mxu1 %vm100_vm3, %v3500_v10 }
 0x3d6   :  { %3506 = vmatpush1.msk.msra.mxu1 %vm104_vm2, %v1467_v49  ;;  %1708 = vmatprep.mubr.f32.mxu1 %v3690_v2 }
 0x3d7   :  { %3545 = vmatprep.subr.msk.mxu1 %vm104_vm2, %v4196_v36 }
 0x3dd   :  { %3507 = vmatmul.mubr.msk.f32.vlgmr.msra.gmra.mrb[0].mxu1 %vm100_vm3, %v3504_v5 }
 0x3de   :  { %3546 = vmatpush1.msk.msra.mxu1 %vm104_vm2, %v4215_v42  ;;  %2692 = vmatprep.mubr.f32.mxu1 %v3690_v2  ;;  %v2617_v42 = vld [vmem:[%s4471_s2] sm:$0xf] }
 0x3e1   :  { %3547 = vmatmul.mubr.msk.f32.vlgmr.msra.gmra.mrb[2].mxu1 %vm100_vm3, %v3544_v13 }
 0x3e2   :  { %2773 = vmatprep.mubr.f32.mxu1 %v3690_v2 }
 0x418   :  { %v2604_v17 = vpop.permute.xlu1 %2603 }
 0x41c   :  { %v2610_v19 = vpop.permute.xlu1 %2609 }
 0x41d   :  { %v2602_v20 = vpop.permute.xlu0 %2601 }
 0x41e   :  { %v2605_v22 = vsel %vm61_vm7, %v2602_v20, %v2604_v17  ;;  %v2606_v23 = vsel %vm61_vm7, %v2604_v17, %v2602_v20 }
 0x420   :  { %v2865_v9 = vpop.permute.xlu1 %2864 }
 0x421   :  { %v2608_v21 = vpop.permute.xlu0 %2607 }
 0x422   :  { %v2611_v18 = vsel %vm68_vm8, %v2608_v21, %v2610_v19  ;;  %v2612_v24 = vsel %vm68_vm8, %v2610_v19, %v2608_v21 }
 0x423   :  { %v2615_v25 = vsel %vm93_vm9, %v2606_v23, %v2611_v18  ;;  %v2616_v28 = vsel %vm94_vm10, %v2605_v22, %v2612_v24  ;;  %v2614_v33 = vsel %vm81_vm11, %v2612_v24, %v2605_v22  ;;  %v2613_v34 = vsel %vm80_vm12, %v2611_v18, %v2606_v23 }
 0x424   :  { %3549 = vmatprep.subr.msk.mxu1 %vm104_vm2, %v2616_v28  ;;  %v2871_v35 = vpop.permute.xlu1 %2870 }
 0x425   :  { %v2863_v32 = vpop.permute.xlu0 %2862  ;;  %3550 = vmatpush1.msk.msra.mxu1 %vm104_vm2, %v2615_v25 }
 0x426   :  { %3551 = vmatmul.mubr.msk.f32.vlgmr.msra.gmra.mrb[2].mxu1 %vm100_vm3, %v3548_v30  ;;  %3552 = vmatprep.subr.msk.mxu1 %vm104_vm2, %v2614_v33  ;;  %v2866_v37 = vsel %vm61_vm7, %v2863_v32, %v2865_v9  ;;  %v2867_v43 = vsel %vm61_vm7, %v2865_v9, %v2863_v32 }
 0x427   :  { %3553 = vmatpush1.msk.msra.mxu1 %vm104_vm2, %v2613_v34  ;;  %2853 = vmatprep.mubr.f32.mxu1 %v3690_v2  ;;  %v3662_v34 = vld [vmem:[%s4469_s0] sm:$0xff] }
 0x428   :  { %v3130_v47 = vpop.permute.xlu1 %3129 }
 0x429   :  { %v2869_v36 = vpop.permute.xlu0 %2868 }
 0x42a   :  { %v2873_v38 = vsel %vm68_vm8, %v2871_v35, %v2869_v36  ;;  %v2872_v39 = vsel %vm68_vm8, %v2869_v36, %v2871_v35 }
 0x42b   :  { %v2875_v41 = vsel %vm81_vm11, %v2873_v38, %v2866_v37  ;;  %v2874_v44 = vsel %vm80_vm12, %v2872_v39, %v2867_v43  ;;  %v2877_v48 = vsel %vm94_vm10, %v2866_v37, %v2873_v38  ;;  %v2876_v55 = vsel %vm93_vm9, %v2867_v43, %v2872_v39 }
 0x42c   :  { %3556 = vmatprep.subr.msk.mxu1 %vm104_vm2, %v2875_v41 }
 0x42d   :  { %v3128_v45 = vpop.permute.xlu0 %3127 }
 0x42e   :  { %3554 = vmatmul.mubr.msk.f32.vlgmr.msra.gmra.mrb[2].mxu1 %vm100_vm3, %v2617_v42  ;;  %v3132_v59 = vsel %vm61_vm7, %v3130_v47, %v3128_v45 }
 0x42f   :  { %3557 = vmatpush1.msk.msra.mxu1 %vm104_vm2, %v2874_v44  ;;  %2952 = vmatprep.mubr.f32.mxu1 %v3690_v2 }
 0x430   :  { %3560 = vmatprep.subr.msk.mxu1 %vm104_vm2, %v4139_v11  ;;  %v3136_v11 = vpop.permute.xlu1 %3135 }
 0x431   :  { %v3134_v50 = vpop.permute.xlu0 %3133 }
 0x432   :  { %v3138_v54 = vsel %vm68_vm8, %v3136_v11, %v3134_v50  ;;  %v3137_v57 = vsel %vm68_vm8, %v3134_v50, %v3136_v11 }
 0x433   :  { %v3139_v60 = vsel %vm80_vm12, %v3137_v57, %v3132_v59 }
 0x436   :  { %3558 = vmatmul.mubr.msk.f32.vlgmr.msra.gmra.mrb[2].mxu1 %vm100_vm3, %v3555_v46 }
 0x437   :  { %3561 = vmatpush1.msk.msra.mxu1 %vm104_vm2, %v4143_v12  ;;  %3033 = vmatprep.mubr.f32.mxu1 %v3690_v2  ;;  %v3131_v12 = vsel %vm61_vm7, %v3128_v45, %v3130_v47 }
 0x438   :  { %3564 = vmatprep.subr.msk.mxu1 %vm104_vm2, %v2877_v48  ;;  %v3140_v56 = vsel %vm81_vm11, %v3138_v54, %v3131_v12  ;;  %v3142_v4 = vsel %vm94_vm10, %v3131_v12, %v3138_v54 }
 0x43e   :  { %3562 = vmatmul.mubr.msk.f32.vlgmr.msra.gmra.mrb[2].mxu1 %vm100_vm3, %v3559_v53  ;;  %v3663_v53 = vld [vmem:[%s4469_s0 + $0x8] sm:$0xff] }
 0x43f   :  { %3565 = vmatpush1.msk.msra.mxu1 %vm104_vm2, %v2876_v55  ;;  %3114 = vmatprep.mubr.f32.mxu1 %v3690_v2 }
 0x440   :  { %3568 = vmatprep.subr.msk.mxu1 %vm104_vm2, %v3140_v56 }
 0x446   :  { %3566 = vmatmul.mubr.msk.f32.vlgmr.msra.gmra.mrb[2].mxu1 %vm100_vm3, %v3563_v58 }
 0x447   :  { %3569 = vmatpush1.msk.msra.mxu1 %vm104_vm2, %v3139_v60  ;;  %3217 = vmatprep.mubr.f32.mxu1 %v3690_v2 }
 0x448   :  { %3572 = vmatprep.subr.msk.mxu1 %vm104_vm2, %v4257_v15  ;;  %v3141_v15 = vsel %vm93_vm9, %v3132_v59, %v3137_v57 }
 0x44e   :  { %3570 = vmatmul.mubr.msk.f32.vlgmr.msra.gmra.mrb[2].mxu1 %vm100_vm3, %v3567_v29 }
 0x44f   :  { %3573 = vmatpush1.msk.msra.mxu1 %vm104_vm2, %v4208_v40  ;;  %3298 = vmatprep.mubr.f32.mxu1 %v3690_v2 }
 0x450   :  { %3576 = vmatprep.subr.msk.mxu1 %vm104_vm2, %v3142_v4 }
 0x456   :  { %3574 = vmatmul.mubr.msk.f32.vlgmr.msra.gmra.mrb[2].mxu1 %vm100_vm3, %v3571_v31 }
 0x457   :  { %3577 = vmatpush1.msk.msra.mxu1 %vm104_vm2, %v3141_v15  ;;  %3379 = vmatprep.mubr.f32.mxu1 %v3690_v2 }
 0x45e   :  { %3578 = vmatmul.mubr.msk.f32.vlgmr.msra.gmra.mrb[2].mxu1 %vm100_vm3, %v3575_v27 }
 0x4b0   :  { %v1710_v40 = vpop.f32.mrb[0].mxu1 }
 0x4b1   :  { %v1727_v51 = vmul.f32 %v1710_v40, %v1710_v40  ;;  %v1712_v16 = vpop.f32.mrb[1].mxu1  ;;  %v1721_v61 = vsel %vm104_vm2, %v1710_v40, 0.0 }
 0x4b2   :  { %v1728_v52 = vmul.f32 %v1712_v16, %v1712_v16  ;;  %v1722_v26 = vsel %vm104_vm2, %v1712_v16, 0.0 }
 0x4b3   :  { %v1723_v62 = vadd.f32 %v1722_v26, %v1721_v61  ;;  %v1729_v14 = vsel %vm104_vm2, %v1727_v51, 0.0 }
 0x4b4   :  { %v1730_v63 = vsel %vm104_vm2, %v1728_v52, 0.0 }
 0x4b5   :  { %1724 = vadd.xlane.f32.xlu0 %v1723_v62  ;;  %v1731_v2 = vadd.f32 %v1730_v63, %v1729_v14 }
 0x4b9   :  { %1732 = vadd.xlane.f32.xlu0 %v1731_v2 }
 0x531   :  { %v3381_v3 = vpop.f32.mrb[2].mxu1 }
 0x532   :  { %v3398_v7 = vmul.f32 %v3381_v3, %v3381_v3  ;;  %v3383_v1 = vpop.f32.mrb[3].mxu1  ;;  %v3392_v8 = vsel %vm104_vm2, %v3381_v3, 0.0 }
 0x533   :  { %v3393_v0 = vsel %vm104_vm2, %v3383_v1, 0.0  ;;  %v3399_v6 = vmul.f32 %v3383_v1, %v3383_v1 }
 0x534   :  { %v3394_v10 = vadd.f32 %v3393_v0, %v3392_v8  ;;  %v3400_v49 = vsel %vm104_vm2, %v3398_v7, 0.0 }
 0x535   :  { %v3401_v5 = vsel %vm104_vm2, %v3399_v6, 0.0 }
 0x536   :  { %3395 = vadd.xlane.f32.xlu1 %v3394_v10  ;;  %v3402_v13 = vadd.f32 %v3401_v5, %v3400_v49 }
 0x538   :  { %3403 = vadd.xlane.f32.xlu0 %v3402_v13 }
 0x542   :  { %v1725_v17 = vpop.xlane.xlu0 %1724 }
 0x543   :  { %v1726_v19 = vmul.f32 0.00390625, %v1725_v17 }
 0x545   :  { %v1735_v21 = vmul.f32 %v1726_v19, %v1726_v19  ;;  %v1738_v9 = vsub.f32 %v1710_v40, %v1726_v19  ;;  %v1739_v25 = vsub.f32 %v1712_v16, %v1726_v19 }
 0x546   :  { %v1733_v20 = vpop.xlane.xlu0 %1732 }
 0x547   :  { %v1734_v22 = vmul.f32 0.00390625, %v1733_v20 }
 0x549   :  { %v1736_v23 = vsub.f32 %v1734_v22, %v1735_v21 }
 0x54b   :  { %v1737_v18 = vmax.f32 %v1736_v23, 0.0 }
 0x54d   :  { %v1740_v24 = vadd.f32 1e-05, %v1737_v18 }
 0x54f   :  { %3658 = vrsqrt.f32 %v1740_v24 }
 0x559   :  { %v3659_v28 = vpop.eup %3658 }
 0x55a   :  { %v1742_v30 = vmul.f32 %v3659_v28, %v1738_v9  ;;  %v1743_v32 = vmul.f32 %v3659_v28, %v1739_v25 }
 0x55c   :  { %v1746_v33 = vcombine.low %v1742_v30, %v1743_v32 }
 0x55e   :  { %v1748_v35 = vadd.f32 %v3662_v34, %v1746_v33 }
 0x560   :  { %1749 = vst [vmem:[#allocation2] sm:$0xff] %v1748_v35 }
 0x5c3   :  { %v3396_v36 = vpop.xlane.xlu1 %3395 }
 0x5c4   :  { %v3397_v37 = vmul.f32 0.00390625, %v3396_v36 }
 0x5c5   :  { %v3404_v38 = vpop.xlane.xlu0 %3403 }
 0x5c6   :  { %v3405_v39 = vmul.f32 0.00390625, %v3404_v38  ;;  %v3406_v41 = vmul.f32 %v3397_v37, %v3397_v37  ;;  %v3409_v45 = vsub.f32 %v3381_v3, %v3397_v37  ;;  %v3410_v46 = vsub.f32 %v3383_v1, %v3397_v37 }
 0x5c8   :  { %v3407_v42 = vsub.f32 %v3405_v39, %v3406_v41 }
 0x5ca   :  { %v3408_v43 = vmax.f32 %v3407_v42, 0.0 }
 0x5cc   :  { %v3411_v44 = vadd.f32 1e-05, %v3408_v43 }
 0x5ce   :  { %3660 = vrsqrt.f32 %v3411_v44 }
 0x5d8   :  { %v3661_v47 = vpop.eup %3660 }
 0x5d9   :  { %v3413_v48 = vmul.f32 %v3661_v47, %v3409_v45  ;;  %v3414_v50 = vmul.f32 %v3661_v47, %v3410_v46 }
 0x5db   :  { %v3417_v11 = vcombine.low %v3413_v48, %v3414_v50 }
 0x5dd   :  { %v3419_v54 = vadd.f32 %v3663_v53, %v3417_v11 }
 0x5df   :  { %3421 = vst [vmem:[#allocation2 + $0x8] sm:$0xff] %v3419_v54 }
 0x5e0   :  { %3675 = shalt.err (!%p3672_p4)
}
 0x5e1   :  { %s3676_s26 = scalar_lea.hbm %s4473_s4, 256 }
 0x5e2   :  { %p3677_p5 = scmp.ne.s32.totalorder %s4473_s4, %s3676_s26  ;;  %p3680_p6 = scmp.lt.u32.totalorder %s3676_s26, %s4473_s4 }
 0x5e4   :  { %p3682_p7 = pnand %p3680_p6, %p3677_p5 }
 0x5e6   :  { %3685 = shalt.err (!%p3682_p7)
}
 0x5e7   :  { %s3695_s29 = smov 128   ;;  %s3696_s30 = smov 8  }
 0x5e8   :  { %3433 = dma.vmem_to_hbm [thread:$0]  %s3428_s21, 256, %s4473_s4, [#allocation3], %s3695_s29, %s3695_s29, %s3696_s30  }
 0x5e9   :  { %3686 = dma.done.wait [#allocation3], 256  }
 0x5ea   :  { %3687 = vsyncadd [#allocation3], 4294967040 }
 0x5eb   :  { %3437 = vsyncpa [#allocation3], 1 }

</bundles_post_ra>
